<compile_context>
chip_gen: v7x
topology: tpu7x:2x2x1
jax: 0.10.0
libtpu: 0.0.40
codegen_flags: <defaults>
</compile_context>

<pallas_src>
import numpy as np
import jax
import jax.numpy as jnp
from jax import lax
from jax.experimental import pallas as pl
from jax.experimental.pallas import tpu as pltpu

# ---------------- static configuration ----------------
N, H, W = 2, 16, 16
HW = H * W                                # 256 lanes per image (multiple of 128)
PLANES = 16
SCALES = 4
GROUPS = 1
EXPANSION = 4
INPLANES = PLANES * EXPANSION             # 64  (residual add requires this)
BOTTLENECK = GROUPS * PLANES              # 16
WIDTH = BOTTLENECK // SCALES              # 4 real channels per Res2Net branch
CPAD = 8                                  # branch channels padded to 8 sublanes
OUT_C = PLANES * EXPANSION                # 64
L = N * HW                                # 512 lanes total
EPS = 1e-5

# packed gamma/beta row offsets inside the single (GB_ROWS, 1) input
# (all multiples of 8 -> every in-kernel slice is f32-sublane aligned)
G1_OFF = 0
B1_OFF = G1_OFF + SCALES * CPAD           # 32
G2_OFF = B1_OFF + SCALES * CPAD           # 64
B2_OFF = G2_OFF + (SCALES - 1) * CPAD     # 88
G3_OFF = B2_OFF + (SCALES - 1) * CPAD     # 112
B3_OFF = G3_OFF + OUT_C                   # 176
GB_ROWS = B3_OFF + OUT_C                  # 240


# ---------------- in-kernel helpers ----------------
def _bn_act(x, gamma, beta, relu):
    """Fused training-mode BatchNorm2d (+ optional ReLU), centred two-pass form.

    Stats over the L lanes (= N*H*W), applied as y = (x-mean)*scale + beta.
    x: (C, L) f32; gamma/beta: (C, 1) f32.  Zero-padded channel rows
    (gamma = beta = 0, x = 0) stay exactly zero.
    """
    mean = jnp.mean(x, axis=1, keepdims=True)
    xm = x - mean
    var = jnp.mean(xm * xm, axis=1, keepdims=True)
    y = xm * (gamma * lax.rsqrt(var + EPS)) + beta
    return jnp.maximum(y, 0.0) if relu else y


# ---------------- Pallas kernel ----------------
def res2net_bottleneck_kernel(x_ref, w1_ref, w2_ref, w3_ref, gb_ref, mask_ref,
                              o_ref, bn1_ref, cat_ref, taps_ref):
    # ---- conv1 (1x1) + bn1 + relu -------------------------------------------
    # Assemble the channel-major (INPLANES, L) activation from the two 256-lane
    # batch halves (in-kernel lane concat; no HBM transpose in the wrapper).
    x_cat = jnp.concatenate([x_ref[0].astype(jnp.bfloat16),
                             x_ref[1].astype(jnp.bfloat16)], axis=1)
    out1 = jnp.dot(w1_ref[...], x_cat,
                   preferred_element_type=jnp.float32)        # (SCALES*CPAD, L) f32
    out1 = _bn_act(out1,
                   gb_ref[G1_OFF:G1_OFF + SCALES * CPAD, :],
                   gb_ref[B1_OFF:B1_OFF + SCALES * CPAD, :], relu=True)
    bn1_ref[...] = out1                                       # stream, don't pin vregs
    cat_ref[0:CPAD, :] = out1[0:CPAD, :]                      # ys[0] = chunk 0

    # ---- Res2Net hierarchical 3x3 branches (serial across scales) ------------
    prev_y = None
    for s in range(1, SCALES):
        xc = bn1_ref[s * CPAD:(s + 1) * CPAD, :]              # torch.chunk(out, scales)[s]
        inp = xc if s == 1 else xc + prev_y

        # 9 zero-padded spatial shifts via pltpu.roll + precomputed lane masks,
        # streamed into a VMEM tap slab (bounds the 36-vreg live set of v2).
        for t in range(9):
            ky, kx = divmod(t, 3)
            off = (ky - 1) * W + (kx - 1)
            if off == 0:
                piece = inp
            else:
                piece = pltpu.roll(inp, (-off) % L, 1) * mask_ref[t:t + 1, :]
            taps_ref[t * CPAD:(t + 1) * CPAD, :] = piece

        acc = jnp.dot(w2_ref[s - 1],                          # (CPAD, 9*CPAD) bf16 taps
                      taps_ref[...].astype(jnp.bfloat16),
                      preferred_element_type=jnp.float32)     # (CPAD, L) f32
        y = _bn_act(acc,
                    gb_ref[G2_OFF + (s - 1) * CPAD:G2_OFF + s * CPAD, :],
                    gb_ref[B2_OFF + (s - 1) * CPAD:B2_OFF + s * CPAD, :], relu=True)
        cat_ref[s * CPAD:(s + 1) * CPAD, :] = y
        prev_y = y

    # ---- conv3 (1x1) over the concatenated branches + bn3 --------------------
    out3 = jnp.dot(w3_ref[...], cat_ref[...].astype(jnp.bfloat16),
                   preferred_element_type=jnp.float32)        # (OUT_C, L) f32
    out3 = _bn_act(out3,
                   gb_ref[G3_OFF:G3_OFF + OUT_C, :],
                   gb_ref[B3_OFF:B3_OFF + OUT_C, :], relu=False)

    # TODO(synk): SEModule (se=True) and downsample branches are not built —
    #             the module defaults construct both as None, so they are not
    #             part of this forward pass.

    # ---- residual + final relu, per batch half (re-read x; lane-dense stores) -
    o_ref[0, :, :] = jnp.maximum(out3[:, 0:HW] + x_ref[0], 0.0)
    o_ref[1, :, :] = jnp.maximum(out3[:, HW:L] + x_ref[1], 0.0)


# ---------------- glue: parameter init / packing ----------------
def init_params(key):
    ks = jax.random.split(key, 9)
    p = {}
    p['w1'] = jax.random.normal(ks[0], (BOTTLENECK, INPLANES), jnp.float32) / np.sqrt(INPLANES)
    p['g1'] = jax.random.uniform(ks[1], (BOTTLENECK,), jnp.float32, 0.5, 1.5)
    p['b1'] = 0.1 * jax.random.normal(ks[2], (BOTTLENECK,), jnp.float32)
    # conv2: (scales-1) convs with torch weight layout (cout, cin, 3, 3)
    p['w2'] = jax.random.normal(ks[3], (SCALES - 1, WIDTH, WIDTH, 3, 3),
                                jnp.float32) / np.sqrt(WIDTH * 9)
    p['g2'] = jax.random.uniform(ks[4], (SCALES - 1, WIDTH), jnp.float32, 0.5, 1.5)
    p['b2'] = 0.1 * jax.random.normal(ks[5], (SCALES - 1, WIDTH), jnp.float32)
    p['w3'] = jax.random.normal(ks[6], (OUT_C, BOTTLENECK), jnp.float32) / np.sqrt(BOTTLENECK)
    p['g3'] = jax.random.uniform(ks[7], (OUT_C,), jnp.float32, 0.5, 1.5)
    p['b3'] = 0.1 * jax.random.normal(ks[8], (OUT_C,), jnp.float32)
    return p


def _make_tap_masks():
    """(9, L) f32 validity masks for the 3x3 zero-padded taps in the flattened
    (batch-major) lane layout — covers image borders and the batch seam."""
    lane = np.arange(L)
    col = lane % W
    row = (lane // W) % H
    mask = np.zeros((9, L), np.float32)
    for ky in range(3):
        for kx in range(3):
            dy, dx = ky - 1, kx - 1
            valid = ((row + dy >= 0) & (row + dy < H) &
                     (col + dx >= 0) & (col + dx < W))
            mask[ky * 3 + kx] = valid.astype(np.float32)
    return mask


def pack_params(p):
    """Pad every 4-channel branch block to 8 sublanes, pre-pack / pre-cast
    weights to bf16, collapse all gamma/beta into one (240, 1) f32 input, and
    precompute the (9, L) tap masks.  Padding rows/columns are zero so padded
    channels stay exactly zero end to end; every in-kernel slice is 8-aligned.
    """
    w1 = np.asarray(p['w1']); g1 = np.asarray(p['g1']); b1 = np.asarray(p['b1'])
    w2 = np.asarray(p['w2']); g2 = np.asarray(p['g2']); b2 = np.asarray(p['b2'])
    w3 = np.asarray(p['w3']); g3 = np.asarray(p['g3']); b3 = np.asarray(p['b3'])

    # conv1: per-scale output chunks padded to CPAD rows.
    w1p = np.zeros((SCALES * CPAD, INPLANES), np.float32)
    for s in range(SCALES):
        w1p[s * CPAD:s * CPAD + WIDTH] = w1[s * WIDTH:(s + 1) * WIDTH]

    # conv2: per-scale (CPAD, 9*CPAD) packed tap matrices, tap t = ky*3 + kx.
    w2p = np.zeros((SCALES - 1, CPAD, 9 * CPAD), np.float32)
    for s in range(SCALES - 1):
        for ky in range(3):
            for kx in range(3):
                t = ky * 3 + kx
                w2p[s, :WIDTH, t * CPAD:t * CPAD + WIDTH] = w2[s, :, :, ky, kx]

    # conv3: zero columns at the padded input rows.
    w3p = np.zeros((OUT_C, SCALES * CPAD), np.float32)
    for s in range(SCALES):
        w3p[:, s * CPAD:s * CPAD + WIDTH] = w3[:, s * WIDTH:(s + 1) * WIDTH]

    # single packed gamma/beta column (padded rows carry zeros).
    gbp = np.zeros((GB_ROWS, 1), np.float32)
    for s in range(SCALES):
        gbp[G1_OFF + s * CPAD:G1_OFF + s * CPAD + WIDTH, 0] = g1[s * WIDTH:(s + 1) * WIDTH]
        gbp[B1_OFF + s * CPAD:B1_OFF + s * CPAD + WIDTH, 0] = b1[s * WIDTH:(s + 1) * WIDTH]
    for s in range(SCALES - 1):
        gbp[G2_OFF + s * CPAD:G2_OFF + s * CPAD + WIDTH, 0] = g2[s]
        gbp[B2_OFF + s * CPAD:B2_OFF + s * CPAD + WIDTH, 0] = b2[s]
    gbp[G3_OFF:G3_OFF + OUT_C, 0] = g3
    gbp[B3_OFF:B3_OFF + OUT_C, 0] = b3

    return dict(
        w1=jnp.asarray(w1p, dtype=jnp.bfloat16),
        w2=jnp.asarray(w2p, dtype=jnp.bfloat16),
        w3=jnp.asarray(w3p, dtype=jnp.bfloat16),
        gb=jnp.asarray(gbp),
        mask=jnp.asarray(_make_tap_masks()),
    )


_COST = pl.CostEstimate(
    flops=2 * L * (SCALES * CPAD * INPLANES
                   + (SCALES - 1) * CPAD * 9 * CPAD
                   + OUT_C * SCALES * CPAD),
    transcendentals=SCALES * CPAD + (SCALES - 1) * CPAD + OUT_C,   # rsqrt per BN channel
    bytes_accessed=(N * INPLANES * HW * 4 + N * OUT_C * HW * 4
                    + SCALES * CPAD * INPLANES * 2
                    + (SCALES - 1) * CPAD * 9 * CPAD * 2
                    + OUT_C * SCALES * CPAD * 2
                    + GB_ROWS * 4 + 9 * L * 4),
)


@jax.jit
def res2net_bottleneck(x_nchw, packed):
    # Pure reshape only (no transpose): (N, C, H, W) -> (N, C, H*W).
    x3d = x_nchw.reshape(N, INPLANES, HW)
    args = (x3d, packed['w1'], packed['w2'], packed['w3'], packed['gb'], packed['mask'])
    out3d = pl.pallas_call(
        res2net_bottleneck_kernel,
        out_shape=jax.ShapeDtypeStruct((N, OUT_C, HW), jnp.float32),
        in_specs=[pl.BlockSpec(memory_space=pltpu.MemorySpace.VMEM)] * len(args),
        out_specs=pl.BlockSpec(memory_space=pltpu.MemorySpace.VMEM),
        scratch_shapes=[
            pltpu.VMEM((SCALES * CPAD, L), jnp.float32),   # bn1 output stream
            pltpu.VMEM((SCALES * CPAD, L), jnp.float32),   # branch concat (conv3 input)
            pltpu.VMEM((9 * CPAD, L), jnp.float32),        # 3x3 tap slab
        ],
        cost_estimate=_COST,
    )(*args)
    # Pure reshape only (no transpose) back to NCHW.
    return out3d.reshape(N, OUT_C, H, W)


# ---------------- pure-JAX reference (NCHW, mirrors the PyTorch forward) ----------------
def reference(x, p, mxu_bf16=False):
    """Module forward in f32.  With mxu_bf16=True, matmul/conv operands are
    rounded to bf16 first (mirrors the kernel's MXU precision choice); all
    accumulation and BN math stays f32 with HIGHEST precision."""
    prec = lax.Precision.HIGHEST
    r = ((lambda a: a.astype(jnp.bfloat16).astype(jnp.float32)) if mxu_bf16
         else (lambda a: a))

    def bn(t, g, b):
        mean = t.mean(axis=(0, 2, 3), keepdims=True)
        var = ((t - mean) ** 2).mean(axis=(0, 2, 3), keepdims=True)
        return (t - mean) * lax.rsqrt(var + EPS) * g[None, :, None, None] + b[None, :, None, None]

    out = jnp.einsum('oc,nchw->nohw', r(p['w1']), r(x), precision=prec)
    out = jax.nn.relu(bn(out, p['g1'], p['b1']))
    xs = jnp.split(out, SCALES, axis=1)
    ys = []
    for s in range(SCALES):
        if s == 0:
            ys.append(xs[0])
            continue
        inp = xs[s] if s == 1 else xs[s] + ys[-1]
        c = lax.conv_general_dilated(r(inp), r(p['w2'][s - 1]), (1, 1), ((1, 1), (1, 1)),
                                     dimension_numbers=('NCHW', 'OIHW', 'NCHW'),
                                     precision=prec)
        ys.append(jax.nn.relu(bn(c, p['g2'][s - 1], p['b2'][s - 1])))
    out = jnp.concatenate(ys, axis=1)
    out = jnp.einsum('oc,nchw->nohw', r(p['w3']), r(out), precision=prec)
    out = bn(out, p['g3'], p['b3'])
    return jax.nn.relu(out + x)


if __name__ == "__main__":
    key = jax.random.PRNGKey(0)
    kx, kp = jax.random.split(key)
    x = jax.random.normal(kx, (N, INPLANES, H, W), jnp.float32)

    params = init_params(kp)
    packed = pack_params(params)

    out = jax.block_until_ready(res2net_bottleneck(x, packed))
    out_np = np.asarray(out)

    # Tight check: reference mirrors the kernel's bf16 MXU operand rounding,
    # so this isolates structural/packing bugs from the precision choice.
    ref_bf16 = np.asarray(reference(x, params, mxu_bf16=True))
    np.testing.assert_allclose(out_np, ref_bf16, rtol=2e-3, atol=5e-3)

    # Loose sanity bound against the full-f32 module forward: the only source
    # of deviation is bf16 matmul operand rounding (standard TPU precision).
    ref_f32 = np.asarray(reference(x, params, mxu_bf16=False))
    np.testing.assert_allclose(out_np, ref_f32, rtol=5e-2, atol=1e-1)

    print("KERNEL_OK")
</pallas_src>

<mosaic_0001>
module attributes {stable_mosaic.version = 11 : i64} {
  func.func @res2net_bottleneck_kernel(%arg0: memref<2x64x256xf32, #tpu.memory_space<vmem>>, %arg1: memref<32x64xbf16, #tpu.memory_space<vmem>>, %arg2: memref<3x8x72xbf16, #tpu.memory_space<vmem>>, %arg3: memref<64x32xbf16, #tpu.memory_space<vmem>>, %arg4: memref<240x1xf32, #tpu.memory_space<vmem>>, %arg5: memref<9x512xf32, #tpu.memory_space<vmem>>, %arg6: memref<2x64x256xf32, #tpu.memory_space<vmem>>, %arg7: memref<32x512xf32, #tpu.memory_space<vmem>>, %arg8: memref<32x512xf32, #tpu.memory_space<vmem>>, %arg9: memref<72x512xf32, #tpu.memory_space<vmem>>) attributes {dimension_semantics = [], scalar_prefetch = 0 : i64, scratch_operands = 3 : i64, tpu.core_type = #tpu.core_type<tc>} {
    %c0 = arith.constant 0 : index
    %c0_0 = arith.constant 0 : index
    %c0_1 = arith.constant 0 : index
    %0 = vector.load %arg0[%c0, %c0_0, %c0_1] : memref<2x64x256xf32, #tpu.memory_space<vmem>>, vector<1x64x256xf32>
    %1 = vector.shape_cast %0 : vector<1x64x256xf32> to vector<64x256xf32>
    %2 = arith.truncf %1 : vector<64x256xf32> to vector<64x256xbf16>
    %c1 = arith.constant 1 : index
    %c0_2 = arith.constant 0 : index
    %c0_3 = arith.constant 0 : index
    %3 = vector.load %arg0[%c1, %c0_2, %c0_3] : memref<2x64x256xf32, #tpu.memory_space<vmem>>, vector<1x64x256xf32>
    %4 = vector.shape_cast %3 : vector<1x64x256xf32> to vector<64x256xf32>
    %5 = arith.truncf %4 : vector<64x256xf32> to vector<64x256xbf16>
    %6 = tpu.concatenate %2, %5 in 1 : vector<64x256xbf16>, vector<64x256xbf16> -> vector<64x512xbf16>
    %c0_4 = arith.constant 0 : index
    %c0_5 = arith.constant 0 : index
    %7 = vector.load %arg1[%c0_4, %c0_5] : memref<32x64xbf16, #tpu.memory_space<vmem>>, vector<32x64xbf16>
    %cst = arith.constant dense<0.000000e+00> : vector<32x512xf32>
    %8 = tpu.matmul %7, %6, %cst {dimension_numbers = #tpu.dot_dimension_numbers<[1], [0], [0], [1], [0, 0, 1, 1], [], []>} : vector<32x64xbf16>, vector<64x512xbf16>, vector<32x512xf32> -> vector<32x512xf32>
    %c0_6 = arith.constant 0 : index
    %c0_7 = arith.constant 0 : index
    %9 = vector.load %arg4[%c0_6, %c0_7] : memref<240x1xf32, #tpu.memory_space<vmem>>, vector<32x1xf32>
    %c32 = arith.constant 32 : index
    %c0_8 = arith.constant 0 : index
    %10 = vector.load %arg4[%c32, %c0_8] : memref<240x1xf32, #tpu.memory_space<vmem>>, vector<32x1xf32>
    %cst_9 = arith.constant dense<0.000000e+00> : vector<32xf32>
    %11 = vector.multi_reduction <add>, %8, %cst_9 [1] : vector<32x512xf32> to vector<32xf32>
    %12 = vector.shape_cast %11 : vector<32xf32> to vector<32x1xf32>
    %cst_10 = arith.constant 5.120000e+02 : f32
    %13 = vector.broadcast %cst_10 : f32 to vector<32x1xf32>
    %14 = arith.divf %12, %13 : vector<32x1xf32>
    %15 = vector.broadcast %14 : vector<32x1xf32> to vector<32x512xf32>
    %16 = arith.subf %8, %15 : vector<32x512xf32>
    %17 = arith.mulf %16, %16 : vector<32x512xf32>
    %cst_11 = arith.constant dense<0.000000e+00> : vector<32xf32>
    %18 = vector.multi_reduction <add>, %17, %cst_11 [1] : vector<32x512xf32> to vector<32xf32>
    %19 = vector.shape_cast %18 : vector<32xf32> to vector<32x1xf32>
    %cst_12 = arith.constant 5.120000e+02 : f32
    %20 = vector.broadcast %cst_12 : f32 to vector<32x1xf32>
    %21 = arith.divf %19, %20 : vector<32x1xf32>
    %cst_13 = arith.constant 9.99999974E-6 : f32
    %22 = vector.broadcast %cst_13 : f32 to vector<32x1xf32>
    %23 = arith.addf %21, %22 : vector<32x1xf32>
    %24 = math.rsqrt %23 : vector<32x1xf32>
    %25 = arith.mulf %9, %24 : vector<32x1xf32>
    %26 = vector.broadcast %25 : vector<32x1xf32> to vector<32x512xf32>
    %27 = arith.mulf %16, %26 : vector<32x512xf32>
    %28 = vector.broadcast %10 : vector<32x1xf32> to vector<32x512xf32>
    %29 = arith.addf %27, %28 : vector<32x512xf32>
    %cst_14 = arith.constant 0.000000e+00 : f32
    %30 = vector.broadcast %cst_14 : f32 to vector<32x512xf32>
    %31 = arith.maximumf %29, %30 : vector<32x512xf32>
    %c0_15 = arith.constant 0 : index
    %c0_16 = arith.constant 0 : index
    %32 = vector.load %arg7[%c0_15, %c0_16] : memref<32x512xf32, #tpu.memory_space<vmem>>, vector<32x512xf32>
    tpu.vector_store %arg7[%c0_15, %c0_16], %31 {strides = array<i32>} : memref<32x512xf32, #tpu.memory_space<vmem>>, vector<32x512xf32>,
    %33 = vector.extract_strided_slice %31 {offsets = [0, 0], sizes = [8, 512], strides = [1, 1]} : vector<32x512xf32> to vector<8x512xf32>
    %c0_17 = arith.constant 0 : index
    %c0_18 = arith.constant 0 : index
    %34 = vector.load %arg8[%c0_17, %c0_18] : memref<32x512xf32, #tpu.memory_space<vmem>>, vector<8x512xf32>
    tpu.vector_store %arg8[%c0_17, %c0_18], %33 {strides = array<i32>} : memref<32x512xf32, #tpu.memory_space<vmem>>, vector<8x512xf32>,
    %c8 = arith.constant 8 : index
    %c0_19 = arith.constant 0 : index
    %35 = vector.load %arg7[%c8, %c0_19] : memref<32x512xf32, #tpu.memory_space<vmem>>, vector<8x512xf32>
    %c17_i32 = arith.constant 17 : i32
    %36 = tpu.dynamic_rotate %35 by %c17_i32 dim 1 : vector<8x512xf32>, i32 -> vector<8x512xf32>
    %c0_20 = arith.constant 0 : index
    %c0_21 = arith.constant 0 : index
    %37 = vector.load %arg5[%c0_20, %c0_21] : memref<9x512xf32, #tpu.memory_space<vmem>>, vector<1x512xf32>
    %38 = vector.broadcast %37 : vector<1x512xf32> to vector<8x512xf32>
    %39 = arith.mulf %36, %38 : vector<8x512xf32>
    %c0_22 = arith.constant 0 : index
    %c0_23 = arith.constant 0 : index
    %40 = vector.load %arg9[%c0_22, %c0_23] : memref<72x512xf32, #tpu.memory_space<vmem>>, vector<8x512xf32>
    tpu.vector_store %arg9[%c0_22, %c0_23], %39 {strides = array<i32>} : memref<72x512xf32, #tpu.memory_space<vmem>>, vector<8x512xf32>,
    %c16_i32 = arith.constant 16 : i32
    %41 = tpu.dynamic_rotate %35 by %c16_i32 dim 1 : vector<8x512xf32>, i32 -> vector<8x512xf32>
    %c1_24 = arith.constant 1 : index
    %c0_25 = arith.constant 0 : index
    %42 = vector.load %arg5[%c1_24, %c0_25] : memref<9x512xf32, #tpu.memory_space<vmem>>, vector<1x512xf32>
    %43 = vector.broadcast %42 : vector<1x512xf32> to vector<8x512xf32>
    %44 = arith.mulf %41, %43 : vector<8x512xf32>
    %c8_26 = arith.constant 8 : index
    %c0_27 = arith.constant 0 : index
    %45 = vector.load %arg9[%c8_26, %c0_27] : memref<72x512xf32, #tpu.memory_space<vmem>>, vector<8x512xf32>
    tpu.vector_store %arg9[%c8_26, %c0_27], %44 {strides = array<i32>} : memref<72x512xf32, #tpu.memory_space<vmem>>, vector<8x512xf32>,
    %c15_i32 = arith.constant 15 : i32
    %46 = tpu.dynamic_rotate %35 by %c15_i32 dim 1 : vector<8x512xf32>, i32 -> vector<8x512xf32>
    %c2 = arith.constant 2 : index
    %c0_28 = arith.constant 0 : index
    %47 = vector.load %arg5[%c2, %c0_28] : memref<9x512xf32, #tpu.memory_space<vmem>>, vector<1x512xf32>
    %48 = vector.broadcast %47 : vector<1x512xf32> to vector<8x512xf32>
    %49 = arith.mulf %46, %48 : vector<8x512xf32>
    %c16 = arith.constant 16 : index
    %c0_29 = arith.constant 0 : index
    %50 = vector.load %arg9[%c16, %c0_29] : memref<72x512xf32, #tpu.memory_space<vmem>>, vector<8x512xf32>
    tpu.vector_store %arg9[%c16, %c0_29], %49 {strides = array<i32>} : memref<72x512xf32, #tpu.memory_space<vmem>>, vector<8x512xf32>,
    %c1_i32 = arith.constant 1 : i32
    %51 = tpu.dynamic_rotate %35 by %c1_i32 dim 1 : vector<8x512xf32>, i32 -> vector<8x512xf32>
    %c3 = arith.constant 3 : index
    %c0_30 = arith.constant 0 : index
    %52 = vector.load %arg5[%c3, %c0_30] : memref<9x512xf32, #tpu.memory_space<vmem>>, vector<1x512xf32>
    %53 = vector.broadcast %52 : vector<1x512xf32> to vector<8x512xf32>
    %54 = arith.mulf %51, %53 : vector<8x512xf32>
    %c24 = arith.constant 24 : index
    %c0_31 = arith.constant 0 : index
    %55 = vector.load %arg9[%c24, %c0_31] : memref<72x512xf32, #tpu.memory_space<vmem>>, vector<8x512xf32>
    tpu.vector_store %arg9[%c24, %c0_31], %54 {strides = array<i32>} : memref<72x512xf32, #tpu.memory_space<vmem>>, vector<8x512xf32>,
    %c32_32 = arith.constant 32 : index
    %c0_33 = arith.constant 0 : index
    %56 = vector.load %arg9[%c32_32, %c0_33] : memref<72x512xf32, #tpu.memory_space<vmem>>, vector<8x512xf32>
    tpu.vector_store %arg9[%c32_32, %c0_33], %35 {strides = array<i32>} : memref<72x512xf32, #tpu.memory_space<vmem>>, vector<8x512xf32>,
    %c511_i32 = arith.constant 511 : i32
    %57 = tpu.dynamic_rotate %35 by %c511_i32 dim 1 : vector<8x512xf32>, i32 -> vector<8x512xf32>
    %c5 = arith.constant 5 : index
    %c0_34 = arith.constant 0 : index
    %58 = vector.load %arg5[%c5, %c0_34] : memref<9x512xf32, #tpu.memory_space<vmem>>, vector<1x512xf32>
    %59 = vector.broadcast %58 : vector<1x512xf32> to vector<8x512xf32>
    %60 = arith.mulf %57, %59 : vector<8x512xf32>
    %c40 = arith.constant 40 : index
    %c0_35 = arith.constant 0 : index
    %61 = vector.load %arg9[%c40, %c0_35] : memref<72x512xf32, #tpu.memory_space<vmem>>, vector<8x512xf32>
    tpu.vector_store %arg9[%c40, %c0_35], %60 {strides = array<i32>} : memref<72x512xf32, #tpu.memory_space<vmem>>, vector<8x512xf32>,
    %c497_i32 = arith.constant 497 : i32
    %62 = tpu.dynamic_rotate %35 by %c497_i32 dim 1 : vector<8x512xf32>, i32 -> vector<8x512xf32>
    %c6 = arith.constant 6 : index
    %c0_36 = arith.constant 0 : index
    %63 = vector.load %arg5[%c6, %c0_36] : memref<9x512xf32, #tpu.memory_space<vmem>>, vector<1x512xf32>
    %64 = vector.broadcast %63 : vector<1x512xf32> to vector<8x512xf32>
    %65 = arith.mulf %62, %64 : vector<8x512xf32>
    %c48 = arith.constant 48 : index
    %c0_37 = arith.constant 0 : index
    %66 = vector.load %arg9[%c48, %c0_37] : memref<72x512xf32, #tpu.memory_space<vmem>>, vector<8x512xf32>
    tpu.vector_store %arg9[%c48, %c0_37], %65 {strides = array<i32>} : memref<72x512xf32, #tpu.memory_space<vmem>>, vector<8x512xf32>,
    %c496_i32 = arith.constant 496 : i32
    %67 = tpu.dynamic_rotate %35 by %c496_i32 dim 1 : vector<8x512xf32>, i32 -> vector<8x512xf32>
    %c7 = arith.constant 7 : index
    %c0_38 = arith.constant 0 : index
    %68 = vector.load %arg5[%c7, %c0_38] : memref<9x512xf32, #tpu.memory_space<vmem>>, vector<1x512xf32>
    %69 = vector.broadcast %68 : vector<1x512xf32> to vector<8x512xf32>
    %70 = arith.mulf %67, %69 : vector<8x512xf32>
    %c56 = arith.constant 56 : index
    %c0_39 = arith.constant 0 : index
    %71 = vector.load %arg9[%c56, %c0_39] : memref<72x512xf32, #tpu.memory_space<vmem>>, vector<8x512xf32>
    tpu.vector_store %arg9[%c56, %c0_39], %70 {strides = array<i32>} : memref<72x512xf32, #tpu.memory_space<vmem>>, vector<8x512xf32>,
    %c495_i32 = arith.constant 495 : i32
    %72 = tpu.dynamic_rotate %35 by %c495_i32 dim 1 : vector<8x512xf32>, i32 -> vector<8x512xf32>
    %c8_40 = arith.constant 8 : index
    %c0_41 = arith.constant 0 : index
    %73 = vector.load %arg5[%c8_40, %c0_41] : memref<9x512xf32, #tpu.memory_space<vmem>>, vector<1x512xf32>
    %74 = vector.broadcast %73 : vector<1x512xf32> to vector<8x512xf32>
    %75 = arith.mulf %72, %74 : vector<8x512xf32>
    %c64 = arith.constant 64 : index
    %c0_42 = arith.constant 0 : index
    %76 = vector.load %arg9[%c64, %c0_42] : memref<72x512xf32, #tpu.memory_space<vmem>>, vector<8x512xf32>
    tpu.vector_store %arg9[%c64, %c0_42], %75 {strides = array<i32>} : memref<72x512xf32, #tpu.memory_space<vmem>>, vector<8x512xf32>,
    %c0_43 = arith.constant 0 : index
    %c0_44 = arith.constant 0 : index
    %c0_45 = arith.constant 0 : index
    %77 = vector.load %arg2[%c0_43, %c0_44, %c0_45] : memref<3x8x72xbf16, #tpu.memory_space<vmem>>, vector<1x8x72xbf16>
    %78 = vector.shape_cast %77 : vector<1x8x72xbf16> to vector<8x72xbf16>
    %c0_46 = arith.constant 0 : index
    %c0_47 = arith.constant 0 : index
    %79 = vector.load %arg9[%c0_46, %c0_47] : memref<72x512xf32, #tpu.memory_space<vmem>>, vector<72x512xf32>
    %80 = arith.truncf %79 : vector<72x512xf32> to vector<72x512xbf16>
    %cst_48 = arith.constant dense<0.000000e+00> : vector<8x512xf32>
    %81 = tpu.matmul %78, %80, %cst_48 {dimension_numbers = #tpu.dot_dimension_numbers<[1], [0], [0], [1], [0, 0, 1, 1], [], []>} : vector<8x72xbf16>, vector<72x512xbf16>, vector<8x512xf32> -> vector<8x512xf32>
    %c64_49 = arith.constant 64 : index
    %c0_50 = arith.constant 0 : index
    %82 = vector.load %arg4[%c64_49, %c0_50] : memref<240x1xf32, #tpu.memory_space<vmem>>, vector<8x1xf32>
    %c88 = arith.constant 88 : index
    %c0_51 = arith.constant 0 : index
    %83 = vector.load %arg4[%c88, %c0_51] : memref<240x1xf32, #tpu.memory_space<vmem>>, vector<8x1xf32>
    %cst_52 = arith.constant dense<0.000000e+00> : vector<8xf32>
    %84 = vector.multi_reduction <add>, %81, %cst_52 [1] : vector<8x512xf32> to vector<8xf32>
    %85 = vector.shape_cast %84 : vector<8xf32> to vector<8x1xf32>
    %cst_53 = arith.constant 5.120000e+02 : f32
    %86 = vector.broadcast %cst_53 : f32 to vector<8x1xf32>
    %87 = arith.divf %85, %86 : vector<8x1xf32>
    %88 = vector.broadcast %87 : vector<8x1xf32> to vector<8x512xf32>
    %89 = arith.subf %81, %88 : vector<8x512xf32>
    %90 = arith.mulf %89, %89 : vector<8x512xf32>
    %cst_54 = arith.constant dense<0.000000e+00> : vector<8xf32>
    %91 = vector.multi_reduction <add>, %90, %cst_54 [1] : vector<8x512xf32> to vector<8xf32>
    %92 = vector.shape_cast %91 : vector<8xf32> to vector<8x1xf32>
    %cst_55 = arith.constant 5.120000e+02 : f32
    %93 = vector.broadcast %cst_55 : f32 to vector<8x1xf32>
    %94 = arith.divf %92, %93 : vector<8x1xf32>
    %cst_56 = arith.constant 9.99999974E-6 : f32
    %95 = vector.broadcast %cst_56 : f32 to vector<8x1xf32>
    %96 = arith.addf %94, %95 : vector<8x1xf32>
    %97 = math.rsqrt %96 : vector<8x1xf32>
    %98 = arith.mulf %82, %97 : vector<8x1xf32>
    %99 = vector.broadcast %98 : vector<8x1xf32> to vector<8x512xf32>
    %100 = arith.mulf %89, %99 : vector<8x512xf32>
    %101 = vector.broadcast %83 : vector<8x1xf32> to vector<8x512xf32>
    %102 = arith.addf %100, %101 : vector<8x512xf32>
    %cst_57 = arith.constant 0.000000e+00 : f32
    %103 = vector.broadcast %cst_57 : f32 to vector<8x512xf32>
    %104 = arith.maximumf %102, %103 : vector<8x512xf32>
    %c8_58 = arith.constant 8 : index
    %c0_59 = arith.constant 0 : index
    %105 = vector.load %arg8[%c8_58, %c0_59] : memref<32x512xf32, #tpu.memory_space<vmem>>, vector<8x512xf32>
    tpu.vector_store %arg8[%c8_58, %c0_59], %104 {strides = array<i32>} : memref<32x512xf32, #tpu.memory_space<vmem>>, vector<8x512xf32>,
    %c16_60 = arith.constant 16 : index
    %c0_61 = arith.constant 0 : index
    %106 = vector.load %arg7[%c16_60, %c0_61] : memref<32x512xf32, #tpu.memory_space<vmem>>, vector<8x512xf32>
    %107 = arith.addf %106, %104 : vector<8x512xf32>
    %c17_i32_62 = arith.constant 17 : i32
    %108 = tpu.dynamic_rotate %107 by %c17_i32_62 dim 1 : vector<8x512xf32>, i32 -> vector<8x512xf32>
    %c0_63 = arith.constant 0 : index
    %c0_64 = arith.constant 0 : index
    %109 = vector.load %arg5[%c0_63, %c0_64] : memref<9x512xf32, #tpu.memory_space<vmem>>, vector<1x512xf32>
    %110 = vector.broadcast %109 : vector<1x512xf32> to vector<8x512xf32>
    %111 = arith.mulf %108, %110 : vector<8x512xf32>
    %c0_65 = arith.constant 0 : index
    %c0_66 = arith.constant 0 : index
    %112 = vector.load %arg9[%c0_65, %c0_66] : memref<72x512xf32, #tpu.memory_space<vmem>>, vector<8x512xf32>
    tpu.vector_store %arg9[%c0_65, %c0_66], %111 {strides = array<i32>} : memref<72x512xf32, #tpu.memory_space<vmem>>, vector<8x512xf32>,
    %c16_i32_67 = arith.constant 16 : i32
    %113 = tpu.dynamic_rotate %107 by %c16_i32_67 dim 1 : vector<8x512xf32>, i32 -> vector<8x512xf32>
    %c1_68 = arith.constant 1 : index
    %c0_69 = arith.constant 0 : index
    %114 = vector.load %arg5[%c1_68, %c0_69] : memref<9x512xf32, #tpu.memory_space<vmem>>, vector<1x512xf32>
    %115 = vector.broadcast %114 : vector<1x512xf32> to vector<8x512xf32>
    %116 = arith.mulf %113, %115 : vector<8x512xf32>
    %c8_70 = arith.constant 8 : index
    %c0_71 = arith.constant 0 : index
    %117 = vector.load %arg9[%c8_70, %c0_71] : memref<72x512xf32, #tpu.memory_space<vmem>>, vector<8x512xf32>
    tpu.vector_store %arg9[%c8_70, %c0_71], %116 {strides = array<i32>} : memref<72x512xf32, #tpu.memory_space<vmem>>, vector<8x512xf32>,
    %c15_i32_72 = arith.constant 15 : i32
    %118 = tpu.dynamic_rotate %107 by %c15_i32_72 dim 1 : vector<8x512xf32>, i32 -> vector<8x512xf32>
    %c2_73 = arith.constant 2 : index
    %c0_74 = arith.constant 0 : index
    %119 = vector.load %arg5[%c2_73, %c0_74] : memref<9x512xf32, #tpu.memory_space<vmem>>, vector<1x512xf32>
    %120 = vector.broadcast %119 : vector<1x512xf32> to vector<8x512xf32>
    %121 = arith.mulf %118, %120 : vector<8x512xf32>
    %c16_75 = arith.constant 16 : index
    %c0_76 = arith.constant 0 : index
    %122 = vector.load %arg9[%c16_75, %c0_76] : memref<72x512xf32, #tpu.memory_space<vmem>>, vector<8x512xf32>
    tpu.vector_store %arg9[%c16_75, %c0_76], %121 {strides = array<i32>} : memref<72x512xf32, #tpu.memory_space<vmem>>, vector<8x512xf32>,
    %c1_i32_77 = arith.constant 1 : i32
    %123 = tpu.dynamic_rotate %107 by %c1_i32_77 dim 1 : vector<8x512xf32>, i32 -> vector<8x512xf32>
    %c3_78 = arith.constant 3 : index
    %c0_79 = arith.constant 0 : index
    %124 = vector.load %arg5[%c3_78, %c0_79] : memref<9x512xf32, #tpu.memory_space<vmem>>, vector<1x512xf32>
    %125 = vector.broadcast %124 : vector<1x512xf32> to vector<8x512xf32>
    %126 = arith.mulf %123, %125 : vector<8x512xf32>
    %c24_80 = arith.constant 24 : index
    %c0_81 = arith.constant 0 : index
    %127 = vector.load %arg9[%c24_80, %c0_81] : memref<72x512xf32, #tpu.memory_space<vmem>>, vector<8x512xf32>
    tpu.vector_store %arg9[%c24_80, %c0_81], %126 {strides = array<i32>} : memref<72x512xf32, #tpu.memory_space<vmem>>, vector<8x512xf32>,
    %c32_82 = arith.constant 32 : index
    %c0_83 = arith.constant 0 : index
    %128 = vector.load %arg9[%c32_82, %c0_83] : memref<72x512xf32, #tpu.memory_space<vmem>>, vector<8x512xf32>
    tpu.vector_store %arg9[%c32_82, %c0_83], %107 {strides = array<i32>} : memref<72x512xf32, #tpu.memory_space<vmem>>, vector<8x512xf32>,
    %c511_i32_84 = arith.constant 511 : i32
    %129 = tpu.dynamic_rotate %107 by %c511_i32_84 dim 1 : vector<8x512xf32>, i32 -> vector<8x512xf32>
    %c5_85 = arith.constant 5 : index
    %c0_86 = arith.constant 0 : index
    %130 = vector.load %arg5[%c5_85, %c0_86] : memref<9x512xf32, #tpu.memory_space<vmem>>, vector<1x512xf32>
    %131 = vector.broadcast %130 : vector<1x512xf32> to vector<8x512xf32>
    %132 = arith.mulf %129, %131 : vector<8x512xf32>
    %c40_87 = arith.constant 40 : index
    %c0_88 = arith.constant 0 : index
    %133 = vector.load %arg9[%c40_87, %c0_88] : memref<72x512xf32, #tpu.memory_space<vmem>>, vector<8x512xf32>
    tpu.vector_store %arg9[%c40_87, %c0_88], %132 {strides = array<i32>} : memref<72x512xf32, #tpu.memory_space<vmem>>, vector<8x512xf32>,
    %c497_i32_89 = arith.constant 497 : i32
    %134 = tpu.dynamic_rotate %107 by %c497_i32_89 dim 1 : vector<8x512xf32>, i32 -> vector<8x512xf32>
    %c6_90 = arith.constant 6 : index
    %c0_91 = arith.constant 0 : index
    %135 = vector.load %arg5[%c6_90, %c0_91] : memref<9x512xf32, #tpu.memory_space<vmem>>, vector<1x512xf32>
    %136 = vector.broadcast %135 : vector<1x512xf32> to vector<8x512xf32>
    %137 = arith.mulf %134, %136 : vector<8x512xf32>
    %c48_92 = arith.constant 48 : index
    %c0_93 = arith.constant 0 : index
    %138 = vector.load %arg9[%c48_92, %c0_93] : memref<72x512xf32, #tpu.memory_space<vmem>>, vector<8x512xf32>
    tpu.vector_store %arg9[%c48_92, %c0_93], %137 {strides = array<i32>} : memref<72x512xf32, #tpu.memory_space<vmem>>, vector<8x512xf32>,
    %c496_i32_94 = arith.constant 496 : i32
    %139 = tpu.dynamic_rotate %107 by %c496_i32_94 dim 1 : vector<8x512xf32>, i32 -> vector<8x512xf32>
    %c7_95 = arith.constant 7 : index
    %c0_96 = arith.constant 0 : index
    %140 = vector.load %arg5[%c7_95, %c0_96] : memref<9x512xf32, #tpu.memory_space<vmem>>, vector<1x512xf32>
    %141 = vector.broadcast %140 : vector<1x512xf32> to vector<8x512xf32>
    %142 = arith.mulf %139, %141 : vector<8x512xf32>
    %c56_97 = arith.constant 56 : index
    %c0_98 = arith.constant 0 : index
    %143 = vector.load %arg9[%c56_97, %c0_98] : memref<72x512xf32, #tpu.memory_space<vmem>>, vector<8x512xf32>
    tpu.vector_store %arg9[%c56_97, %c0_98], %142 {strides = array<i32>} : memref<72x512xf32, #tpu.memory_space<vmem>>, vector<8x512xf32>,
    %c495_i32_99 = arith.constant 495 : i32
    %144 = tpu.dynamic_rotate %107 by %c495_i32_99 dim 1 : vector<8x512xf32>, i32 -> vector<8x512xf32>
    %c8_100 = arith.constant 8 : index
    %c0_101 = arith.constant 0 : index
    %145 = vector.load %arg5[%c8_100, %c0_101] : memref<9x512xf32, #tpu.memory_space<vmem>>, vector<1x512xf32>
    %146 = vector.broadcast %145 : vector<1x512xf32> to vector<8x512xf32>
    %147 = arith.mulf %144, %146 : vector<8x512xf32>
    %c64_102 = arith.constant 64 : index
    %c0_103 = arith.constant 0 : index
    %148 = vector.load %arg9[%c64_102, %c0_103] : memref<72x512xf32, #tpu.memory_space<vmem>>, vector<8x512xf32>
    tpu.vector_store %arg9[%c64_102, %c0_103], %147 {strides = array<i32>} : memref<72x512xf32, #tpu.memory_space<vmem>>, vector<8x512xf32>,
    %c1_104 = arith.constant 1 : index
    %c0_105 = arith.constant 0 : index
    %c0_106 = arith.constant 0 : index
    %149 = vector.load %arg2[%c1_104, %c0_105, %c0_106] : memref<3x8x72xbf16, #tpu.memory_space<vmem>>, vector<1x8x72xbf16>
    %150 = vector.shape_cast %149 : vector<1x8x72xbf16> to vector<8x72xbf16>
    %c0_107 = arith.constant 0 : index
    %c0_108 = arith.constant 0 : index
    %151 = vector.load %arg9[%c0_107, %c0_108] : memref<72x512xf32, #tpu.memory_space<vmem>>, vector<72x512xf32>
    %152 = arith.truncf %151 : vector<72x512xf32> to vector<72x512xbf16>
    %cst_109 = arith.constant dense<0.000000e+00> : vector<8x512xf32>
    %153 = tpu.matmul %150, %152, %cst_109 {dimension_numbers = #tpu.dot_dimension_numbers<[1], [0], [0], [1], [0, 0, 1, 1], [], []>} : vector<8x72xbf16>, vector<72x512xbf16>, vector<8x512xf32> -> vector<8x512xf32>
    %c72 = arith.constant 72 : index
    %c0_110 = arith.constant 0 : index
    %154 = vector.load %arg4[%c72, %c0_110] : memref<240x1xf32, #tpu.memory_space<vmem>>, vector<8x1xf32>
    %c96 = arith.constant 96 : index
    %c0_111 = arith.constant 0 : index
    %155 = vector.load %arg4[%c96, %c0_111] : memref<240x1xf32, #tpu.memory_space<vmem>>, vector<8x1xf32>
    %cst_112 = arith.constant dense<0.000000e+00> : vector<8xf32>
    %156 = vector.multi_reduction <add>, %153, %cst_112 [1] : vector<8x512xf32> to vector<8xf32>
    %157 = vector.shape_cast %156 : vector<8xf32> to vector<8x1xf32>
    %cst_113 = arith.constant 5.120000e+02 : f32
    %158 = vector.broadcast %cst_113 : f32 to vector<8x1xf32>
    %159 = arith.divf %157, %158 : vector<8x1xf32>
    %160 = vector.broadcast %159 : vector<8x1xf32> to vector<8x512xf32>
    %161 = arith.subf %153, %160 : vector<8x512xf32>
    %162 = arith.mulf %161, %161 : vector<8x512xf32>
    %cst_114 = arith.constant dense<0.000000e+00> : vector<8xf32>
    %163 = vector.multi_reduction <add>, %162, %cst_114 [1] : vector<8x512xf32> to vector<8xf32>
    %164 = vector.shape_cast %163 : vector<8xf32> to vector<8x1xf32>
    %cst_115 = arith.constant 5.120000e+02 : f32
    %165 = vector.broadcast %cst_115 : f32 to vector<8x1xf32>
    %166 = arith.divf %164, %165 : vector<8x1xf32>
    %cst_116 = arith.constant 9.99999974E-6 : f32
    %167 = vector.broadcast %cst_116 : f32 to vector<8x1xf32>
    %168 = arith.addf %166, %167 : vector<8x1xf32>
    %169 = math.rsqrt %168 : vector<8x1xf32>
    %170 = arith.mulf %154, %169 : vector<8x1xf32>
    %171 = vector.broadcast %170 : vector<8x1xf32> to vector<8x512xf32>
    %172 = arith.mulf %161, %171 : vector<8x512xf32>
    %173 = vector.broadcast %155 : vector<8x1xf32> to vector<8x512xf32>
    %174 = arith.addf %172, %173 : vector<8x512xf32>
    %cst_117 = arith.constant 0.000000e+00 : f32
    %175 = vector.broadcast %cst_117 : f32 to vector<8x512xf32>
    %176 = arith.maximumf %174, %175 : vector<8x512xf32>
    %c16_118 = arith.constant 16 : index
    %c0_119 = arith.constant 0 : index
    %177 = vector.load %arg8[%c16_118, %c0_119] : memref<32x512xf32, #tpu.memory_space<vmem>>, vector<8x512xf32>
    tpu.vector_store %arg8[%c16_118, %c0_119], %176 {strides = array<i32>} : memref<32x512xf32, #tpu.memory_space<vmem>>, vector<8x512xf32>,
    %c24_120 = arith.constant 24 : index
    %c0_121 = arith.constant 0 : index
    %178 = vector.load %arg7[%c24_120, %c0_121] : memref<32x512xf32, #tpu.memory_space<vmem>>, vector<8x512xf32>
    %179 = arith.addf %178, %176 : vector<8x512xf32>
    %c17_i32_122 = arith.constant 17 : i32
    %180 = tpu.dynamic_rotate %179 by %c17_i32_122 dim 1 : vector<8x512xf32>, i32 -> vector<8x512xf32>
    %c0_123 = arith.constant 0 : index
    %c0_124 = arith.constant 0 : index
    %181 = vector.load %arg5[%c0_123, %c0_124] : memref<9x512xf32, #tpu.memory_space<vmem>>, vector<1x512xf32>
    %182 = vector.broadcast %181 : vector<1x512xf32> to vector<8x512xf32>
    %183 = arith.mulf %180, %182 : vector<8x512xf32>
    %c0_125 = arith.constant 0 : index
    %c0_126 = arith.constant 0 : index
    %184 = vector.load %arg9[%c0_125, %c0_126] : memref<72x512xf32, #tpu.memory_space<vmem>>, vector<8x512xf32>
    tpu.vector_store %arg9[%c0_125, %c0_126], %183 {strides = array<i32>} : memref<72x512xf32, #tpu.memory_space<vmem>>, vector<8x512xf32>,
    %c16_i32_127 = arith.constant 16 : i32
    %185 = tpu.dynamic_rotate %179 by %c16_i32_127 dim 1 : vector<8x512xf32>, i32 -> vector<8x512xf32>
    %c1_128 = arith.constant 1 : index
    %c0_129 = arith.constant 0 : index
    %186 = vector.load %arg5[%c1_128, %c0_129] : memref<9x512xf32, #tpu.memory_space<vmem>>, vector<1x512xf32>
    %187 = vector.broadcast %186 : vector<1x512xf32> to vector<8x512xf32>
    %188 = arith.mulf %185, %187 : vector<8x512xf32>
    %c8_130 = arith.constant 8 : index
    %c0_131 = arith.constant 0 : index
    %189 = vector.load %arg9[%c8_130, %c0_131] : memref<72x512xf32, #tpu.memory_space<vmem>>, vector<8x512xf32>
    tpu.vector_store %arg9[%c8_130, %c0_131], %188 {strides = array<i32>} : memref<72x512xf32, #tpu.memory_space<vmem>>, vector<8x512xf32>,
    %c15_i32_132 = arith.constant 15 : i32
    %190 = tpu.dynamic_rotate %179 by %c15_i32_132 dim 1 : vector<8x512xf32>, i32 -> vector<8x512xf32>
    %c2_133 = arith.constant 2 : index
    %c0_134 = arith.constant 0 : index
    %191 = vector.load %arg5[%c2_133, %c0_134] : memref<9x512xf32, #tpu.memory_space<vmem>>, vector<1x512xf32>
    %192 = vector.broadcast %191 : vector<1x512xf32> to vector<8x512xf32>
    %193 = arith.mulf %190, %192 : vector<8x512xf32>
    %c16_135 = arith.constant 16 : index
    %c0_136 = arith.constant 0 : index
    %194 = vector.load %arg9[%c16_135, %c0_136] : memref<72x512xf32, #tpu.memory_space<vmem>>, vector<8x512xf32>
    tpu.vector_store %arg9[%c16_135, %c0_136], %193 {strides = array<i32>} : memref<72x512xf32, #tpu.memory_space<vmem>>, vector<8x512xf32>,
    %c1_i32_137 = arith.constant 1 : i32
    %195 = tpu.dynamic_rotate %179 by %c1_i32_137 dim 1 : vector<8x512xf32>, i32 -> vector<8x512xf32>
    %c3_138 = arith.constant 3 : index
    %c0_139 = arith.constant 0 : index
    %196 = vector.load %arg5[%c3_138, %c0_139] : memref<9x512xf32, #tpu.memory_space<vmem>>, vector<1x512xf32>
    %197 = vector.broadcast %196 : vector<1x512xf32> to vector<8x512xf32>
    %198 = arith.mulf %195, %197 : vector<8x512xf32>
    %c24_140 = arith.constant 24 : index
    %c0_141 = arith.constant 0 : index
    %199 = vector.load %arg9[%c24_140, %c0_141] : memref<72x512xf32, #tpu.memory_space<vmem>>, vector<8x512xf32>
    tpu.vector_store %arg9[%c24_140, %c0_141], %198 {strides = array<i32>} : memref<72x512xf32, #tpu.memory_space<vmem>>, vector<8x512xf32>,
    %c32_142 = arith.constant 32 : index
    %c0_143 = arith.constant 0 : index
    %200 = vector.load %arg9[%c32_142, %c0_143] : memref<72x512xf32, #tpu.memory_space<vmem>>, vector<8x512xf32>
    tpu.vector_store %arg9[%c32_142, %c0_143], %179 {strides = array<i32>} : memref<72x512xf32, #tpu.memory_space<vmem>>, vector<8x512xf32>,
    %c511_i32_144 = arith.constant 511 : i32
    %201 = tpu.dynamic_rotate %179 by %c511_i32_144 dim 1 : vector<8x512xf32>, i32 -> vector<8x512xf32>
    %c5_145 = arith.constant 5 : index
    %c0_146 = arith.constant 0 : index
    %202 = vector.load %arg5[%c5_145, %c0_146] : memref<9x512xf32, #tpu.memory_space<vmem>>, vector<1x512xf32>
    %203 = vector.broadcast %202 : vector<1x512xf32> to vector<8x512xf32>
    %204 = arith.mulf %201, %203 : vector<8x512xf32>
    %c40_147 = arith.constant 40 : index
    %c0_148 = arith.constant 0 : index
    %205 = vector.load %arg9[%c40_147, %c0_148] : memref<72x512xf32, #tpu.memory_space<vmem>>, vector<8x512xf32>
    tpu.vector_store %arg9[%c40_147, %c0_148], %204 {strides = array<i32>} : memref<72x512xf32, #tpu.memory_space<vmem>>, vector<8x512xf32>,
    %c497_i32_149 = arith.constant 497 : i32
    %206 = tpu.dynamic_rotate %179 by %c497_i32_149 dim 1 : vector<8x512xf32>, i32 -> vector<8x512xf32>
    %c6_150 = arith.constant 6 : index
    %c0_151 = arith.constant 0 : index
    %207 = vector.load %arg5[%c6_150, %c0_151] : memref<9x512xf32, #tpu.memory_space<vmem>>, vector<1x512xf32>
    %208 = vector.broadcast %207 : vector<1x512xf32> to vector<8x512xf32>
    %209 = arith.mulf %206, %208 : vector<8x512xf32>
    %c48_152 = arith.constant 48 : index
    %c0_153 = arith.constant 0 : index
    %210 = vector.load %arg9[%c48_152, %c0_153] : memref<72x512xf32, #tpu.memory_space<vmem>>, vector<8x512xf32>
    tpu.vector_store %arg9[%c48_152, %c0_153], %209 {strides = array<i32>} : memref<72x512xf32, #tpu.memory_space<vmem>>, vector<8x512xf32>,
    %c496_i32_154 = arith.constant 496 : i32
    %211 = tpu.dynamic_rotate %179 by %c496_i32_154 dim 1 : vector<8x512xf32>, i32 -> vector<8x512xf32>
    %c7_155 = arith.constant 7 : index
    %c0_156 = arith.constant 0 : index
    %212 = vector.load %arg5[%c7_155, %c0_156] : memref<9x512xf32, #tpu.memory_space<vmem>>, vector<1x512xf32>
    %213 = vector.broadcast %212 : vector<1x512xf32> to vector<8x512xf32>
    %214 = arith.mulf %211, %213 : vector<8x512xf32>
    %c56_157 = arith.constant 56 : index
    %c0_158 = arith.constant 0 : index
    %215 = vector.load %arg9[%c56_157, %c0_158] : memref<72x512xf32, #tpu.memory_space<vmem>>, vector<8x512xf32>
    tpu.vector_store %arg9[%c56_157, %c0_158], %214 {strides = array<i32>} : memref<72x512xf32, #tpu.memory_space<vmem>>, vector<8x512xf32>,
    %c495_i32_159 = arith.constant 495 : i32
    %216 = tpu.dynamic_rotate %179 by %c495_i32_159 dim 1 : vector<8x512xf32>, i32 -> vector<8x512xf32>
    %c8_160 = arith.constant 8 : index
    %c0_161 = arith.constant 0 : index
    %217 = vector.load %arg5[%c8_160, %c0_161] : memref<9x512xf32, #tpu.memory_space<vmem>>, vector<1x512xf32>
    %218 = vector.broadcast %217 : vector<1x512xf32> to vector<8x512xf32>
    %219 = arith.mulf %216, %218 : vector<8x512xf32>
    %c64_162 = arith.constant 64 : index
    %c0_163 = arith.constant 0 : index
    %220 = vector.load %arg9[%c64_162, %c0_163] : memref<72x512xf32, #tpu.memory_space<vmem>>, vector<8x512xf32>
    tpu.vector_store %arg9[%c64_162, %c0_163], %219 {strides = array<i32>} : memref<72x512xf32, #tpu.memory_space<vmem>>, vector<8x512xf32>,
    %c2_164 = arith.constant 2 : index
    %c0_165 = arith.constant 0 : index
    %c0_166 = arith.constant 0 : index
    %221 = vector.load %arg2[%c2_164, %c0_165, %c0_166] : memref<3x8x72xbf16, #tpu.memory_space<vmem>>, vector<1x8x72xbf16>
    %222 = vector.shape_cast %221 : vector<1x8x72xbf16> to vector<8x72xbf16>
    %c0_167 = arith.constant 0 : index
    %c0_168 = arith.constant 0 : index
    %223 = vector.load %arg9[%c0_167, %c0_168] : memref<72x512xf32, #tpu.memory_space<vmem>>, vector<72x512xf32>
    %224 = arith.truncf %223 : vector<72x512xf32> to vector<72x512xbf16>
    %cst_169 = arith.constant dense<0.000000e+00> : vector<8x512xf32>
    %225 = tpu.matmul %222, %224, %cst_169 {dimension_numbers = #tpu.dot_dimension_numbers<[1], [0], [0], [1], [0, 0, 1, 1], [], []>} : vector<8x72xbf16>, vector<72x512xbf16>, vector<8x512xf32> -> vector<8x512xf32>
    %c80 = arith.constant 80 : index
    %c0_170 = arith.constant 0 : index
    %226 = vector.load %arg4[%c80, %c0_170] : memref<240x1xf32, #tpu.memory_space<vmem>>, vector<8x1xf32>
    %c104 = arith.constant 104 : index
    %c0_171 = arith.constant 0 : index
    %227 = vector.load %arg4[%c104, %c0_171] : memref<240x1xf32, #tpu.memory_space<vmem>>, vector<8x1xf32>
    %cst_172 = arith.constant dense<0.000000e+00> : vector<8xf32>
    %228 = vector.multi_reduction <add>, %225, %cst_172 [1] : vector<8x512xf32> to vector<8xf32>
    %229 = vector.shape_cast %228 : vector<8xf32> to vector<8x1xf32>
    %cst_173 = arith.constant 5.120000e+02 : f32
    %230 = vector.broadcast %cst_173 : f32 to vector<8x1xf32>
    %231 = arith.divf %229, %230 : vector<8x1xf32>
    %232 = vector.broadcast %231 : vector<8x1xf32> to vector<8x512xf32>
    %233 = arith.subf %225, %232 : vector<8x512xf32>
    %234 = arith.mulf %233, %233 : vector<8x512xf32>
    %cst_174 = arith.constant dense<0.000000e+00> : vector<8xf32>
    %235 = vector.multi_reduction <add>, %234, %cst_174 [1] : vector<8x512xf32> to vector<8xf32>
    %236 = vector.shape_cast %235 : vector<8xf32> to vector<8x1xf32>
    %cst_175 = arith.constant 5.120000e+02 : f32
    %237 = vector.broadcast %cst_175 : f32 to vector<8x1xf32>
    %238 = arith.divf %236, %237 : vector<8x1xf32>
    %cst_176 = arith.constant 9.99999974E-6 : f32
    %239 = vector.broadcast %cst_176 : f32 to vector<8x1xf32>
    %240 = arith.addf %238, %239 : vector<8x1xf32>
    %241 = math.rsqrt %240 : vector<8x1xf32>
    %242 = arith.mulf %226, %241 : vector<8x1xf32>
    %243 = vector.broadcast %242 : vector<8x1xf32> to vector<8x512xf32>
    %244 = arith.mulf %233, %243 : vector<8x512xf32>
    %245 = vector.broadcast %227 : vector<8x1xf32> to vector<8x512xf32>
    %246 = arith.addf %244, %245 : vector<8x512xf32>
    %cst_177 = arith.constant 0.000000e+00 : f32
    %247 = vector.broadcast %cst_177 : f32 to vector<8x512xf32>
    %248 = arith.maximumf %246, %247 : vector<8x512xf32>
    %c24_178 = arith.constant 24 : index
    %c0_179 = arith.constant 0 : index
    %249 = vector.load %arg8[%c24_178, %c0_179] : memref<32x512xf32, #tpu.memory_space<vmem>>, vector<8x512xf32>
    tpu.vector_store %arg8[%c24_178, %c0_179], %248 {strides = array<i32>} : memref<32x512xf32, #tpu.memory_space<vmem>>, vector<8x512xf32>,
    %c0_180 = arith.constant 0 : index
    %c0_181 = arith.constant 0 : index
    %250 = vector.load %arg3[%c0_180, %c0_181] : memref<64x32xbf16, #tpu.memory_space<vmem>>, vector<64x32xbf16>
    %c0_182 = arith.constant 0 : index
    %c0_183 = arith.constant 0 : index
    %251 = vector.load %arg8[%c0_182, %c0_183] : memref<32x512xf32, #tpu.memory_space<vmem>>, vector<32x512xf32>
    %252 = arith.truncf %251 : vector<32x512xf32> to vector<32x512xbf16>
    %cst_184 = arith.constant dense<0.000000e+00> : vector<64x512xf32>
    %253 = tpu.matmul %250, %252, %cst_184 {dimension_numbers = #tpu.dot_dimension_numbers<[1], [0], [0], [1], [0, 0, 1, 1], [], []>} : vector<64x32xbf16>, vector<32x512xbf16>, vector<64x512xf32> -> vector<64x512xf32>
    %c112 = arith.constant 112 : index
    %c0_185 = arith.constant 0 : index
    %254 = vector.load %arg4[%c112, %c0_185] : memref<240x1xf32, #tpu.memory_space<vmem>>, vector<64x1xf32>
    %c176 = arith.constant 176 : index
    %c0_186 = arith.constant 0 : index
    %255 = vector.load %arg4[%c176, %c0_186] : memref<240x1xf32, #tpu.memory_space<vmem>>, vector<64x1xf32>
    %cst_187 = arith.constant dense<0.000000e+00> : vector<64xf32>
    %256 = vector.multi_reduction <add>, %253, %cst_187 [1] : vector<64x512xf32> to vector<64xf32>
    %257 = vector.shape_cast %256 : vector<64xf32> to vector<64x1xf32>
    %cst_188 = arith.constant 5.120000e+02 : f32
    %258 = vector.broadcast %cst_188 : f32 to vector<64x1xf32>
    %259 = arith.divf %257, %258 : vector<64x1xf32>
    %260 = vector.broadcast %259 : vector<64x1xf32> to vector<64x512xf32>
    %261 = arith.subf %253, %260 : vector<64x512xf32>
    %262 = arith.mulf %261, %261 : vector<64x512xf32>
    %cst_189 = arith.constant dense<0.000000e+00> : vector<64xf32>
    %263 = vector.multi_reduction <add>, %262, %cst_189 [1] : vector<64x512xf32> to vector<64xf32>
    %264 = vector.shape_cast %263 : vector<64xf32> to vector<64x1xf32>
    %cst_190 = arith.constant 5.120000e+02 : f32
    %265 = vector.broadcast %cst_190 : f32 to vector<64x1xf32>
    %266 = arith.divf %264, %265 : vector<64x1xf32>
    %cst_191 = arith.constant 9.99999974E-6 : f32
    %267 = vector.broadcast %cst_191 : f32 to vector<64x1xf32>
    %268 = arith.addf %266, %267 : vector<64x1xf32>
    %269 = math.rsqrt %268 : vector<64x1xf32>
    %270 = arith.mulf %254, %269 : vector<64x1xf32>
    %271 = vector.broadcast %270 : vector<64x1xf32> to vector<64x512xf32>
    %272 = arith.mulf %261, %271 : vector<64x512xf32>
    %273 = vector.broadcast %255 : vector<64x1xf32> to vector<64x512xf32>
    %274 = arith.addf %272, %273 : vector<64x512xf32>
    %275 = vector.extract_strided_slice %274 {offsets = [0, 0], sizes = [64, 256], strides = [1, 1]} : vector<64x512xf32> to vector<64x256xf32>
    %c0_192 = arith.constant 0 : index
    %c0_193 = arith.constant 0 : index
    %c0_194 = arith.constant 0 : index
    %276 = vector.load %arg0[%c0_192, %c0_193, %c0_194] : memref<2x64x256xf32, #tpu.memory_space<vmem>>, vector<1x64x256xf32>
    %277 = vector.shape_cast %276 : vector<1x64x256xf32> to vector<64x256xf32>
    %278 = arith.addf %275, %277 : vector<64x256xf32>
    %cst_195 = arith.constant 0.000000e+00 : f32
    %279 = vector.broadcast %cst_195 : f32 to vector<64x256xf32>
    %280 = arith.maximumf %278, %279 : vector<64x256xf32>
    %c0_196 = arith.constant 0 : index
    %c0_197 = arith.constant 0 : index
    %c0_198 = arith.constant 0 : index
    %281 = vector.load %arg6[%c0_196, %c0_197, %c0_198] : memref<2x64x256xf32, #tpu.memory_space<vmem>>, vector<1x64x256xf32>
    %282 = vector.shape_cast %281 : vector<1x64x256xf32> to vector<64x256xf32>
    %283 = vector.shape_cast %280 : vector<64x256xf32> to vector<1x64x256xf32>
    tpu.vector_store %arg6[%c0_196, %c0_197, %c0_198], %283 {strides = array<i32>} : memref<2x64x256xf32, #tpu.memory_space<vmem>>, vector<1x64x256xf32>,
    %284 = vector.extract_strided_slice %274 {offsets = [0, 256], sizes = [64, 256], strides = [1, 1]} : vector<64x512xf32> to vector<64x256xf32>
    %c1_199 = arith.constant 1 : index
    %c0_200 = arith.constant 0 : index
    %c0_201 = arith.constant 0 : index
    %285 = vector.load %arg0[%c1_199, %c0_200, %c0_201] : memref<2x64x256xf32, #tpu.memory_space<vmem>>, vector<1x64x256xf32>
    %286 = vector.shape_cast %285 : vector<1x64x256xf32> to vector<64x256xf32>
    %287 = arith.addf %284, %286 : vector<64x256xf32>
    %cst_202 = arith.constant 0.000000e+00 : f32
    %288 = vector.broadcast %cst_202 : f32 to vector<64x256xf32>
    %289 = arith.maximumf %287, %288 : vector<64x256xf32>
    %c1_203 = arith.constant 1 : index
    %c0_204 = arith.constant 0 : index
    %c0_205 = arith.constant 0 : index
    %290 = vector.load %arg6[%c1_203, %c0_204, %c0_205] : memref<2x64x256xf32, #tpu.memory_space<vmem>>, vector<1x64x256xf32>
    %291 = vector.shape_cast %290 : vector<1x64x256xf32> to vector<64x256xf32>
    %292 = vector.shape_cast %289 : vector<64x256xf32> to vector<1x64x256xf32>
    tpu.vector_store %arg6[%c1_203, %c0_204, %c0_205], %292 {strides = array<i32>} : memref<2x64x256xf32, #tpu.memory_space<vmem>>, vector<1x64x256xf32>,
    return
  }
}

</mosaic_0001>

<bundles_post_ra>
// kernel: res2net_bottleneck.1
= control target key start
LH: loop header
LB: loop body
LE: loop exit
PB: predicated region body
PF: predicated region fallthrough
CT: control target
= control target key end

     0   :  { %v2921_v3 = vmov 0   ;;  %vm87_vm0 = vcmask 523264   ;;  %s2923_s21 = smov 16   ;;  %s2924_s22 = smov 15   ;;  %vm831_vm9 = vcmask 1043456   ;;  %vm827_vm10 = vcmask 588800   ;;  %s4483_s0 = inlined_call_operand.vmem [shape: f32[2,64,256], index: 0, kind: input, shape index: {}]   ;;  %s4484_s1 = inlined_call_operand.vmem [shape: bf16[32,64], index: 1, kind: input, shape index: {}]   ;;  %s4485_s4 = inlined_call_operand.vmem [shape: f32[240,1], index: 4, kind: input, shape index: {}]   ;;  %s4486_s5 = inlined_call_operand.vmem [shape: f32[9,512], index: 5, kind: input, shape index: {}]   ;;  %s4487_s2 = inlined_call_operand.vmem [shape: bf16[3,8,72], index: 2, kind: input, shape index: {}]   ;;  %s4488_s3 = inlined_call_operand.vmem [shape: bf16[64,32], index: 3, kind: input, shape index: {}]   ;;  %s4489_s6 = inlined_call_operand.vmem [shape: f32[2,64,256], index: 6, kind: output, shape index: {}]  }
   0x1   :  { %v25_v0 = vld [vmem:[%s4483_s0 + $0x8] sm:$0xff]  ;;  %v27_v1 = vld [vmem:[%s4483_s0 + $0x18] sm:$0xff]  ;;  %126 = vmatprep.mubr.bf16.mxu0 %v2921_v3  ;;  %179 = vmatprep.mubr.bf16.mxu1 %v2921_v3  ;;  %v24_v6 = vld [vmem:[%s4483_s0] sm:$0xff]  ;;  %s2925_s23 = smov 1   ;;  %s2926_s24 = smov 127   ;;  %vm2137_vm11 = vcmask 261120  }
   0x2   :  { %v2774_v2 = vld [vmem:[%s4483_s0 + $0x88] sm:$0xff]  ;;  %v41_v4 = vpack.c.bf16 %v27_v1, %v25_v0  ;;  %v2776_v5 = vld [vmem:[%s4483_s0 + $0x98] sm:$0xff]  ;;  %v26_v7 = vld [vmem:[%s4483_s0 + $0x10] sm:$0xff]  ;;  %2883 = vset.pattern.permute.xlu1 %v2921_v3  ;;  %2884 = vset.pattern.permute.xlu0 %v2921_v3  ;;  %s2927_s25 = smov 113   ;;  %s2928_s26 = smov 112  }
   0x3   :  { %v66_v8 = vpack.c.bf16 %v2776_v5, %v2774_v2  ;;  %v40_v9 = vpack.c.bf16 %v26_v7, %v24_v6  ;;  %v2773_v10 = vld [vmem:[%s4483_s0 + $0x80] sm:$0xff]  ;;  %v2775_v11 = vld [vmem:[%s4483_s0 + $0x90] sm:$0xff]  ;;  %v29_v12 = vld [vmem:[%s4483_s0 + $0x28] sm:$0xff]  ;;  %s2929_s27 = smov 111  }
   0x4   :  { %94 = vmatprep.subr.bf16.mxu0 %v41_v4  ;;  %v65_v13 = vpack.c.bf16 %v2775_v11, %v2773_v10  ;;  %v31_v14 = vld [vmem:[%s4483_s0 + $0x38] sm:$0xff]  ;;  %v2778_v15 = vld [vmem:[%s4483_s0 + $0xa8] sm:$0xff]  ;;  %v28_v19 = vld [vmem:[%s4483_s0 + $0x20] sm:$0xff] }
   0x5   :  { %v2780_v16 = vld [vmem:[%s4483_s0 + $0xb8] sm:$0xff]  ;;  %147 = vmatprep.subr.bf16.mxu1 %v66_v8  ;;  %95 = vmatpush1.bf16.msra.mxu0 %v40_v9  ;;  %v43_v17 = vpack.c.bf16 %v31_v14, %v29_v12  ;;  %v30_v20 = vld [vmem:[%s4483_s0 + $0x30] sm:$0xff]  ;;  %v2777_v21 = vld [vmem:[%s4483_s0 + $0xa0] sm:$0xff] }
   0x6   :  { %v68_v18 = vpack.c.bf16 %v2780_v16, %v2778_v15  ;;  %148 = vmatpush1.bf16.msra.mxu1 %v65_v13  ;;  %v42_v22 = vpack.c.bf16 %v30_v20, %v28_v19  ;;  %v2779_v23 = vld [vmem:[%s4483_s0 + $0xb0] sm:$0xff]  ;;  %v33_v24 = vld [vmem:[%s4483_s0 + $0x48] sm:$0xff]  ;;  %v35_v25 = vld [vmem:[%s4483_s0 + $0x58] sm:$0xff] }
   0x7   :  { %96 = vmatprep.subr.bf16.mxu0 %v43_v17  ;;  %v67_v26 = vpack.c.bf16 %v2779_v23, %v2777_v21  ;;  %v45_v27 = vpack.c.bf16 %v35_v25, %v33_v24  ;;  %v2782_v28 = vld [vmem:[%s4483_s0 + $0xc8] sm:$0xff]  ;;  %v2784_v29 = vld [vmem:[%s4483_s0 + $0xd8] sm:$0xff]  ;;  %v32_v30 = vld [vmem:[%s4483_s0 + $0x40] sm:$0xff] }
   0x8   :  { %149 = vmatprep.subr.bf16.mxu1 %v68_v18  ;;  %v70_v31 = vpack.c.bf16 %v2784_v29, %v2782_v28  ;;  %v34_v32 = vld [vmem:[%s4483_s0 + $0x50] sm:$0xff]  ;;  %v2781_v33 = vld [vmem:[%s4483_s0 + $0xc0] sm:$0xff]  ;;  %v37_v36 = vld [vmem:[%s4483_s0 + $0x68] sm:$0xff] }
   0x9   :  { %v2783_v34 = vld [vmem:[%s4483_s0 + $0xd0] sm:$0xff]  ;;  %97 = vmatpush1.bf16.msra.mxu0 %v42_v22  ;;  %v44_v35 = vpack.c.bf16 %v34_v32, %v32_v30  ;;  %v39_v37 = vld [vmem:[%s4483_s0 + $0x78] sm:$0xff]  ;;  %v2786_v38 = vld [vmem:[%s4483_s0 + $0xe8] sm:$0xff] }
   0xa   :  { %150 = vmatpush1.bf16.msra.mxu1 %v67_v26  ;;  %98 = vmatprep.subr.bf16.mxu0 %v45_v27  ;;  %v69_v39 = vpack.c.bf16 %v2783_v34, %v2781_v33  ;;  %v47_v40 = vpack.c.bf16 %v39_v37, %v37_v36  ;;  %v2788_v41 = vld [vmem:[%s4483_s0 + $0xf8] sm:$0xff]  ;;  %v36_v42 = vld [vmem:[%s4483_s0 + $0x60] sm:$0xff]  ;;  %v38_v43 = vld [vmem:[%s4483_s0 + $0x70] sm:$0xff]  ;;  %v421_v36 = vlaneseq }
   0xb   :  { %151 = vmatprep.subr.bf16.mxu1 %v70_v31  ;;  %v72_v44 = vpack.c.bf16 %v2788_v41, %v2786_v38  ;;  %v2785_v45 = vld [vmem:[%s4483_s0 + $0xe0] sm:$0xff]  ;;  %v2787_v46 = vld [vmem:[%s4483_s0 + $0xf0] sm:$0xff]  ;;  %v46_v47 = vpack.c.bf16 %v38_v43, %v36_v42  ;;  %v201_v17 = vld [vmem:[%s4485_s4 + $0x8] sm:$0xff] }
   0xc   :  { %v71_v48 = vpack.c.bf16 %v2787_v46, %v2785_v45  ;;  %v2885_v49 = vld [vmem:[%s4484_s1] sm:$0xff]   ;;  %v205_v20 = vld [vmem:[%s4485_s4 + $0x28] sm:$0xff]  ;;  %v431_v37 = vshrl.u32 %v421_v36, 7  ;;  %v3175_v41 = vand.u32 127, %v421_v36 }
   0xd   :  { %99 = vmatpush1.bf16.msra.mxu0 %v44_v35  ;;  %v2886_v21 = vld [vmem:[%s4484_s1 + $0x8] sm:$0xff]   ;;  %s2922_s1 = smov 17  }
   0xe   :  { %152 = vmatpush1.bf16.msra.mxu1 %v69_v39  ;;  %100 = vmatprep.subr.bf16.mxu0 %v47_v40  ;;  %v3181_v45 = vsub.s32 1, %v431_v37  ;;  %vm423_vm1 = vcmp.lt.s32.totalorder %v3175_v41, 17  ;;  %vm466_vm2 = vcmp.lt.s32.totalorder %v3175_v41, 16  ;;  %vm510_vm3 = vcmp.lt.s32.totalorder %v3175_v41, 15 }
   0xf   :  { %153 = vmatprep.subr.bf16.mxu1 %v72_v44  ;;  %vm554_vm4 = vcmp.lt.s32.totalorder %v3175_v41, 1  ;;  %vm602_vm5 = vcmp.lt.s32.totalorder %v3175_v41, 127  ;;  %vm646_vm6 = vcmp.lt.s32.totalorder %v3175_v41, 113  ;;  %vm690_vm7 = vcmp.lt.s32.totalorder %v3175_v41, 112 }
  0x10   :  { %vm734_vm8 = vcmp.lt.s32.totalorder %v3175_v41, 111  ;;  %v2825_v41 = vld [vmem:[%s4487_s2 + $0x8] sm:$0xf] }
  0x11   :  { %101 = vmatpush1.bf16.msra.mxu0 %v46_v47  ;;  %v428_v47 = vld [vmem:[%s4486_s5] ss:$8 sm:$0xf] }
  0x12   :  { %154 = vmatpush1.bf16.msra.mxu1 %v71_v48  ;;  %v2795_v48 = vld [vmem:[%s4486_s5 + $0x1] ss:$8 sm:$0xf] }
  0x14   :  { %2791 = vmatmul.mubr.msk.bf16.vlgmr.msra.gmra.mrb[0].mxu0 %vm87_vm0, %v2885_v49 }
  0x15   :  { %2793 = vmatmul.mubr.msk.bf16.vlgmr.msra.gmra.mrb[0].mxu1 %vm87_vm0, %v2885_v49  ;;  %136 = vmatprep.mubr.bf16.mxu0 %v2921_v3 }
  0x16   :  { %189 = vmatprep.mubr.bf16.mxu1 %v2921_v3 }
  0x1c   :  { %2792 = vmatmul.mubr.msk.bf16.gmra.mrb[4].mxu0 %vm87_vm0, %v2886_v21 }
  0x1d   :  { %2794 = vmatmul.mubr.msk.bf16.gmra.mrb[4].mxu1 %vm87_vm0, %v2886_v21  ;;  %876 = vmatprep.mubr.bf16.mxu0 %v2921_v3 }
  0x1e   :  { %917 = vmatprep.mubr.bf16.mxu1 %v2921_v3 }
  0xe7   :  { %v3072_v50 = vpop.f32.mrb[0].mxu0 }
  0xe8   :  { %v3074_v51 = vpop.f32.mrb[0].mxu1  ;;  %v3076_v52 = vpop.f32.mrb[1].mxu0 }
  0xe9   :  { %v208_v53 = vadd.f32 %v3076_v52, %v3072_v50  ;;  %v3080_v54 = vpop.f32.mrb[1].mxu1  ;;  %v132_v55 = vpop.f32.mrb[2].mxu0 }
  0xea   :  { %v185_v56 = vpop.f32.mrb[2].mxu1  ;;  %v134_v57 = vpop.f32.mrb[3].mxu0 }
  0xeb   :  { %v209_v58 = vadd.f32 %v208_v53, %v3074_v51  ;;  %v213_v59 = vadd.f32 %v134_v57, %v132_v55  ;;  %v187_v60 = vpop.f32.mrb[3].mxu1 }
  0xed   :  { %v3084_v61 = vadd.f32 %v209_v58, %v3080_v54  ;;  %v214_v62 = vadd.f32 %v213_v59, %v185_v56 }
  0xef   :  { %v215_v63 = vadd.f32 %v214_v62, %v187_v60  ;;  %v3171_v38 = vpop.f32.mrb[4].mxu0 }
  0xf0   :  { %v3173_v39 = vpop.f32.mrb[4].mxu1  ;;  %v3177_v43 = vpop.f32.mrb[5].mxu0 }
  0xf1   :  { %216 = vadd.xlane.f32.xlu0 %v215_v63  ;;  %v3179_v44 = vpop.f32.mrb[5].mxu1  ;;  %v218_v46 = vadd.f32 %v3177_v43, %v3171_v38  ;;  %v3229_v36 = vpop.f32.mrb[6].mxu0 }
 0x17e   :  { %v217_v0 = vpop.xlane.xlu0 %216 }
 0x17f   :  { %v230_v1 = vmul.f32 0.001953125, %v217_v0  ;;  %v3203_v0 = vsub.s32 0, %v431_v37 }
 0x181   :  { %v237_v2 = vsub.f32 %v132_v55, %v230_v1  ;;  %v238_v4 = vsub.f32 %v134_v57, %v230_v1  ;;  %v239_v5 = vsub.f32 %v185_v56, %v230_v1  ;;  %v240_v6 = vsub.f32 %v187_v60, %v230_v1 }
 0x182   :  { %v219_v55 = vadd.f32 %v218_v46, %v3173_v39  ;;  %v437_v56 = vrot.slane %v428_v47, %v3181_v45  ;;  %v481_v57 = vrot.slane %v2795_v48, %v3181_v45  ;;  %v3236_v46 = vpop.f32.mrb[7].mxu0 }
 0x183   :  { %v253_v7 = vmul.f32 %v237_v2, %v237_v2  ;;  %v254_v8 = vmul.f32 %v238_v4, %v238_v4  ;;  %v255_v9 = vmul.f32 %v239_v5, %v239_v5  ;;  %v256_v11 = vmul.f32 %v240_v6, %v240_v6 }
 0x184   :  { %v220_v58 = vadd.f32 %v219_v55, %v3179_v44  ;;  %v223_v55 = vadd.f32 %v3236_v46, %v3229_v36 }
 0x185   :  { %v270_v10 = vadd.f32 %v254_v8, %v253_v7  ;;  %v3207_v7 = vsub.s32 2, %v431_v37  ;;  %v3209_v8 = vsub.s32 3, %v431_v37  ;;  %v3231_v37 = vpop.f32.mrb[6].mxu1 }
 0x187   :  { %v271_v12 = vadd.f32 %v270_v10, %v255_v9  ;;  %v433_v9 = vrot.slane %v428_v47, %v3203_v0  ;;  %v477_v10 = vrot.slane %v2795_v48, %v3203_v0 }
 0x189   :  { %v272_v13 = vadd.f32 %v271_v12, %v256_v11 }
 0x18b   :  { %273 = vadd.xlane.f32.xlu0 %v272_v13 }
 0x218   :  { %v274_v14 = vpop.xlane.xlu0 %273 }
 0x219   :  { %v286_v15 = vmul.f32 0.001953125, %v274_v14  ;;  %v485_v14 = vrot.slane %v2795_v48, %v3207_v7 }
 0x21b   :  { %v290_v16 = vadd.f32 1e-05, %v286_v15  ;;  %v489_v15 = vrot.slane %v2795_v48, %v3209_v8 }
 0x21d   :  { %2891 = vrsqrt.f32 %v290_v16 }
 0x227   :  { %v2892_v18 = vpop.eup %2891 }
 0x228   :  { %v298_v19 = vmul.f32 %v2892_v18, %v201_v17 }
 0x22a   :  { %308 = vperm.xlu1 %2883, %v298_v19   ;;  %v441_v19 = vrot.slane %v428_v47, %v3207_v7 }
 0x22e   :  { %344 = vperm.xlu1 %2883, %v205_v20   ;;  %v445_v20 = vrot.slane %v428_v47, %v3209_v8  ;;  %v3238_v47 = vpop.f32.mrb[7].mxu1 }
 0x2a9   :  { %v309_v22 = vpop.permute.xlu1 %308 }
 0x2aa   :  { %v325_v23 = vmul.f32 %v309_v22, %v237_v2  ;;  %v326_v24 = vmul.f32 %v309_v22, %v238_v4  ;;  %v327_v26 = vmul.f32 %v309_v22, %v239_v5  ;;  %v328_v33 = vmul.f32 %v309_v22, %v240_v6 }
 0x2ad   :  { %v345_v25 = vpop.permute.xlu1 %344 }
 0x2ae   :  { %v361_v27 = vadd.f32 %v345_v25, %v325_v23  ;;  %v362_v28 = vadd.f32 %v345_v25, %v326_v24  ;;  %v363_v29 = vadd.f32 %v345_v25, %v327_v26  ;;  %v364_v34 = vadd.f32 %v345_v25, %v328_v33 }
 0x2b0   :  { %v3099_v30 = vmax.f32 %v361_v27, 0.0  ;;  %v3101_v31 = vmax.f32 %v362_v28, 0.0  ;;  %v3107_v32 = vmax.f32 %v363_v29, 0.0  ;;  %v3117_v35 = vmax.f32 %v364_v34, 0.0 }
 0x2b2   :  { %415 = vrot.lane.b32.xlu1 %v3101_v31, %s2922_s1  ;;  %413 = vrot.lane.b32.xlu0 %v3099_v30, %s2922_s1 }
 0x2b6   :  { %458 = vrot.lane.b32.xlu1 %v3099_v30, %s2923_s21  ;;  %462 = vrot.lane.b32.xlu0 %v3107_v32, %s2923_s21 }
 0x2ba   :  { %460 = vrot.lane.b32.xlu1 %v3101_v31, %s2923_s21  ;;  %504 = vrot.lane.b32.xlu0 %v3101_v31, %s2924_s22 }
 0x2be   :  { %419 = vrot.lane.b32.xlu1 %v3117_v35, %s2922_s1  ;;  %548 = vrot.lane.b32.xlu0 %v3101_v31, %s2925_s23 }
 0x2c2   :  { %464 = vrot.lane.b32.xlu1 %v3117_v35, %s2923_s21  ;;  %552 = vrot.lane.b32.xlu0 %v3117_v35, %s2925_s23 }
 0x2c6   :  { %417 = vrot.lane.b32.xlu1 %v3107_v32, %s2922_s1  ;;  %550 = vrot.lane.b32.xlu0 %v3107_v32, %s2925_s23 }
 0x2ca   :  { %502 = vrot.lane.b32.xlu1 %v3099_v30, %s2924_s22  ;;  %598 = vrot.lane.b32.xlu0 %v3107_v32, %s2926_s24 }
 0x2ce   :  { %546 = vrot.lane.b32.xlu1 %v3099_v30, %s2925_s23  ;;  %600 = vrot.lane.b32.xlu0 %v3117_v35, %s2926_s24 }
 0x2d2   :  { %508 = vrot.lane.b32.xlu1 %v3117_v35, %s2924_s22  ;;  %642 = vrot.lane.b32.xlu0 %v3107_v32, %s2927_s25 }
 0x2d6   :  { %506 = vrot.lane.b32.xlu1 %v3107_v32, %s2924_s22  ;;  %686 = vrot.lane.b32.xlu0 %v3107_v32, %s2928_s26 }
 0x2da   :  { %596 = vrot.lane.b32.xlu1 %v3101_v31, %s2926_s24  ;;  %682 = vrot.lane.b32.xlu0 %v3099_v30, %s2928_s26 }
 0x2de   :  { %594 = vrot.lane.b32.xlu1 %v3099_v30, %s2926_s24  ;;  %688 = vrot.lane.b32.xlu0 %v3117_v35, %s2928_s26 }
 0x2e2   :  { %640 = vrot.lane.b32.xlu1 %v3101_v31, %s2927_s25  ;;  %728 = vrot.lane.b32.xlu0 %v3101_v31, %s2929_s27 }
 0x2e6   :  { %684 = vrot.lane.b32.xlu1 %v3101_v31, %s2928_s26  ;;  %732 = vrot.lane.b32.xlu0 %v3117_v35, %s2929_s27 }
 0x2ea   :  { %638 = vrot.lane.b32.xlu1 %v3099_v30, %s2927_s25 }
 0x2ee   :  { %644 = vrot.lane.b32.xlu1 %v3117_v35, %s2927_s25 }
 0x2f2   :  { %726 = vrot.lane.b32.xlu1 %v3099_v30, %s2929_s27 }
 0x2f6   :  { %730 = vrot.lane.b32.xlu1 %v3107_v32, %s2929_s27 }
 0x31a   :  { %221 = vadd.xlane.f32.xlu1 %v220_v58 }
 0x324   :  { %v416_v40 = vpop.permute.xlu1 %415  ;;  %v414_v42 = vpop.permute.xlu0 %413 }
 0x325   :  { %v426_v59 = vsel %vm423_vm1, %v414_v42, %v416_v40 }
 0x326   :  { %v451_v1 = vmul.f32 %v437_v56, %v426_v59  ;;  %v2797_v56 = vld [vmem:[%s4486_s5 + $0x3] ss:$8 sm:$0xf]  ;;  %v3249_v59 = vadd.f32 %v223_v55, %v3231_v37 }
 0x327   :  { %v569_v58 = vrot.slane %v2797_v56, %v3181_v45 }
 0x328   :  { %v459_v49 = vpop.permute.xlu1 %458  ;;  %v463_v53 = vpop.permute.xlu0 %462 }
 0x32c   :  { %v461_v60 = vpop.permute.xlu1 %460  ;;  %v3199_v62 = vpop.permute.xlu0 %504 }
 0x32d   :  { %v469_v63 = vsel %vm466_vm2, %v459_v49, %v461_v60  ;;  %v468_v21 = vsel %vm466_vm2, %v461_v60, %v463_v53 }
 0x32e   :  { %v495_v2 = vmul.f32 %v481_v57, %v469_v63  ;;  %v496_v28 = vmul.f32 %v485_v14, %v468_v21 }
 0x330   :  { %v420_v4 = vpop.permute.xlu1 %419  ;;  %v3205_v5 = vpop.permute.xlu0 %548  ;;  %v808_v6 = vpack.c.bf16 %v495_v2, %v451_v1 }
 0x331   :  { %v427_v11 = vsel %vm423_vm1, %v420_v4, %v414_v42  ;;  %v2796_v42 = vld [vmem:[%s4486_s5 + $0x2] ss:$8 sm:$0xf] }
 0x332   :  { %844 = vmatprep.subr.bf16.mxu0 %v808_v6  ;;  %v450_v17 = vmul.f32 %v433_v9, %v427_v11  ;;  %v525_v57 = vrot.slane %v2796_v42, %v3181_v45  ;;  %v565_v6 = vrot.slane %v2797_v56, %v3203_v0  ;;  %v529_v21 = vrot.slane %v2796_v42, %v3207_v7 }
 0x334   :  { %v465_v12 = vpop.permute.xlu1 %464  ;;  %v553_v13 = vpop.permute.xlu0 %552 }
 0x335   :  { %v470_v16 = vsel %vm466_vm2, %v465_v12, %v459_v49  ;;  %v467_v22 = vsel %vm466_vm2, %v463_v53, %v465_v12 }
 0x336   :  { %v494_v18 = vmul.f32 %v477_v10, %v470_v16  ;;  %v497_v29 = vmul.f32 %v489_v15, %v467_v22  ;;  %v521_v10 = vrot.slane %v2796_v42, %v3203_v0  ;;  %v573_v15 = vrot.slane %v2797_v56, %v3207_v7 }
 0x337   :  { %v577_v16 = vrot.slane %v2797_v56, %v3209_v8  ;;  %v533_v22 = vrot.slane %v2796_v42, %v3209_v8 }
 0x338   :  { %v807_v23 = vpack.c.bf16 %v494_v18, %v450_v17  ;;  %v418_v24 = vpop.permute.xlu1 %417  ;;  %v551_v25 = vpop.permute.xlu0 %550 }
 0x339   :  { %v424_v26 = vsel %vm423_vm1, %v418_v24, %v420_v4  ;;  %v425_v27 = vsel %vm423_vm1, %v416_v40, %v418_v24  ;;  %v556_v24 = vsel %vm554_vm4, %v3205_v5, %v551_v25 }
 0x33a   :  { %v452_v33 = vmul.f32 %v441_v19, %v425_v27  ;;  %v453_v34 = vmul.f32 %v445_v20, %v424_v26  ;;  %845 = vmatpush1.bf16.msra.mxu0 %v807_v23  ;;  %v555_v23 = vsel %vm554_vm4, %v551_v25, %v553_v13  ;;  %v2798_v26 = vld [vmem:[%s4486_s5 + $0x5] ss:$8 sm:$0xf] }
 0x33b   :  { %v585_v42 = vmul.f32 %v577_v16, %v555_v23  ;;  %v621_v56 = vrot.slane %v2798_v26, %v3207_v7 }
 0x33c   :  { %v809_v48 = vpack.c.bf16 %v496_v28, %v452_v33  ;;  %v503_v40 = vpop.permute.xlu1 %502  ;;  %v599_v49 = vpop.permute.xlu0 %598  ;;  %v810_v53 = vpack.c.bf16 %v497_v29, %v453_v34  ;;  %v617_v34 = vrot.slane %v2798_v26, %v3181_v45 }
 0x33d   :  { %v513_v60 = vsel %vm510_vm3, %v503_v40, %v3199_v62 }
 0x33e   :  { %885 = vmatprep.subr.bf16.mxu1 %v810_v53  ;;  %v539_v4 = vmul.f32 %v525_v57, %v513_v60  ;;  %v613_v60 = vrot.slane %v2798_v26, %v3203_v0 }
 0x33f   :  { %886 = vmatpush1.bf16.msra.mxu1 %v809_v48 }
 0x340   :  { %v547_v63 = vpop.permute.xlu1 %546  ;;  %v601_v1 = vpop.permute.xlu0 %600 }
 0x341   :  { %v557_v2 = vsel %vm554_vm4, %v547_v63, %v3205_v5  ;;  %v558_v11 = vsel %vm554_vm4, %v553_v13, %v547_v63  ;;  %v584_v13 = vmul.f32 %v573_v15, %v556_v24  ;;  %v625_v63 = vrot.slane %v2798_v26, %v3209_v8 }
 0x342   :  { %v583_v9 = vmul.f32 %v569_v58, %v557_v2  ;;  %v582_v18 = vmul.f32 %v565_v6, %v558_v11 }
 0x344   :  { %v509_v12 = vpop.permute.xlu1 %508  ;;  %v812_v14 = vpack.c.bf16 %v583_v9, %v539_v4  ;;  %v3266_v20 = vpop.permute.xlu0 %642 }
 0x345   :  { %v514_v17 = vsel %vm510_vm3, %v509_v12, %v503_v40 }
 0x346   :  { %v538_v19 = vmul.f32 %v521_v10, %v514_v17  ;;  %846 = vmatprep.subr.bf16.mxu0 %v812_v14  ;;  %v2799_v14 = vld [vmem:[%s4486_s5 + $0x6] ss:$8 sm:$0xf] }
 0x347   :  { %v657_v26 = vrot.slane %v2799_v14, %v3203_v0 }
 0x348   :  { %v811_v27 = vpack.c.bf16 %v582_v18, %v538_v19  ;;  %v507_v28 = vpop.permute.xlu1 %506  ;;  %v687_v25 = vpop.permute.xlu0 %686  ;;  %v661_v18 = vrot.slane %v2799_v14, %v3181_v45 }
 0x349   :  { %v511_v29 = vsel %vm510_vm3, %v507_v28, %v509_v12  ;;  %v512_v33 = vsel %vm510_vm3, %v3199_v62, %v507_v28  ;;  %v603_v62 = vsel %vm602_vm5, %v599_v49, %v601_v1 }
 0x34a   :  { %v540_v48 = vmul.f32 %v529_v21, %v512_v33  ;;  %v541_v40 = vmul.f32 %v533_v22, %v511_v29  ;;  %847 = vmatpush1.bf16.msra.mxu0 %v811_v27  ;;  %v632_v6 = vmul.f32 %v621_v56, %v603_v62 }
 0x34c   :  { %v813_v5 = vpack.c.bf16 %v584_v13, %v540_v48  ;;  %v597_v53 = vpop.permute.xlu1 %596  ;;  %v814_v55 = vpack.c.bf16 %v585_v42, %v541_v40  ;;  %v683_v11 = vpop.permute.xlu0 %682  ;;  %v817_v17 = vpack.c.bf16 %v632_v6, %v3107_v32 }
 0x34d   :  { %v604_v57 = vsel %vm602_vm5, %v597_v53, %v599_v49 }
 0x34e   :  { %v631_v58 = vmul.f32 %v617_v34, %v604_v57  ;;  %887 = vmatprep.subr.bf16.mxu1 %v814_v55  ;;  %v2801_v55 = vld [vmem:[%s4486_s5 + $0x20] ss:$8 sm:$0xf] }
 0x34f   :  { %888 = vmatpush1.bf16.msra.mxu1 %v813_v5  ;;  %v665_v5 = vrot.slane %v2799_v14, %v3207_v7 }
 0x350   :  { %v595_v2 = vpop.permute.xlu1 %594  ;;  %v816_v4 = vpack.c.bf16 %v631_v58, %v3101_v31 }
 0x351   :  { %v605_v9 = vsel %vm602_vm5, %v595_v2, %v597_v53  ;;  %v606_v10 = vsel %vm602_vm5, %v601_v1, %v595_v2  ;;  %v2800_v1 = vld [vmem:[%s4486_s5 + $0x7] ss:$8 sm:$0xf]  ;;  %v669_v53 = vrot.slane %v2799_v14, %v3209_v8  ;;  %v745_v2 = vrot.slane %v2801_v55, %v3203_v0 }
 0x352   :  { %v630_v12 = vmul.f32 %v613_v60, %v605_v9  ;;  %v633_v49 = vmul.f32 %v625_v63, %v606_v10  ;;  %848 = vmatprep.subr.bf16.mxu0 %v816_v4  ;;  %v705_v19 = vrot.slane %v2800_v1, %v3181_v45  ;;  %v701_v23 = vrot.slane %v2800_v1, %v3203_v0 }
 0x353   :  { %v709_v33 = vrot.slane %v2800_v1, %v3207_v7  ;;  %v713_v34 = vrot.slane %v2800_v1, %v3209_v8  ;;  %v757_v4 = vrot.slane %v2801_v55, %v3209_v8  ;;  %v753_v1 = vrot.slane %v2801_v55, %v3207_v7 }
 0x354   :  { %v815_v15 = vpack.c.bf16 %v630_v12, %v3099_v30  ;;  %v641_v31 = vpop.permute.xlu1 %640  ;;  %v818_v16 = vpack.c.bf16 %v633_v49, %v3117_v35  ;;  %v689_v35 = vpop.permute.xlu0 %688 }
 0x355   :  { %v648_v30 = vsel %vm646_vm6, %v641_v31, %v3266_v20  ;;  %v691_v56 = vsel %vm690_vm7, %v687_v25, %v689_v35  ;;  %v694_v57 = vsel %vm690_vm7, %v689_v35, %v683_v11 }
 0x356   :  { %849 = vmatpush1.bf16.msra.mxu0 %v815_v15  ;;  %889 = vmatprep.subr.bf16.mxu1 %v818_v16  ;;  %v675_v22 = vmul.f32 %v661_v18, %v648_v30  ;;  %v720_v6 = vmul.f32 %v709_v33, %v691_v56 }
 0x357   :  { %890 = vmatpush1.bf16.msra.mxu1 %v817_v17  ;;  %v749_v17 = vrot.slane %v2801_v55, %v3181_v45 }
 0x358   :  { %v685_v21 = vpop.permute.xlu1 %684  ;;  %v729_v42 = vpop.permute.xlu0 %728 }
 0x359   :  { %v692_v32 = vsel %vm690_vm7, %v685_v21, %v687_v25  ;;  %v693_v27 = vsel %vm690_vm7, %v683_v11, %v685_v21  ;;  %v721_v25 = vmul.f32 %v713_v34, %v694_v57 }
 0x35a   :  { %v719_v24 = vmul.f32 %v705_v19, %v692_v32  ;;  %v718_v48 = vmul.f32 %v701_v23, %v693_v27 }
 0x35c   :  { %v639_v28 = vpop.permute.xlu1 %638  ;;  %v820_v29 = vpack.c.bf16 %v719_v24, %v675_v22  ;;  %v733_v11 = vpop.permute.xlu0 %732 }
 0x35d   :  { %v649_v13 = vsel %vm646_vm6, %v639_v28, %v641_v31 }
 0x35e   :  { %v674_v40 = vmul.f32 %v657_v26, %v649_v13  ;;  %850 = vmatprep.subr.bf16.mxu0 %v820_v29  ;;  %v3363_v29 = vadd.f32 %v3249_v59, %v3238_v47 }
 0x360   :  { %v819_v62 = vpack.c.bf16 %v718_v48, %v674_v40  ;;  %v645_v58 = vpop.permute.xlu1 %644 }
 0x361   :  { %v647_v60 = vsel %vm646_vm6, %v3266_v20, %v645_v58  ;;  %v650_v63 = vsel %vm646_vm6, %v645_v58, %v639_v28  ;;  %v770_v28 = vld [vmem:[%s4487_s2] sm:$0xf] }
 0x362   :  { %v676_v9 = vmul.f32 %v665_v5, %v647_v60  ;;  %v677_v10 = vmul.f32 %v669_v53, %v650_v63  ;;  %851 = vmatpush1.bf16.msra.mxu0 %v819_v62 }
 0x364   :  { %v821_v12 = vpack.c.bf16 %v720_v6, %v676_v9  ;;  %v727_v49 = vpop.permute.xlu1 %726  ;;  %v822_v14 = vpack.c.bf16 %v721_v25, %v677_v10 }
 0x365   :  { %v737_v15 = vsel %vm734_vm8, %v727_v49, %v729_v42  ;;  %v738_v20 = vsel %vm734_vm8, %v733_v11, %v727_v49 }
 0x366   :  { %v762_v31 = vmul.f32 %v745_v2, %v737_v15  ;;  %v765_v16 = vmul.f32 %v757_v4, %v738_v20  ;;  %891 = vmatprep.subr.bf16.mxu1 %v822_v14 }
 0x367   :  { %892 = vmatpush1.bf16.msra.mxu1 %v821_v12 }
 0x368   :  { %v826_v18 = vpack.c.bf16 %v765_v16, %v765_v16  ;;  %v731_v19 = vpop.permute.xlu1 %730  ;;  %v823_v21 = vpack.c.bf16 %v762_v31, %v762_v31 }
 0x369   :  { %v735_v30 = vsel %vm734_vm8, %v731_v19, %v733_v11  ;;  %v736_v35 = vsel %vm734_vm8, %v729_v42, %v731_v19 }
 0x36a   :  { %v763_v32 = vmul.f32 %v749_v17, %v736_v35  ;;  %v764_v22 = vmul.f32 %v753_v1, %v735_v30  ;;  %2804 = vmatprep.subr.msk.bf16.mxu1 %vm831_vm9, %v826_v18  ;;  %v833_v26 = vsel %vm831_vm9, %v823_v21, 0  ;;  %v202_v21 = vld [vmem:[%s4485_s4 + $0x10] sm:$0xff] }
 0x36c   :  { %v824_v23 = vpack.c.bf16 %v763_v32, %v763_v32  ;;  %v825_v24 = vpack.c.bf16 %v764_v22, %v764_v22 }
 0x36e   :  { %2802 = vmatprep.subr.msk.bf16.mxu0 %vm831_vm9, %v824_v23  ;;  %v839_v27 = vsel %vm831_vm9, %v825_v24, 0  ;;  %v206_v23 = vld [vmem:[%s4485_s4 + $0x30] sm:$0xff] }
 0x36f   :  { %853 = vmatpush1.bf16.msra.mxu0 %v833_v26  ;;  %894 = vmatpush1.bf16.msra.mxu1 %v839_v27 }
 0x372   :  { %2803 = vmatmul.mubr.msk.bf16.vlgmr.msra.gmra.mrb[8].mxu0 %vm827_vm10, %v770_v28  ;;  %2805 = vmatmul.mubr.msk.bf16.vlgmr.msra.gmra.mrb[8].mxu1 %vm827_vm10, %v770_v28  ;;  %v926_v28 = vld [vmem:[%s4485_s4 + $0x40] sm:$0xff] }
 0x373   :  { %1430 = vmatprep.mubr.bf16.mxu0 %v2921_v3  ;;  %1471 = vmatprep.mubr.bf16.mxu1 %v2921_v3 }
 0x3a7   :  { %v222_v33 = vpop.xlane.xlu1 %221 }
 0x3a8   :  { %v231_v34 = vmul.f32 0.001953125, %v222_v33 }
 0x3aa   :  { %v241_v13 = vsub.f32 %v3171_v38, %v231_v34  ;;  %v3367_v42 = vsub.f32 %v3177_v43, %v231_v34  ;;  %v3370_v48 = vsub.f32 %v3173_v39, %v231_v34  ;;  %v244_v60 = vsub.f32 %v3179_v44, %v231_v34 }
 0x3ac   :  { %v257_v40 = vmul.f32 %v241_v13, %v241_v13  ;;  %v258_v5 = vmul.f32 %v3367_v42, %v3367_v42  ;;  %v259_v38 = vmul.f32 %v3370_v48, %v3370_v48  ;;  %v260_v6 = vmul.f32 %v244_v60, %v244_v60 }
 0x3ae   :  { %v275_v43 = vadd.f32 %v258_v5, %v257_v40  ;;  %v927_v40 = vld [vmem:[%s4485_s4 + $0x58] sm:$0xff] }
 0x3b0   :  { %v276_v25 = vadd.f32 %v275_v43, %v259_v38 }
 0x3b2   :  { %v277_v9 = vadd.f32 %v276_v25, %v260_v6 }
 0x445   :  { %v878_v53 = vpop.f32.mrb[8].mxu0  ;;  %v919_v55 = vpop.f32.mrb[8].mxu1 }
 0x446   :  { %v880_v56 = vpop.f32.mrb[9].mxu0  ;;  %v921_v57 = vpop.f32.mrb[9].mxu1 }
 0x447   :  { %v928_v59 = vadd.f32 %v880_v56, %v878_v53  ;;  %v882_v62 = vpop.f32.mrb[10].mxu0  ;;  %v923_v58 = vpop.f32.mrb[10].mxu1 }
 0x448   :  { %v883_v63 = vpop.f32.mrb[11].mxu0  ;;  %v924_v39 = vpop.f32.mrb[11].mxu1 }
 0x449   :  { %v929_v2 = vadd.f32 %v928_v59, %v919_v55 }
 0x44b   :  { %v930_v4 = vadd.f32 %v929_v2, %v921_v57 }
 0x44d   :  { %931 = vadd.xlane.f32.xlu0 %v930_v4 }
 0x451   :  { %278 = vadd.xlane.f32.xlu0 %v277_v9 }
 0x4da   :  { %v932_v10 = vpop.xlane.xlu0 %931 }
 0x4db   :  { %v933_v11 = vmul.f32 0.001953125, %v932_v10 }
 0x4dd   :  { %v934_v12 = vsub.f32 %v878_v53, %v933_v11  ;;  %v935_v49 = vsub.f32 %v880_v56, %v933_v11  ;;  %v936_v14 = vsub.f32 %v919_v55, %v933_v11  ;;  %v937_v20 = vsub.f32 %v921_v57, %v933_v11 }
 0x4de   :  { %v279_v15 = vpop.xlane.xlu0 %278 }
 0x4df   :  { %v287_v44 = vmul.f32 0.001953125, %v279_v15  ;;  %v938_v31 = vmul.f32 %v934_v12, %v934_v12  ;;  %v939_v16 = vmul.f32 %v935_v49, %v935_v49  ;;  %v940_v1 = vmul.f32 %v936_v14, %v936_v14 }
 0x4e0   :  { %v941_v19 = vmul.f32 %v937_v20, %v937_v20 }
 0x4e1   :  { %v291_v17 = vadd.f32 1e-05, %v287_v44  ;;  %v942_v18 = vadd.f32 %v939_v16, %v938_v31 }
 0x4e3   :  { %2893 = vrsqrt.f32 %v291_v17  ;;  %v943_v30 = vadd.f32 %v942_v18, %v940_v1 }
 0x4e5   :  { %v944_v35 = vadd.f32 %v943_v30, %v941_v19 }
 0x4e7   :  { %945 = vadd.xlane.f32.xlu1 %v944_v35  ;;  %v2806_v35 = vld [vmem:[%s4486_s5 + $0x1] ss:$8 sm:$0xf] }
 0x4ed   :  { %v2894_v32 = vpop.eup %2893 }
 0x4ee   :  { %v299_v22 = vmul.f32 %v2894_v32, %v202_v21 }
 0x4f0   :  { %313 = vperm.xlu0 %2884, %v299_v22   ;;  %v997_v22 = vld [vmem:[%s4486_s5] ss:$8 sm:$0xf] }
 0x4f8   :  { %349 = vperm.xlu1 %2883, %v206_v23   ;;  %v1006_v23 = vrot.slane %v997_v22, %v3181_v45 }
 0x56f   :  { %v314_v53 = vpop.permute.xlu0 %313 }
 0x570   :  { %v329_v55 = vmul.f32 %v314_v53, %v241_v13  ;;  %v332_v56 = vmul.f32 %v314_v53, %v244_v60  ;;  %v330_v39 = vmul.f32 %v314_v53, %v3367_v42  ;;  %v331_v2 = vmul.f32 %v314_v53, %v3370_v48 }
 0x574   :  { %v946_v24 = vpop.xlane.xlu1 %945 }
 0x575   :  { %v947_v26 = vmul.f32 0.001953125, %v946_v24  ;;  %v1048_v24 = vrot.slane %v2806_v35, %v3181_v45 }
 0x577   :  { %v948_v27 = vadd.f32 1e-05, %v947_v26 }
 0x578   :  { %v350_v5 = vpop.permute.xlu1 %349 }
 0x579   :  { %2895 = vrsqrt.f32 %v948_v27  ;;  %v365_v59 = vadd.f32 %v350_v5, %v329_v55  ;;  %v368_v62 = vadd.f32 %v350_v5, %v332_v56  ;;  %v366_v60 = vadd.f32 %v350_v5, %v330_v39 }
 0x57a   :  { %v367_v10 = vadd.f32 %v350_v5, %v331_v2  ;;  %v1044_v5 = vrot.slane %v2806_v35, %v3203_v0  ;;  %v1056_v39 = vrot.slane %v2806_v35, %v3209_v8 }
 0x57b   :  { %v381_v11 = vmax.f32 %v365_v59, 0.0  ;;  %v1014_v59 = vrot.slane %v997_v22, %v3209_v8 }
 0x57c   :  { %v383_v31 = vmax.f32 %v367_v10, 0.0 }
 0x583   :  { %v2896_v33 = vpop.eup %2895 }
 0x584   :  { %v950_v34 = vmul.f32 %v2896_v33, %v926_v28  ;;  %v1002_v33 = vrot.slane %v997_v22, %v3203_v0 }
 0x586   :  { %953 = vperm.xlu1 %2883, %v950_v34  }
 0x58a   :  { %962 = vperm.xlu1 %2883, %v927_v40  }
 0x605   :  { %v954_v57 = vpop.permute.xlu1 %953 }
 0x606   :  { %v956_v58 = vmul.f32 %v954_v57, %v934_v12  ;;  %v957_v38 = vmul.f32 %v954_v57, %v935_v49  ;;  %v958_v43 = vmul.f32 %v954_v57, %v936_v14  ;;  %v959_v63 = vmul.f32 %v954_v57, %v937_v20 }
 0x607   :  { %v384_v12 = vmax.f32 %v368_v62, 0.0  ;;  %v382_v20 = vmax.f32 %v366_v60, 0.0  ;;  %v1010_v62 = vrot.slane %v997_v22, %v3207_v7 }
 0x609   :  { %v963_v4 = vpop.permute.xlu1 %962 }
 0x60a   :  { %v3391_v6 = vadd.f32 %v963_v4, %v956_v58  ;;  %v3393_v25 = vadd.f32 %v963_v4, %v957_v38  ;;  %v3395_v9 = vadd.f32 %v963_v4, %v958_v43  ;;  %v3397_v13 = vadd.f32 %v963_v4, %v959_v63 }
 0x60b   :  { %v1052_v63 = vrot.slane %v2806_v35, %v3207_v7 }
 0x60c   :  { %v969_v49 = vmax.f32 %v3391_v6, 0.0  ;;  %v972_v14 = vmax.f32 %v3397_v13, 0.0  ;;  %v970_v42 = vmax.f32 %v3393_v25, 0.0  ;;  %v971_v48 = vmax.f32 %v3395_v9, 0.0  ;;  %v2035_v13 = vld [vmem:[%s4485_s4 + $0x68] sm:$0xff] }
 0x60e   :  { %v3405_v15 = vadd.f32 %v969_v49, %v381_v11  ;;  %v3409_v44 = vadd.f32 %v972_v14, %v384_v12  ;;  %v3417_v16 = vadd.f32 %v970_v42, %v382_v20  ;;  %v3421_v17 = vadd.f32 %v971_v48, %v383_v31 }
 0x610   :  { %991 = vrot.lane.b32.xlu0 %v3409_v44, %s2922_s1  ;;  %985 = vrot.lane.b32.xlu1 %v3405_v15, %s2922_s1 }
 0x614   :  { %989 = vrot.lane.b32.xlu0 %v3421_v17, %s2922_s1  ;;  %987 = vrot.lane.b32.xlu1 %v3417_v16, %s2922_s1 }
 0x618   :  { %1069 = vrot.lane.b32.xlu0 %v3405_v15, %s2924_s22  ;;  %1027 = vrot.lane.b32.xlu1 %v3405_v15, %s2923_s21 }
 0x61c   :  { %1111 = vrot.lane.b32.xlu0 %v3405_v15, %s2925_s23  ;;  %1029 = vrot.lane.b32.xlu1 %v3417_v16, %s2923_s21 }
 0x620   :  { %1075 = vrot.lane.b32.xlu0 %v3409_v44, %s2924_s22  ;;  %1033 = vrot.lane.b32.xlu1 %v3409_v44, %s2923_s21 }
 0x624   :  { %1073 = vrot.lane.b32.xlu0 %v3421_v17, %s2924_s22  ;;  %1031 = vrot.lane.b32.xlu1 %v3421_v17, %s2923_s21 }
 0x628   :  { %1159 = vrot.lane.b32.xlu0 %v3417_v16, %s2926_s24  ;;  %1071 = vrot.lane.b32.xlu1 %v3417_v16, %s2924_s22 }
 0x62c   :  { %1157 = vrot.lane.b32.xlu0 %v3405_v15, %s2926_s24  ;;  %1113 = vrot.lane.b32.xlu1 %v3417_v16, %s2925_s23 }
 0x630   :  { %1201 = vrot.lane.b32.xlu0 %v3417_v16, %s2927_s25  ;;  %1117 = vrot.lane.b32.xlu1 %v3409_v44, %s2925_s23 }
 0x634   :  { %1243 = vrot.lane.b32.xlu0 %v3417_v16, %s2928_s26  ;;  %1115 = vrot.lane.b32.xlu1 %v3421_v17, %s2925_s23 }
 0x638   :  { %1199 = vrot.lane.b32.xlu0 %v3405_v15, %s2927_s25  ;;  %1161 = vrot.lane.b32.xlu1 %v3421_v17, %s2926_s24 }
 0x63c   :  { %1205 = vrot.lane.b32.xlu0 %v3409_v44, %s2927_s25  ;;  %1163 = vrot.lane.b32.xlu1 %v3409_v44, %s2926_s24 }
 0x640   :  { %1283 = vrot.lane.b32.xlu0 %v3405_v15, %s2929_s27  ;;  %1203 = vrot.lane.b32.xlu1 %v3421_v17, %s2927_s25 }
 0x644   :  { %1287 = vrot.lane.b32.xlu0 %v3421_v17, %s2929_s27  ;;  %1245 = vrot.lane.b32.xlu1 %v3421_v17, %s2928_s26 }
 0x648   :  { %1241 = vrot.lane.b32.xlu1 %v3405_v15, %s2928_s26 }
 0x64c   :  { %1247 = vrot.lane.b32.xlu1 %v3409_v44, %s2928_s26 }
 0x650   :  { %1285 = vrot.lane.b32.xlu1 %v3417_v16, %s2929_s27 }
 0x654   :  { %1289 = vrot.lane.b32.xlu1 %v3409_v44, %s2929_s27 }
 0x663   :  { %226 = vadd.xlane.f32.xlu0 %v3363_v29 }
 0x682   :  { %v992_v1 = vpop.permute.xlu0 %991  ;;  %v986_v18 = vpop.permute.xlu1 %985 }
 0x683   :  { %v996_v53 = vsel %vm423_vm1, %v992_v1, %v986_v18 }
 0x684   :  { %v1019_v38 = vmul.f32 %v1002_v33, %v996_v53 }
 0x686   :  { %v990_v19 = vpop.permute.xlu0 %989  ;;  %v988_v30 = vpop.permute.xlu1 %987 }
 0x687   :  { %v995_v29 = vsel %vm423_vm1, %v986_v18, %v988_v30  ;;  %v993_v2 = vsel %vm423_vm1, %v990_v19, %v992_v1  ;;  %v994_v4 = vsel %vm423_vm1, %v988_v30, %v990_v19  ;;  %v2808_v1 = vld [vmem:[%s4486_s5 + $0x3] ss:$8 sm:$0xf] }
 0x688   :  { %v1020_v34 = vmul.f32 %v1006_v23, %v995_v29  ;;  %v1022_v31 = vmul.f32 %v1014_v59, %v993_v2  ;;  %v1021_v18 = vmul.f32 %v1010_v62, %v994_v4  ;;  %v1136_v2 = vrot.slane %v2808_v1, %v3207_v7 }
 0x68a   :  { %v1070_v21 = vpop.permute.xlu0 %1069  ;;  %v1028_v32 = vpop.permute.xlu1 %1027 }
 0x68e   :  { %v1112_v26 = vpop.permute.xlu0 %1111  ;;  %v1030_v27 = vpop.permute.xlu1 %1029 }
 0x68f   :  { %v1037_v28 = vsel %vm466_vm2, %v1028_v32, %v1030_v27 }
 0x690   :  { %v1062_v40 = vmul.f32 %v1048_v24, %v1037_v28  ;;  %v2807_v24 = vld [vmem:[%s4486_s5 + $0x2] ss:$8 sm:$0xf] }
 0x691   :  { %v1090_v29 = vrot.slane %v2807_v24, %v3181_v45 }
 0x692   :  { %v1076_v55 = vpop.permute.xlu0 %1075  ;;  %v1034_v56 = vpop.permute.xlu1 %1033  ;;  %v1364_v57 = vpack.c.bf16 %v1062_v40, %v1020_v34 }
 0x693   :  { %v1038_v58 = vsel %vm466_vm2, %v1034_v56, %v1028_v32  ;;  %v1080_v59 = vsel %vm510_vm3, %v1076_v55, %v1070_v21 }
 0x694   :  { %v1061_v43 = vmul.f32 %v1044_v5, %v1038_v58  ;;  %1398 = vmatprep.subr.bf16.mxu0 %v1364_v57  ;;  %v1086_v5 = vrot.slane %v2807_v24, %v3203_v0  ;;  %v1128_v57 = vrot.slane %v2808_v1, %v3203_v0 }
 0x696   :  { %v1363_v60 = vpack.c.bf16 %v1061_v43, %v1019_v38  ;;  %v1074_v10 = vpop.permute.xlu0 %1073  ;;  %v1032_v11 = vpop.permute.xlu1 %1031  ;;  %v1098_v38 = vrot.slane %v2807_v24, %v3209_v8  ;;  %v1094_v43 = vrot.slane %v2807_v24, %v3207_v7  ;;  %v1103_v4 = vmul.f32 %v1086_v5, %v1080_v59 }
 0x697   :  { %v1035_v12 = vsel %vm466_vm2, %v1032_v11, %v1034_v56  ;;  %v1036_v20 = vsel %vm466_vm2, %v1030_v27, %v1032_v11  ;;  %v1132_v27 = vrot.slane %v2808_v1, %v3181_v45 }
 0x698   :  { %v1063_v32 = vmul.f32 %v1052_v63, %v1036_v20  ;;  %v1064_v22 = vmul.f32 %v1056_v39, %v1035_v12  ;;  %1399 = vmatpush1.bf16.msra.mxu0 %v1363_v60  ;;  %v2809_v63 = vld [vmem:[%s4486_s5 + $0x5] ss:$8 sm:$0xf]  ;;  %v1077_v60 = vsel %vm510_vm3, %v1074_v10, %v1076_v55  ;;  %v1140_v12 = vrot.slane %v2808_v1, %v3209_v8 }
 0x699   :  { %v1178_v55 = vrot.slane %v2809_v63, %v3181_v45 }
 0x69a   :  { %v1365_v35 = vpack.c.bf16 %v1063_v32, %v1021_v18  ;;  %v1160_v19 = vpop.permute.xlu0 %1159  ;;  %v1072_v30 = vpop.permute.xlu1 %1071  ;;  %v1366_v23 = vpack.c.bf16 %v1064_v22, %v1022_v31  ;;  %v1174_v31 = vrot.slane %v2809_v63, %v3203_v0  ;;  %v1106_v22 = vmul.f32 %v1098_v38, %v1077_v60 }
 0x69b   :  { %v1079_v28 = vsel %vm510_vm3, %v1070_v21, %v1072_v30  ;;  %v1078_v20 = vsel %vm510_vm3, %v1072_v30, %v1074_v10 }
 0x69c   :  { %1439 = vmatprep.subr.bf16.mxu1 %v1366_v23  ;;  %v1104_v53 = vmul.f32 %v1090_v29, %v1079_v28  ;;  %v1105_v23 = vmul.f32 %v1094_v43, %v1078_v20 }
 0x69d   :  { %1440 = vmatpush1.bf16.msra.mxu1 %v1365_v35 }
 0x69e   :  { %v1158_v33 = vpop.permute.xlu0 %1157  ;;  %v1114_v34 = vpop.permute.xlu1 %1113 }
 0x69f   :  { %v1121_v40 = vsel %vm554_vm4, %v1112_v26, %v1114_v34  ;;  %v1167_v1 = vsel %vm602_vm5, %v1158_v33, %v1160_v19 }
 0x6a0   :  { %v1146_v56 = vmul.f32 %v1132_v27, %v1121_v40  ;;  %v1191_v40 = vmul.f32 %v1174_v31, %v1167_v1 }
 0x6a2   :  { %v1118_v62 = vpop.permute.xlu1 %1117  ;;  %v1368_v58 = vpack.c.bf16 %v1146_v56, %v1104_v53  ;;  %v1202_v21 = vpop.permute.xlu0 %1201  ;;  %v1186_v56 = vrot.slane %v2809_v63, %v3209_v8 }
 0x6a3   :  { %v1122_v39 = vsel %vm554_vm4, %v1118_v62, %v1112_v26 }
 0x6a4   :  { %v1145_v11 = vmul.f32 %v1128_v57, %v1122_v39  ;;  %1400 = vmatprep.subr.bf16.mxu0 %v1368_v58 }
 0x6a6   :  { %v1367_v18 = vpack.c.bf16 %v1145_v11, %v1103_v4  ;;  %v1116_v32 = vpop.permute.xlu1 %1115  ;;  %v1244_v10 = vpop.permute.xlu0 %1243  ;;  %v2810_v4 = vld [vmem:[%s4486_s5 + $0x6] ss:$8 sm:$0xf] }
 0x6a7   :  { %v1119_v26 = vsel %vm554_vm4, %v1116_v32, %v1118_v62  ;;  %v1120_v35 = vsel %vm554_vm4, %v1114_v34, %v1116_v32  ;;  %v1182_v34 = vrot.slane %v2809_v63, %v3207_v7  ;;  %v1371_v62 = vpack.c.bf16 %v1191_v40, %v3405_v15  ;;  %v2811_v63 = vld [vmem:[%s4486_s5 + $0x7] ss:$8 sm:$0xf] }
 0x6a8   :  { %v1147_v24 = vmul.f32 %v1136_v2, %v1120_v35  ;;  %v1148_v29 = vmul.f32 %v1140_v12, %v1119_v26  ;;  %1401 = vmatpush1.bf16.msra.mxu0 %v1367_v18  ;;  %v1262_v60 = vrot.slane %v2811_v63, %v3181_v45  ;;  %v1258_v32 = vrot.slane %v2811_v63, %v3203_v0 }
 0x6aa   :  { %v1369_v30 = vpack.c.bf16 %v1147_v24, %v1105_v23  ;;  %v1162_v27 = vpop.permute.xlu1 %1161  ;;  %v1370_v28 = vpack.c.bf16 %v1148_v29, %v1106_v22  ;;  %v1200_v43 = vpop.permute.xlu0 %1199  ;;  %v1224_v23 = vrot.slane %v2810_v4, %v3207_v7 }
 0x6ab   :  { %v1166_v5 = vsel %vm602_vm5, %v1160_v19, %v1162_v27  ;;  %v1209_v22 = vsel %vm646_vm6, %v1200_v43, %v1202_v21 }
 0x6ac   :  { %v1192_v53 = vmul.f32 %v1178_v55, %v1166_v5  ;;  %1441 = vmatprep.subr.bf16.mxu1 %v1370_v28  ;;  %v1228_v55 = vrot.slane %v2810_v4, %v3209_v8  ;;  %v1270_v28 = vrot.slane %v2811_v63, %v3209_v8 }
 0x6ad   :  { %1442 = vmatpush1.bf16.msra.mxu1 %v1369_v30 }
 0x6ae   :  { %v1164_v57 = vpop.permute.xlu1 %1163  ;;  %v1372_v59 = vpack.c.bf16 %v1192_v53, %v3417_v16  ;;  %v1206_v12 = vpop.permute.xlu0 %1205 }
 0x6af   :  { %v1165_v58 = vsel %vm602_vm5, %v1162_v27, %v1164_v57  ;;  %v1168_v38 = vsel %vm602_vm5, %v1164_v57, %v1158_v33  ;;  %v1220_v33 = vrot.slane %v2810_v4, %v3181_v45  ;;  %v1266_v27 = vrot.slane %v2811_v63, %v3207_v7 }
 0x6b0   :  { %v1193_v19 = vmul.f32 %v1182_v34, %v1165_v58  ;;  %v1194_v39 = vmul.f32 %v1186_v56, %v1168_v38  ;;  %1402 = vmatprep.subr.bf16.mxu0 %v1372_v59  ;;  %v1210_v40 = vsel %vm646_vm6, %v1206_v12, %v1200_v43 }
 0x6b1   :  { %1403 = vmatpush1.bf16.msra.mxu0 %v1371_v62  ;;  %v1236_v62 = vmul.f32 %v1228_v55, %v1210_v40 }
 0x6b2   :  { %v1373_v2 = vpack.c.bf16 %v1193_v19, %v3421_v17  ;;  %v1204_v16 = vpop.permute.xlu1 %1203  ;;  %v1374_v15 = vpack.c.bf16 %v1194_v39, %v3409_v44  ;;  %v1216_v44 = vrot.slane %v2810_v4, %v3203_v0  ;;  %v1284_v29 = vpop.permute.xlu0 %1283 }
 0x6b3   :  { %v1208_v11 = vsel %vm646_vm6, %v1202_v21, %v1204_v16  ;;  %v2812_v21 = vld [vmem:[%s4486_s5 + $0x20] ss:$8 sm:$0xf]  ;;  %v1207_v5 = vsel %vm646_vm6, %v1204_v16, %v1206_v12 }
 0x6b4   :  { %1443 = vmatprep.subr.bf16.mxu1 %v1374_v15  ;;  %v1234_v31 = vmul.f32 %v1220_v33, %v1208_v11  ;;  %v1233_v24 = vmul.f32 %v1216_v44, %v1209_v22  ;;  %v1300_v57 = vrot.slane %v2812_v21, %v3203_v0  ;;  %v1304_v59 = vrot.slane %v2812_v21, %v3181_v45 }
 0x6b5   :  { %1444 = vmatpush1.bf16.msra.mxu1 %v1373_v2  ;;  %v1235_v58 = vmul.f32 %v1224_v23, %v1207_v5  ;;  %v1312_v11 = vrot.slane %v2812_v21, %v3209_v8 }
 0x6b6   :  { %v1246_v20 = vpop.permute.xlu1 %1245  ;;  %v1288_v43 = vpop.permute.xlu0 %1287 }
 0x6b7   :  { %v1250_v17 = vsel %vm690_vm7, %v1244_v10, %v1246_v20 }
 0x6b8   :  { %v1276_v18 = vmul.f32 %v1262_v60, %v1250_v17  ;;  %v1308_v60 = vrot.slane %v2812_v21, %v3207_v7 }
 0x6ba   :  { %v1242_v26 = vpop.permute.xlu1 %1241  ;;  %v1376_v35 = vpack.c.bf16 %v1276_v18, %v1234_v31 }
 0x6bb   :  { %v1251_v1 = vsel %vm690_vm7, %v1242_v26, %v1244_v10 }
 0x6bc   :  { %v1275_v30 = vmul.f32 %v1258_v32, %v1251_v1  ;;  %1404 = vmatprep.subr.bf16.mxu0 %v1376_v35 }
 0x6be   :  { %v1375_v53 = vpack.c.bf16 %v1275_v30, %v1233_v24  ;;  %v1248_v10 = vpop.permute.xlu1 %1247 }
 0x6bf   :  { %v1249_v34 = vsel %vm690_vm7, %v1246_v20, %v1248_v10  ;;  %v1252_v56 = vsel %vm690_vm7, %v1248_v10, %v1242_v26  ;;  %v2813_v26 = vld [vmem:[%s4487_s2 + $0x4] sm:$0xf] }
 0x6c0   :  { %v1277_v38 = vmul.f32 %v1266_v27, %v1249_v34  ;;  %v1278_v19 = vmul.f32 %v1270_v28, %v1252_v56  ;;  %1405 = vmatpush1.bf16.msra.mxu0 %v1375_v53 }
 0x6c2   :  { %v1377_v39 = vpack.c.bf16 %v1277_v38, %v1235_v58  ;;  %v1286_v63 = vpop.permute.xlu1 %1285  ;;  %v1378_v2 = vpack.c.bf16 %v1278_v19, %v1236_v62 }
 0x6c3   :  { %v1292_v16 = vsel %vm734_vm8, %v1286_v63, %v1288_v43  ;;  %v1293_v15 = vsel %vm734_vm8, %v1284_v29, %v1286_v63 }
 0x6c4   :  { %v1317_v4 = vmul.f32 %v1300_v57, %v1293_v15  ;;  %v1318_v33 = vmul.f32 %v1304_v59, %v1292_v16  ;;  %1445 = vmatprep.subr.bf16.mxu1 %v1378_v2  ;;  %v203_v15 = vld [vmem:[%s4485_s4 + $0x18] sm:$0xff] }
 0x6c5   :  { %1446 = vmatpush1.bf16.msra.mxu1 %v1377_v39 }
 0x6c6   :  { %v1379_v12 = vpack.c.bf16 %v1317_v4, %v1317_v4  ;;  %v1380_v20 = vpack.c.bf16 %v1318_v33, %v1318_v33  ;;  %v1290_v17 = vpop.permute.xlu1 %1289  ;;  %v207_v33 = vld [vmem:[%s4485_s4 + $0x38] sm:$0xff] }
 0x6c7   :  { %v1291_v44 = vsel %vm734_vm8, %v1288_v43, %v1290_v17  ;;  %v1294_v31 = vsel %vm734_vm8, %v1290_v17, %v1284_v29 }
 0x6c8   :  { %v1319_v18 = vmul.f32 %v1308_v60, %v1291_v44  ;;  %v1320_v32 = vmul.f32 %v1312_v11, %v1294_v31  ;;  %2814 = vmatprep.subr.msk.bf16.mxu0 %vm831_vm9, %v1380_v20  ;;  %v1387_v22 = vsel %vm831_vm9, %v1379_v12, 0  ;;  %v1481_v60 = vld [vmem:[%s4485_s4 + $0x60] sm:$0xff] }
 0x6c9   :  { %1407 = vmatpush1.bf16.msra.mxu0 %v1387_v22 }
 0x6ca   :  { %v1381_v35 = vpack.c.bf16 %v1319_v18, %v1319_v18  ;;  %v1382_v55 = vpack.c.bf16 %v1320_v32, %v1320_v32 }
 0x6cc   :  { %2815 = vmatmul.mubr.msk.bf16.vlgmr.msra.gmra.mrb[12].mxu0 %vm827_vm10, %v2813_v26  ;;  %2816 = vmatprep.subr.msk.bf16.mxu1 %vm831_vm9, %v1382_v55  ;;  %v1393_v23 = vsel %vm831_vm9, %v1381_v35, 0 }
 0x6cd   :  { %1448 = vmatpush1.bf16.msra.mxu1 %v1393_v23  ;;  %1984 = vmatprep.mubr.bf16.mxu0 %v2921_v3 }
 0x6d0   :  { %2817 = vmatmul.mubr.msk.bf16.vlgmr.msra.gmra.mrb[12].mxu1 %vm827_vm10, %v2813_v26 }
 0x6d1   :  { %2025 = vmatprep.mubr.bf16.mxu1 %v2921_v3 }
 0x6f0   :  { %v227_v1 = vpop.xlane.xlu0 %226 }
 0x6f1   :  { %v232_v24 = vmul.f32 0.001953125, %v227_v1 }
 0x6f3   :  { %v245_v29 = vsub.f32 %v3229_v36, %v232_v24  ;;  %v246_v30 = vsub.f32 %v3236_v46, %v232_v24  ;;  %v3622_v27 = vsub.f32 %v3231_v37, %v232_v24  ;;  %v3625_v28 = vsub.f32 %v3238_v47, %v232_v24 }
 0x6f5   :  { %v261_v21 = vmul.f32 %v245_v29, %v245_v29  ;;  %v262_v40 = vmul.f32 %v246_v30, %v246_v30  ;;  %v263_v5 = vmul.f32 %v3622_v27, %v3622_v27  ;;  %v264_v10 = vmul.f32 %v3625_v28, %v3625_v28 }
 0x6f7   :  { %v280_v53 = vadd.f32 %v262_v40, %v261_v21  ;;  %v1480_v40 = vld [vmem:[%s4485_s4 + $0x48] sm:$0xff] }
 0x6f9   :  { %v281_v34 = vadd.f32 %v280_v53, %v263_v5 }
 0x6fb   :  { %v282_v56 = vadd.f32 %v281_v34, %v264_v10 }
 0x6fd   :  { %283 = vadd.xlane.f32.xlu0 %v282_v56 }
 0x78a   :  { %v284_v36 = vpop.xlane.xlu0 %283 }
 0x78b   :  { %v288_v62 = vmul.f32 0.001953125, %v284_v36 }
 0x78d   :  { %v292_v39 = vadd.f32 1e-05, %v288_v62 }
 0x78f   :  { %2897 = vrsqrt.f32 %v292_v39 }
 0x799   :  { %v2898_v16 = vpop.eup %2897 }
 0x79a   :  { %v300_v4 = vmul.f32 %v2898_v16, %v203_v15 }
 0x79f   :  { %v1432_v46 = vpop.f32.mrb[12].mxu0 }
 0x7a0   :  { %v1434_v57 = vpop.f32.mrb[13].mxu0 }
 0x7a1   :  { %v1482_v37 = vadd.f32 %v1434_v57, %v1432_v46  ;;  %v1436_v59 = vpop.f32.mrb[14].mxu0 }
 0x7a2   :  { %v1437_v47 = vpop.f32.mrb[15].mxu0 }
 0x7a3   :  { %v1473_v58 = vpop.f32.mrb[12].mxu1 }
 0x7a4   :  { %v1483_v38 = vadd.f32 %v1482_v37, %v1473_v58  ;;  %v1475_v19 = vpop.f32.mrb[13].mxu1 }
 0x7a5   :  { %v1477_v43 = vpop.f32.mrb[14].mxu1 }
 0x7a6   :  { %v1478_v63 = vpop.f32.mrb[15].mxu1  ;;  %v1484_v2 = vadd.f32 %v1483_v38, %v1475_v19 }
 0x7a8   :  { %1485 = vadd.xlane.f32.xlu1 %v1484_v2 }
 0x7b9   :  { %318 = vperm.xlu1 %2883, %v300_v4  }
 0x7bd   :  { %354 = vperm.xlu1 %2883, %v207_v33  }
 0x7c1   :  { %1516 = vperm.xlu1 %2883, %v1481_v60  }
 0x835   :  { %v1486_v11 = vpop.xlane.xlu1 %1485 }
 0x836   :  { %v1487_v12 = vmul.f32 0.001953125, %v1486_v11 }
 0x838   :  { %v1488_v20 = vsub.f32 %v1432_v46, %v1487_v12  ;;  %v1489_v17 = vsub.f32 %v1434_v57, %v1487_v12  ;;  %v1490_v44 = vsub.f32 %v1473_v58, %v1487_v12  ;;  %v1491_v31 = vsub.f32 %v1475_v19, %v1487_v12 }
 0x839   :  { %v319_v10 = vpop.permute.xlu1 %318 }
 0x83a   :  { %v1492_v18 = vmul.f32 %v1488_v20, %v1488_v20  ;;  %v1493_v32 = vmul.f32 %v1489_v17, %v1489_v17  ;;  %v1494_v22 = vmul.f32 %v1490_v44, %v1490_v44  ;;  %v1495_v35 = vmul.f32 %v1491_v31, %v1491_v31 }
 0x83b   :  { %v333_v56 = vmul.f32 %v319_v10, %v245_v29  ;;  %v334_v36 = vmul.f32 %v319_v10, %v246_v30  ;;  %v336_v29 = vmul.f32 %v319_v10, %v3625_v28  ;;  %v335_v28 = vmul.f32 %v319_v10, %v3622_v27 }
 0x83c   :  { %v1496_v26 = vadd.f32 %v1493_v32, %v1492_v18  ;;  %v1551_v18 = vld [vmem:[%s4486_s5] ss:$8 sm:$0xf]  ;;  %v2818_v32 = vld [vmem:[%s4486_s5 + $0x1] ss:$8 sm:$0xf] }
 0x83d   :  { %v355_v34 = vpop.permute.xlu1 %354 }
 0x83e   :  { %v1497_v55 = vadd.f32 %v1496_v26, %v1494_v22  ;;  %v369_v57 = vadd.f32 %v355_v34, %v333_v56  ;;  %v370_v37 = vadd.f32 %v355_v34, %v334_v36  ;;  %v372_v33 = vadd.f32 %v355_v34, %v336_v29 }
 0x83f   :  { %v371_v12 = vadd.f32 %v355_v34, %v335_v28 }
 0x840   :  { %v1498_v23 = vadd.f32 %v1497_v55, %v1495_v35  ;;  %v385_v43 = vmax.f32 %v369_v57, 0.0  ;;  %v386_v39 = vmax.f32 %v370_v37, 0.0  ;;  %v1560_v35 = vrot.slane %v1551_v18, %v3181_v45 }
 0x841   :  { %v1517_v47 = vpop.permute.xlu1 %1516  ;;  %v1602_v55 = vrot.slane %v2818_v32, %v3181_v45  ;;  %v1606_v57 = vrot.slane %v2818_v32, %v3207_v7  ;;  %v1610_v37 = vrot.slane %v2818_v32, %v3209_v8 }
 0x842   :  { %1499 = vadd.xlane.f32.xlu0 %v1498_v23 }
 0x8cf   :  { %v1500_v1 = vpop.xlane.xlu0 %1499 }
 0x8d0   :  { %v1501_v24 = vmul.f32 0.001953125, %v1500_v1 }
 0x8d2   :  { %v1502_v21 = vadd.f32 1e-05, %v1501_v24 }
 0x8d4   :  { %2899 = vrsqrt.f32 %v1502_v21 }
 0x8de   :  { %v2900_v5 = vpop.eup %2899 }
 0x8df   :  { %v1504_v53 = vmul.f32 %v2900_v5, %v1480_v40  ;;  %v1598_v5 = vrot.slane %v2818_v32, %v3203_v0 }
 0x8e1   :  { %1507 = vperm.xlu0 %2884, %v1504_v53   ;;  %v1556_v53 = vrot.slane %v1551_v18, %v3203_v0 }
 0x960   :  { %v1508_v46 = vpop.permute.xlu0 %1507 }
 0x961   :  { %v1510_v59 = vmul.f32 %v1508_v46, %v1488_v20  ;;  %v1511_v62 = vmul.f32 %v1508_v46, %v1489_v17  ;;  %v1513_v58 = vmul.f32 %v1508_v46, %v1491_v31  ;;  %v1512_v30 = vmul.f32 %v1508_v46, %v1490_v44 }
 0x962   :  { %v388_v20 = vmax.f32 %v372_v33, 0.0  ;;  %v387_v31 = vmax.f32 %v371_v12, 0.0 }
 0x963   :  { %v3643_v38 = vadd.f32 %v1517_v47, %v1510_v59  ;;  %v3645_v19 = vadd.f32 %v1517_v47, %v1511_v62  ;;  %v3650_v16 = vadd.f32 %v1517_v47, %v1513_v58  ;;  %v3665_v60 = vadd.f32 %v1517_v47, %v1512_v30 }
 0x964   :  { %v1564_v47 = vrot.slane %v1551_v18, %v3207_v7  ;;  %v1568_v58 = vrot.slane %v1551_v18, %v3209_v8  ;;  %v2819_v18 = vld [vmem:[%s4486_s5 + $0x2] ss:$8 sm:$0xf] }
 0x965   :  { %v1523_v63 = vmax.f32 %v3643_v38, 0.0  ;;  %v1524_v2 = vmax.f32 %v3645_v19, 0.0  ;;  %v1526_v11 = vmax.f32 %v3650_v16, 0.0  ;;  %v1525_v17 = vmax.f32 %v3665_v60, 0.0  ;;  %v2888_v38 = vld [vmem:[%s4488_s3 + $0x8] sm:$0xff]   ;;  %v2889_v19 = vld [vmem:[%s4488_s3 + $0x10] sm:$0xff]  }
 0x967   :  { %v3654_v15 = vadd.f32 %v1523_v63, %v385_v43  ;;  %v3658_v4 = vadd.f32 %v1524_v2, %v386_v39  ;;  %v3675_v44 = vadd.f32 %v1526_v11, %v388_v20  ;;  %v3683_v27 = vadd.f32 %v1525_v17, %v387_v31 }
 0x969   :  { %1541 = vrot.lane.b32.xlu1 %v3658_v4, %s2922_s1  ;;  %1539 = vrot.lane.b32.xlu0 %v3654_v15, %s2922_s1 }
 0x96d   :  { %1583 = vrot.lane.b32.xlu1 %v3658_v4, %s2923_s21  ;;  %1581 = vrot.lane.b32.xlu0 %v3654_v15, %s2923_s21 }
 0x971   :  { %1587 = vrot.lane.b32.xlu1 %v3675_v44, %s2923_s21  ;;  %1545 = vrot.lane.b32.xlu0 %v3675_v44, %s2922_s1 }
 0x975   :  { %1585 = vrot.lane.b32.xlu1 %v3683_v27, %s2923_s21  ;;  %1543 = vrot.lane.b32.xlu0 %v3683_v27, %s2922_s1 }
 0x979   :  { %1625 = vrot.lane.b32.xlu1 %v3658_v4, %s2924_s22  ;;  %1623 = vrot.lane.b32.xlu0 %v3654_v15, %s2924_s22 }
 0x97d   :  { %1667 = vrot.lane.b32.xlu1 %v3658_v4, %s2925_s23  ;;  %1665 = vrot.lane.b32.xlu0 %v3654_v15, %s2925_s23 }
 0x981   :  { %1671 = vrot.lane.b32.xlu1 %v3675_v44, %s2925_s23  ;;  %1629 = vrot.lane.b32.xlu0 %v3675_v44, %s2924_s22 }
 0x985   :  { %1669 = vrot.lane.b32.xlu1 %v3683_v27, %s2925_s23  ;;  %1627 = vrot.lane.b32.xlu0 %v3683_v27, %s2924_s22 }
 0x989   :  { %1715 = vrot.lane.b32.xlu1 %v3683_v27, %s2926_s24  ;;  %1713 = vrot.lane.b32.xlu0 %v3658_v4, %s2926_s24 }
 0x98d   :  { %1717 = vrot.lane.b32.xlu1 %v3675_v44, %s2926_s24  ;;  %1711 = vrot.lane.b32.xlu0 %v3654_v15, %s2926_s24 }
 0x991   :  { %1757 = vrot.lane.b32.xlu1 %v3683_v27, %s2927_s25  ;;  %1755 = vrot.lane.b32.xlu0 %v3658_v4, %s2927_s25 }
 0x995   :  { %1799 = vrot.lane.b32.xlu1 %v3683_v27, %s2928_s26  ;;  %1797 = vrot.lane.b32.xlu0 %v3658_v4, %s2928_s26 }
 0x999   :  { %1795 = vrot.lane.b32.xlu1 %v3654_v15, %s2928_s26  ;;  %1753 = vrot.lane.b32.xlu0 %v3654_v15, %s2927_s25 }
 0x99d   :  { %1801 = vrot.lane.b32.xlu1 %v3675_v44, %s2928_s26  ;;  %1759 = vrot.lane.b32.xlu0 %v3675_v44, %s2927_s25 }
 0x9a1   :  { %1839 = vrot.lane.b32.xlu1 %v3658_v4, %s2929_s27  ;;  %1837 = vrot.lane.b32.xlu0 %v3654_v15, %s2929_s27 }
 0x9a5   :  { %1843 = vrot.lane.b32.xlu1 %v3675_v44, %s2929_s27  ;;  %1841 = vrot.lane.b32.xlu0 %v3683_v27, %s2929_s27 }
 0x9c4   :  { %211 = vadd.xlane.f32.xlu0 %v3084_v61 }
 0x9db   :  { %v1542_v22 = vpop.permute.xlu1 %1541  ;;  %v1540_v26 = vpop.permute.xlu0 %1539 }
 0x9dc   :  { %v1549_v23 = vsel %vm423_vm1, %v1540_v26, %v1542_v22 }
 0x9dd   :  { %v1574_v21 = vmul.f32 %v1560_v35, %v1549_v23  ;;  %v2820_v35 = vld [vmem:[%s4486_s5 + $0x3] ss:$8 sm:$0xf] }
 0x9df   :  { %v1584_v1 = vpop.permute.xlu1 %1583  ;;  %v1582_v24 = vpop.permute.xlu0 %1581 }
 0x9e0   :  { %v1591_v61 = vsel %vm466_vm2, %v1582_v24, %v1584_v1 }
 0x9e1   :  { %v1616_v40 = vmul.f32 %v1602_v55, %v1591_v61  ;;  %v1644_v61 = vrot.slane %v2819_v18, %v3181_v45 }
 0x9e3   :  { %v1588_v10 = vpop.permute.xlu1 %1587  ;;  %v1546_v34 = vpop.permute.xlu0 %1545  ;;  %v1918_v56 = vpack.c.bf16 %v1616_v40, %v1574_v21 }
 0x9e4   :  { %v1592_v36 = vsel %vm466_vm2, %v1588_v10, %v1582_v24  ;;  %v1550_v46 = vsel %vm423_vm1, %v1546_v34, %v1540_v26 }
 0x9e5   :  { %v1615_v59 = vmul.f32 %v1598_v5, %v1592_v36  ;;  %v1573_v62 = vmul.f32 %v1556_v53, %v1550_v46  ;;  %1952 = vmatprep.subr.bf16.mxu0 %v1918_v56  ;;  %v1682_v56 = vrot.slane %v2820_v35, %v3203_v0  ;;  %v1640_v36 = vrot.slane %v2819_v18, %v3203_v0 }
 0x9e7   :  { %v1917_v43 = vpack.c.bf16 %v1615_v59, %v1573_v62  ;;  %v1586_v39 = vpop.permute.xlu1 %1585  ;;  %v1544_v29 = vpop.permute.xlu0 %1543 }
 0x9e8   :  { %v1589_v30 = vsel %vm466_vm2, %v1586_v39, %v1588_v10  ;;  %v1590_v33 = vsel %vm466_vm2, %v1584_v1, %v1586_v39  ;;  %v1547_v28 = vsel %vm423_vm1, %v1544_v29, %v1546_v34  ;;  %v1548_v12 = vsel %vm423_vm1, %v1542_v22, %v1544_v29 }
 0x9e9   :  { %v1617_v20 = vmul.f32 %v1606_v57, %v1590_v33  ;;  %v1618_v31 = vmul.f32 %v1610_v37, %v1589_v30  ;;  %v1575_v32 = vmul.f32 %v1564_v47, %v1548_v12  ;;  %v1576_v26 = vmul.f32 %v1568_v58, %v1547_v28  ;;  %1953 = vmatpush1.bf16.msra.mxu0 %v1917_v43  ;;  %v2821_v43 = vld [vmem:[%s4486_s5 + $0x5] ss:$8 sm:$0xf] }
 0x9ea   :  { %v1686_v22 = vrot.slane %v2820_v35, %v3181_v45  ;;  %v1690_v47 = vrot.slane %v2820_v35, %v3207_v7  ;;  %v1694_v58 = vrot.slane %v2820_v35, %v3209_v8  ;;  %v1648_v30 = vrot.slane %v2819_v18, %v3207_v7 }
 0x9eb   :  { %v1919_v55 = vpack.c.bf16 %v1617_v20, %v1575_v32  ;;  %v1626_v23 = vpop.permute.xlu1 %1625  ;;  %v1624_v1 = vpop.permute.xlu0 %1623  ;;  %v1920_v24 = vpack.c.bf16 %v1618_v31, %v1576_v26  ;;  %v1652_v33 = vrot.slane %v2819_v18, %v3209_v8  ;;  %v1732_v31 = vrot.slane %v2821_v43, %v3181_v45 }
 0x9ec   :  { %v1633_v21 = vsel %vm510_vm3, %v1624_v1, %v1626_v23 }
 0x9ed   :  { %1993 = vmatprep.subr.bf16.mxu1 %v1920_v24  ;;  %v1658_v10 = vmul.f32 %v1644_v61, %v1633_v21 }
 0x9ee   :  { %1994 = vmatpush1.bf16.msra.mxu1 %v1919_v55 }
 0x9ef   :  { %v1668_v40 = vpop.permute.xlu1 %1667  ;;  %v1666_v5 = vpop.permute.xlu0 %1665 }
 0x9f0   :  { %v1675_v53 = vsel %vm554_vm4, %v1666_v5, %v1668_v40 }
 0x9f1   :  { %v1700_v34 = vmul.f32 %v1686_v22, %v1675_v53 }
 0x9f3   :  { %v1672_v46 = vpop.permute.xlu1 %1671  ;;  %v1630_v57 = vpop.permute.xlu0 %1629  ;;  %v1922_v37 = vpack.c.bf16 %v1700_v34, %v1658_v10 }
 0x9f4   :  { %v1676_v59 = vsel %vm554_vm4, %v1672_v46, %v1666_v5  ;;  %v1634_v62 = vsel %vm510_vm3, %v1630_v57, %v1624_v1 }
 0x9f5   :  { %v1699_v39 = vmul.f32 %v1682_v56, %v1676_v59  ;;  %v1657_v29 = vmul.f32 %v1640_v36, %v1634_v62  ;;  %1954 = vmatprep.subr.bf16.mxu0 %v1922_v37  ;;  %v1728_v56 = vrot.slane %v2821_v43, %v3203_v0 }
 0x9f7   :  { %v1921_v28 = vpack.c.bf16 %v1699_v39, %v1657_v29  ;;  %v1670_v12 = vpop.permute.xlu1 %1669  ;;  %v1628_v20 = vpop.permute.xlu0 %1627 }
 0x9f8   :  { %v1673_v32 = vsel %vm554_vm4, %v1670_v12, %v1672_v46  ;;  %v1674_v26 = vsel %vm554_vm4, %v1668_v40, %v1670_v12  ;;  %v1631_v35 = vsel %vm510_vm3, %v1628_v20, %v1630_v57  ;;  %v1632_v55 = vsel %vm510_vm3, %v1626_v23, %v1628_v20 }
 0x9f9   :  { %v1701_v1 = vmul.f32 %v1690_v47, %v1674_v26  ;;  %v1702_v24 = vmul.f32 %v1694_v58, %v1673_v32  ;;  %v1659_v18 = vmul.f32 %v1648_v30, %v1632_v55  ;;  %v1660_v61 = vmul.f32 %v1652_v33, %v1631_v35  ;;  %1955 = vmatpush1.bf16.msra.mxu0 %v1921_v28 }
 0x9fa   :  { %v1736_v40 = vrot.slane %v2821_v43, %v3207_v7  ;;  %v1740_v23 = vrot.slane %v2821_v43, %v3209_v8  ;;  %v2822_v43 = vld [vmem:[%s4486_s5 + $0x6] ss:$8 sm:$0xf] }
 0x9fb   :  { %v1923_v22 = vpack.c.bf16 %v1701_v1, %v1659_v18  ;;  %v1716_v21 = vpop.permute.xlu1 %1715  ;;  %v1714_v5 = vpop.permute.xlu0 %1713  ;;  %v1924_v53 = vpack.c.bf16 %v1702_v24, %v1660_v61  ;;  %v1774_v20 = vrot.slane %v2822_v43, %v3181_v45 }
 0x9fc   :  { %v1720_v10 = vsel %vm602_vm5, %v1714_v5, %v1716_v21 }
 0x9fd   :  { %v1746_v34 = vmul.f32 %v1732_v31, %v1720_v10  ;;  %1995 = vmatprep.subr.bf16.mxu1 %v1924_v53  ;;  %v2824_v10 = vld [vmem:[%s4486_s5 + $0x20] ss:$8 sm:$0xf] }
 0x9fe   :  { %1996 = vmatpush1.bf16.msra.mxu1 %v1923_v22 }
 0x9ff   :  { %v1718_v36 = vpop.permute.xlu1 %1717  ;;  %v1712_v46 = vpop.permute.xlu0 %1711  ;;  %v1926_v57 = vpack.c.bf16 %v1746_v34, %v3658_v4  ;;  %v2823_v4 = vld [vmem:[%s4486_s5 + $0x7] ss:$8 sm:$0xf] }
 0xa00   :  { %v1719_v37 = vsel %vm602_vm5, %v1716_v21, %v1718_v36  ;;  %v1721_v59 = vsel %vm602_vm5, %v1712_v46, %v1714_v5  ;;  %v1722_v62 = vsel %vm602_vm5, %v1718_v36, %v1712_v46  ;;  %v1816_v31 = vrot.slane %v2823_v4, %v3181_v45 }
 0xa01   :  { %v1747_v47 = vmul.f32 %v1736_v40, %v1719_v37  ;;  %v1745_v58 = vmul.f32 %v1728_v56, %v1721_v59  ;;  %v1748_v39 = vmul.f32 %v1740_v23, %v1722_v62  ;;  %1956 = vmatprep.subr.bf16.mxu0 %v1926_v57  ;;  %v1812_v1 = vrot.slane %v2823_v4, %v3203_v0 }
 0xa02   :  { %v1820_v5 = vrot.slane %v2823_v4, %v3207_v7  ;;  %v1824_v53 = vrot.slane %v2823_v4, %v3209_v8  ;;  %v1778_v56 = vrot.slane %v2822_v43, %v3207_v7  ;;  %v1782_v23 = vrot.slane %v2822_v43, %v3209_v8 }
 0xa03   :  { %v1927_v29 = vpack.c.bf16 %v1747_v47, %v3683_v27  ;;  %v1925_v30 = vpack.c.bf16 %v1745_v58, %v3654_v15  ;;  %v1758_v33 = vpop.permute.xlu1 %1757  ;;  %v1756_v28 = vpop.permute.xlu0 %1755  ;;  %v1928_v12 = vpack.c.bf16 %v1748_v39, %v3675_v44  ;;  %v1770_v44 = vrot.slane %v2822_v43, %v3203_v0 }
 0xa04   :  { %v1762_v32 = vsel %vm646_vm6, %v1756_v28, %v1758_v33  ;;  %v1854_v37 = vrot.slane %v2824_v10, %v3203_v0 }
 0xa05   :  { %1957 = vmatpush1.bf16.msra.mxu0 %v1925_v30  ;;  %1997 = vmatprep.subr.bf16.mxu1 %v1928_v12  ;;  %v1788_v15 = vmul.f32 %v1774_v20, %v1762_v32  ;;  %v1866_v32 = vrot.slane %v2824_v10, %v3209_v8 }
 0xa06   :  { %1998 = vmatpush1.bf16.msra.mxu1 %v1927_v29 }
 0xa07   :  { %v1800_v26 = vpop.permute.xlu1 %1799  ;;  %v1798_v35 = vpop.permute.xlu0 %1797 }
 0xa08   :  { %v1804_v27 = vsel %vm690_vm7, %v1798_v35, %v1800_v26 }
 0xa09   :  { %v1830_v55 = vmul.f32 %v1816_v31, %v1804_v27 }
 0xa0b   :  { %v1796_v24 = vpop.permute.xlu1 %1795  ;;  %v1754_v18 = vpop.permute.xlu0 %1753  ;;  %v1930_v61 = vpack.c.bf16 %v1830_v55, %v1788_v15 }
 0xa0c   :  { %v1805_v22 = vsel %vm690_vm7, %v1796_v24, %v1798_v35  ;;  %v1763_v21 = vsel %vm646_vm6, %v1754_v18, %v1756_v28 }
 0xa0d   :  { %v1829_v34 = vmul.f32 %v1812_v1, %v1805_v22  ;;  %v1787_v40 = vmul.f32 %v1770_v44, %v1763_v21  ;;  %1958 = vmatprep.subr.bf16.mxu0 %v1930_v61 }
 0xa0f   :  { %v1929_v36 = vpack.c.bf16 %v1829_v34, %v1787_v40  ;;  %v1802_v46 = vpop.permute.xlu1 %1801  ;;  %v1760_v57 = vpop.permute.xlu0 %1759 }
 0xa10   :  { %v1803_v59 = vsel %vm690_vm7, %v1800_v26, %v1802_v46  ;;  %v1806_v62 = vsel %vm690_vm7, %v1802_v46, %v1796_v24  ;;  %v1761_v47 = vsel %vm646_vm6, %v1758_v33, %v1760_v57  ;;  %v1764_v58 = vsel %vm646_vm6, %v1760_v57, %v1754_v18 }
 0xa11   :  { %v1831_v39 = vmul.f32 %v1820_v5, %v1803_v59  ;;  %v1832_v4 = vmul.f32 %v1824_v53, %v1806_v62  ;;  %v1789_v43 = vmul.f32 %v1778_v56, %v1761_v47  ;;  %v1790_v29 = vmul.f32 %v1782_v23, %v1764_v58  ;;  %1959 = vmatpush1.bf16.msra.mxu0 %v1929_v36 }
 0xa12   :  { %v1858_v33 = vrot.slane %v2824_v10, %v3181_v45  ;;  %v1862_v26 = vrot.slane %v2824_v10, %v3207_v7 }
 0xa13   :  { %v1931_v30 = vpack.c.bf16 %v1831_v39, %v1789_v43  ;;  %v1840_v28 = vpop.permute.xlu1 %1839  ;;  %v1838_v0 = vpop.permute.xlu0 %1837  ;;  %v1932_v12 = vpack.c.bf16 %v1832_v4, %v1790_v29 }
 0xa14   :  { %v1847_v20 = vsel %vm734_vm8, %v1838_v0, %v1840_v28 }
 0xa15   :  { %v1871_v31 = vmul.f32 %v1854_v37, %v1847_v20  ;;  %1999 = vmatprep.subr.bf16.mxu1 %v1932_v12 }
 0xa16   :  { %2000 = vmatpush1.bf16.msra.mxu1 %v1931_v30 }
 0xa17   :  { %v1844_v35 = vpop.permute.xlu1 %1843  ;;  %v1842_v27 = vpop.permute.xlu0 %1841  ;;  %v1933_v44 = vpack.c.bf16 %v1871_v31, %v1871_v31  ;;  %v200_v31 = vld [vmem:[%s4485_s4] sm:$0xff] }
 0xa18   :  { %v1848_v15 = vsel %vm734_vm8, %v1844_v35, %v1838_v0  ;;  %v1845_v55 = vsel %vm734_vm8, %v1842_v27, %v1844_v35  ;;  %v1846_v1 = vsel %vm734_vm8, %v1840_v28, %v1842_v27 }
 0xa19   :  { %v1874_v24 = vmul.f32 %v1866_v32, %v1848_v15  ;;  %v1872_v18 = vmul.f32 %v1858_v33, %v1846_v1  ;;  %v1873_v8 = vmul.f32 %v1862_v26, %v1845_v55  ;;  %v1941_v7 = vsel %vm831_vm9, %v1933_v44, 0 }
 0xa1b   :  { %v1936_v61 = vpack.c.bf16 %v1874_v24, %v1874_v24  ;;  %v1934_v45 = vpack.c.bf16 %v1872_v18, %v1872_v18  ;;  %v1935_v22 = vpack.c.bf16 %v1873_v8, %v1873_v8 }
 0xa1d   :  { %2826 = vmatprep.subr.msk.bf16.mxu0 %vm831_vm9, %v1934_v45  ;;  %2828 = vmatprep.subr.msk.bf16.mxu1 %vm831_vm9, %v1936_v61  ;;  %v1947_v21 = vsel %vm831_vm9, %v1935_v22, 0  ;;  %v204_v22 = vld [vmem:[%s4485_s4 + $0x20] sm:$0xff] }
 0xa1e   :  { %1961 = vmatpush1.bf16.msra.mxu0 %v1941_v7  ;;  %2002 = vmatpush1.bf16.msra.mxu1 %v1947_v21 }
 0xa21   :  { %2827 = vmatmul.mubr.msk.bf16.vlgmr.msra.gmra.mrb[16].mxu0 %vm827_vm10, %v2825_v41  ;;  %2829 = vmatmul.mubr.msk.bf16.vlgmr.msra.gmra.mrb[16].mxu1 %vm827_vm10, %v2825_v41 }
 0xa22   :  { %2182 = vmatprep.mubr.bf16.mxu0 %v2921_v3  ;;  %2255 = vmatprep.mubr.bf16.mxu1 %v2921_v3 }
 0xa51   :  { %v212_v5 = vpop.xlane.xlu0 %211 }
 0xa52   :  { %v229_v53 = vmul.f32 0.001953125, %v212_v5 }
 0xa54   :  { %v233_v10 = vsub.f32 %v3072_v50, %v229_v53  ;;  %v234_v34 = vsub.f32 %v3076_v52, %v229_v53  ;;  %v235_v40 = vsub.f32 %v3074_v51, %v229_v53  ;;  %v236_v56 = vsub.f32 %v3080_v54, %v229_v53 }
 0xa56   :  { %v249_v23 = vmul.f32 %v233_v10, %v233_v10  ;;  %v250_v36 = vmul.f32 %v234_v34, %v234_v34  ;;  %v251_v46 = vmul.f32 %v235_v40, %v235_v40  ;;  %v252_v37 = vmul.f32 %v236_v56, %v236_v56 }
 0xa58   :  { %v265_v57 = vadd.f32 %v250_v36, %v249_v23 }
 0xa5a   :  { %v266_v59 = vadd.f32 %v265_v57, %v251_v46 }
 0xa5c   :  { %v267_v62 = vadd.f32 %v266_v59, %v252_v37 }
 0xa5e   :  { %268 = vadd.xlane.f32.xlu0 %v267_v62 }
 0xaeb   :  { %v269_v47 = vpop.xlane.xlu0 %268 }
 0xaec   :  { %v285_v50 = vmul.f32 0.001953125, %v269_v47 }
 0xaee   :  { %v289_v0 = vadd.f32 1e-05, %v285_v50 }
 0xaf0   :  { %2901 = vrsqrt.f32 %v289_v0 }
 0xaf4   :  { %v1986_v58 = vpop.f32.mrb[16].mxu0  ;;  %v2027_v39 = vpop.f32.mrb[16].mxu1 }
 0xaf5   :  { %v1988_v4 = vpop.f32.mrb[17].mxu0  ;;  %v2029_v43 = vpop.f32.mrb[17].mxu1 }
 0xaf6   :  { %v2036_v29 = vadd.f32 %v1988_v4, %v1986_v58  ;;  %v1990_v52 = vpop.f32.mrb[18].mxu0  ;;  %v2031_v30 = vpop.f32.mrb[18].mxu1 }
 0xaf7   :  { %v1991_v51 = vpop.f32.mrb[19].mxu0  ;;  %v2032_v28 = vpop.f32.mrb[19].mxu1 }
 0xaf8   :  { %v2037_v54 = vadd.f32 %v2036_v29, %v2027_v39 }
 0xafa   :  { %v2038_v12 = vadd.f32 %v2037_v54, %v2029_v43  ;;  %v2902_v20 = vpop.eup %2901 }
 0xafb   :  { %v297_v32 = vmul.f32 %v2902_v20, %v200_v31 }
 0xafc   :  { %2039 = vadd.xlane.f32.xlu1 %v2038_v12 }
 0xb0d   :  { %303 = vperm.xlu1 %2883, %v297_v32  }
 0xb89   :  { %v2040_v33 = vpop.xlane.xlu1 %2039 }
 0xb8a   :  { %v2041_v26 = vmul.f32 0.001953125, %v2040_v33 }
 0xb8c   :  { %v2042_v35 = vsub.f32 %v1986_v58, %v2041_v26  ;;  %v2043_v27 = vsub.f32 %v1988_v4, %v2041_v26  ;;  %v2044_v15 = vsub.f32 %v2027_v39, %v2041_v26  ;;  %v2045_v55 = vsub.f32 %v2029_v43, %v2041_v26 }
 0xb8d   :  { %v304_v5 = vpop.permute.xlu1 %303 }
 0xb8e   :  { %v2046_v1 = vmul.f32 %v2042_v35, %v2042_v35  ;;  %v2047_v44 = vmul.f32 %v2043_v27, %v2043_v27  ;;  %v2048_v24 = vmul.f32 %v2044_v15, %v2044_v15  ;;  %v2049_v8 = vmul.f32 %v2045_v55, %v2045_v55 }
 0xb8f   :  { %v321_v53 = vmul.f32 %v304_v5, %v233_v10  ;;  %v322_v23 = vmul.f32 %v304_v5, %v234_v34  ;;  %v323_v36 = vmul.f32 %v304_v5, %v235_v40  ;;  %v324_v46 = vmul.f32 %v304_v5, %v236_v56  ;;  %v2034_v40 = vld [vmem:[%s4485_s4 + $0x50] sm:$0xff] }
 0xb90   :  { %v2050_v18 = vadd.f32 %v2047_v44, %v2046_v1 }
 0xb92   :  { %v2051_v61 = vadd.f32 %v2050_v18, %v2048_v24 }
 0xb94   :  { %v2052_v45 = vadd.f32 %v2051_v61, %v2049_v8 }
 0xb96   :  { %2053 = vadd.xlane.f32.xlu0 %v2052_v45 }
 0xbac   :  { %339 = vperm.xlu0 %2884, %v204_v22  }
 0xc23   :  { %v2054_v7 = vpop.xlane.xlu0 %2053 }
 0xc24   :  { %v2055_v21 = vmul.f32 0.001953125, %v2054_v7 }
 0xc26   :  { %v2056_v41 = vadd.f32 1e-05, %v2055_v21 }
 0xc28   :  { %2903 = vrsqrt.f32 %v2056_v41 }
 0xc2b   :  { %v340_v57 = vpop.permute.xlu0 %339 }
 0xc2c   :  { %v357_v37 = vadd.f32 %v340_v57, %v321_v53  ;;  %v358_v59 = vadd.f32 %v340_v57, %v322_v23  ;;  %v359_v62 = vadd.f32 %v340_v57, %v323_v36  ;;  %v360_v47 = vadd.f32 %v340_v57, %v324_v46 }
 0xc2e   :  { %v373_v58 = vmax.f32 %v357_v37, 0.0  ;;  %v375_v39 = vmax.f32 %v359_v62, 0.0  ;;  %v374_v4 = vmax.f32 %v358_v59, 0.0  ;;  %v376_v43 = vmax.f32 %v360_v47, 0.0 }
 0xc30   :  { %v2110_v50 = vpack.c.bf16 %v970_v42, %v374_v4  ;;  %v2112_v29 = vpack.c.bf16 %v972_v14, %v376_v43  ;;  %v2109_v10 = vpack.c.bf16 %v969_v49, %v373_v58  ;;  %v2111_v34 = vpack.c.bf16 %v971_v48, %v375_v39 }
 0xc32   :  { %v2904_v56 = vpop.eup %2903  ;;  %2150 = vmatprep.subr.bf16.mxu0 %v2110_v50  ;;  %2223 = vmatprep.subr.bf16.mxu1 %v2112_v29 }
 0xc33   :  { %2151 = vmatpush1.bf16.msra.mxu0 %v2109_v10  ;;  %2224 = vmatpush1.bf16.msra.mxu1 %v2111_v34  ;;  %v2058_v25 = vmul.f32 %v2904_v56, %v2034_v40 }
 0xc35   :  { %2061 = vperm.xlu1 %2883, %v2058_v25  }
 0xc39   :  { %2070 = vperm.xlu1 %2883, %v2035_v13  }
 0xcb4   :  { %v2062_v6 = vpop.permute.xlu1 %2061 }
 0xcb5   :  { %v2064_v49 = vmul.f32 %v2062_v6, %v2042_v35  ;;  %v2065_v9 = vmul.f32 %v2062_v6, %v2043_v27  ;;  %v2066_v14 = vmul.f32 %v2062_v6, %v2044_v15  ;;  %v2067_v42 = vmul.f32 %v2062_v6, %v2045_v55  ;;  %v2887_v35 = vld [vmem:[%s4488_s3] sm:$0xff]  }
 0xcb8   :  { %v2071_v48 = vpop.permute.xlu1 %2070 }
 0xcb9   :  { %v2073_v52 = vadd.f32 %v2071_v48, %v2064_v49  ;;  %v2074_v30 = vadd.f32 %v2071_v48, %v2065_v9  ;;  %v2075_v51 = vadd.f32 %v2071_v48, %v2066_v14  ;;  %v2076_v28 = vadd.f32 %v2071_v48, %v2067_v42 }
 0xcbb   :  { %v2077_v54 = vmax.f32 %v2073_v52, 0.0  ;;  %v2079_v0 = vmax.f32 %v2075_v51, 0.0  ;;  %v2078_v12 = vmax.f32 %v2074_v30, 0.0  ;;  %v2080_v20 = vmax.f32 %v2076_v28, 0.0 }
 0xcbd   :  { %v2114_v31 = vpack.c.bf16 %v2078_v12, %v1524_v2  ;;  %v2116_v32 = vpack.c.bf16 %v2080_v20, %v1526_v11  ;;  %v2113_v33 = vpack.c.bf16 %v2077_v54, %v1523_v63  ;;  %v2115_v26 = vpack.c.bf16 %v2079_v0, %v1525_v17  ;;  %v2890_v63 = vld [vmem:[%s4488_s3 + $0x18] sm:$0xff]  }
 0xcbf   :  { %2152 = vmatprep.subr.bf16.mxu0 %v2114_v31  ;;  %2225 = vmatprep.subr.bf16.mxu1 %v2116_v32 }
 0xcc0   :  { %2153 = vmatpush1.bf16.msra.mxu0 %v2113_v33  ;;  %2226 = vmatpush1.bf16.msra.mxu1 %v2115_v26 }
 0xcc3   :  { %2834 = vmatmul.mubr.msk.bf16.vlgmr.msra.gmra.mrb[20].mxu0 %vm2137_vm11, %v2887_v35  ;;  %2838 = vmatmul.mubr.msk.bf16.vlgmr.msra.gmra.mrb[20].mxu1 %vm2137_vm11, %v2887_v35 }
 0xcc4   :  { %2192 = vmatprep.mubr.bf16.mxu0 %v2921_v3  ;;  %2265 = vmatprep.mubr.bf16.mxu1 %v2921_v3 }
 0xccb   :  { %2835 = vmatmul.mubr.msk.bf16.gmra.mrb[24].mxu0 %vm2137_vm11, %v2888_v38  ;;  %2839 = vmatmul.mubr.msk.bf16.gmra.mrb[24].mxu1 %vm2137_vm11, %v2888_v38 }
 0xccc   :  { %2202 = vmatprep.mubr.bf16.mxu0 %v2921_v3  ;;  %2275 = vmatprep.mubr.bf16.mxu1 %v2921_v3 }
 0xcd3   :  { %2836 = vmatmul.mubr.msk.bf16.gmra.mrb[28].mxu0 %vm2137_vm11, %v2889_v19  ;;  %2840 = vmatmul.mubr.msk.bf16.gmra.mrb[28].mxu1 %vm2137_vm11, %v2889_v19 }
 0xcd4   :  { %2212 = vmatprep.mubr.bf16.mxu0 %v2921_v3  ;;  %2285 = vmatprep.mubr.bf16.mxu1 %v2921_v3 }
 0xcdb   :  { %2837 = vmatmul.mubr.msk.bf16.gmra.mrb[32].mxu0 %vm2137_vm11, %v2890_v63  ;;  %2841 = vmatmul.mubr.msk.bf16.gmra.mrb[32].mxu1 %vm2137_vm11, %v2890_v63 }
 0xd96   :  { %v3931_v2 = vpop.f32.mrb[20].mxu0  ;;  %v3933_v16 = vpop.f32.mrb[20].mxu1 }
 0xd97   :  { %v3935_v60 = vpop.f32.mrb[21].mxu0  ;;  %v3937_v11 = vpop.f32.mrb[21].mxu1 }
 0xd98   :  { %v2312_v17 = vadd.f32 %v3935_v60, %v3931_v2  ;;  %v3941_v3 = vpop.f32.mrb[22].mxu0  ;;  %v3943_v27 = vpop.f32.mrb[22].mxu1 }
 0xd99   :  { %v3945_v15 = vpop.f32.mrb[23].mxu0  ;;  %v3947_v55 = vpop.f32.mrb[23].mxu1 }
 0xd9a   :  { %v2313_v1 = vadd.f32 %v2312_v17, %v3933_v16  ;;  %v2317_v44 = vadd.f32 %v3945_v15, %v3941_v3 }
 0xd9c   :  { %v2314_v24 = vadd.f32 %v2313_v1, %v3937_v11  ;;  %v2318_v18 = vadd.f32 %v2317_v44, %v3943_v27 }
 0xd9e   :  { %v2319_v8 = vadd.f32 %v2318_v18, %v3947_v55  ;;  %2315 = vadd.xlane.f32.xlu0 %v2314_v24  ;;  %v3955_v61 = vpop.f32.mrb[24].mxu0  ;;  %v3957_v45 = vpop.f32.mrb[24].mxu1 }
 0xd9f   :  { %v3959_v22 = vpop.f32.mrb[25].mxu0  ;;  %v3961_v7 = vpop.f32.mrb[25].mxu1 }
 0xda0   :  { %v2322_v21 = vadd.f32 %v3959_v22, %v3955_v61  ;;  %2320 = vadd.xlane.f32.xlu1 %v2319_v8  ;;  %v3965_v41 = vpop.f32.mrb[26].mxu0  ;;  %v3967_v5 = vpop.f32.mrb[26].mxu1 }
 0xda1   :  { %v3969_v53 = vpop.f32.mrb[27].mxu0  ;;  %v3971_v23 = vpop.f32.mrb[27].mxu1 }
 0xda2   :  { %v2323_v36 = vadd.f32 %v2322_v21, %v3957_v45  ;;  %v2327_v46 = vadd.f32 %v3969_v53, %v3965_v41 }
 0xda4   :  { %v2324_v57 = vadd.f32 %v2323_v36, %v3961_v7  ;;  %v2328_v37 = vadd.f32 %v2327_v46, %v3967_v5 }
 0xda6   :  { %v2329_v59 = vadd.f32 %v2328_v37, %v3971_v23  ;;  %2325 = vadd.xlane.f32.xlu0 %v2324_v57  ;;  %v3979_v62 = vpop.f32.mrb[28].mxu0  ;;  %v3981_v47 = vpop.f32.mrb[28].mxu1 }
 0xda7   :  { %v3983_v58 = vpop.f32.mrb[29].mxu0  ;;  %v3985_v39 = vpop.f32.mrb[29].mxu1 }
 0xda8   :  { %v2332_v4 = vadd.f32 %v3983_v58, %v3979_v62  ;;  %v3989_v43 = vpop.f32.mrb[30].mxu0  ;;  %v3991_v50 = vpop.f32.mrb[30].mxu1 }
 0xda9   :  { %v3993_v29 = vpop.f32.mrb[31].mxu0  ;;  %v3995_v10 = vpop.f32.mrb[31].mxu1 }
 0xdaa   :  { %v2333_v34 = vadd.f32 %v2332_v4, %v3981_v47  ;;  %v2337_v40 = vadd.f32 %v3993_v29, %v3989_v43  ;;  %2330 = vadd.xlane.f32.xlu0 %v2329_v59 }
 0xdac   :  { %v2334_v56 = vadd.f32 %v2333_v34, %v3985_v39  ;;  %v2338_v25 = vadd.f32 %v2337_v40, %v3991_v50 }
 0xdae   :  { %v2339_v13 = vadd.f32 %v2338_v25, %v3995_v10  ;;  %2335 = vadd.xlane.f32.xlu1 %v2334_v56  ;;  %v4003_v6 = vpop.f32.mrb[32].mxu0  ;;  %v4005_v49 = vpop.f32.mrb[32].mxu1 }
 0xdaf   :  { %v4007_v9 = vpop.f32.mrb[33].mxu0  ;;  %v4009_v14 = vpop.f32.mrb[33].mxu1 }
 0xdb0   :  { %v2342_v42 = vadd.f32 %v4007_v9, %v4003_v6  ;;  %2340 = vadd.xlane.f32.xlu0 %v2339_v13  ;;  %v4013_v48 = vpop.f32.mrb[34].mxu0  ;;  %v4015_v52 = vpop.f32.mrb[34].mxu1 }
 0xdb1   :  { %v4017_v30 = vpop.f32.mrb[35].mxu0  ;;  %v4019_v51 = vpop.f32.mrb[35].mxu1 }
 0xdb2   :  { %v2343_v28 = vadd.f32 %v2342_v42, %v4005_v49  ;;  %v2347_v54 = vadd.f32 %v4017_v30, %v4013_v48 }
 0xdb4   :  { %v2344_v0 = vadd.f32 %v2343_v28, %v4009_v14  ;;  %v2348_v12 = vadd.f32 %v2347_v54, %v4015_v52 }
 0xdb6   :  { %v2349_v20 = vadd.f32 %v2348_v12, %v4019_v51  ;;  %2345 = vadd.xlane.f32.xlu1 %v2344_v0 }
 0xdb8   :  { %2350 = vadd.xlane.f32.xlu0 %v2349_v20 }
 0xe2b   :  { %v2316_v31 = vpop.xlane.xlu0 %2315 }
 0xe2c   :  { %v2352_v32 = vmul.f32 0.001953125, %v2316_v31 }
 0xe2d   :  { %v2321_v33 = vpop.xlane.xlu1 %2320 }
 0xe2e   :  { %v4028_v26 = vsub.f32 %v3931_v2, %v2352_v32  ;;  %v4031_v35 = vsub.f32 %v3935_v60, %v2352_v32  ;;  %v2353_v38 = vmul.f32 0.001953125, %v2321_v33  ;;  %v4034_v19 = vsub.f32 %v3933_v16, %v2352_v32 }
 0xe2f   :  { %v4048_v44 = vsub.f32 %v3937_v11, %v2352_v32 }
 0xe30   :  { %v4037_v63 = vsub.f32 %v3941_v3, %v2353_v38  ;;  %v4040_v17 = vsub.f32 %v3945_v15, %v2353_v38  ;;  %v4043_v1 = vsub.f32 %v3943_v27, %v2353_v38  ;;  %v2392_v2 = vmul.f32 %v4028_v26, %v4028_v26 }
 0xe31   :  { %v2393_v60 = vmul.f32 %v4031_v35, %v4031_v35  ;;  %v4053_v16 = vsub.f32 %v3947_v55, %v2353_v38  ;;  %v2394_v24 = vmul.f32 %v4034_v19, %v4034_v19  ;;  %v2395_v55 = vmul.f32 %v4048_v44, %v4048_v44 }
 0xe32   :  { %v2396_v3 = vmul.f32 %v4037_v63, %v4037_v63  ;;  %v2397_v15 = vmul.f32 %v4040_v17, %v4040_v17  ;;  %v2398_v11 = vmul.f32 %v4043_v1, %v4043_v1 }
 0xe33   :  { %v2326_v27 = vpop.xlane.xlu0 %2325  ;;  %v2424_v18 = vadd.f32 %v2393_v60, %v2392_v2  ;;  %v2399_v46 = vmul.f32 %v4053_v16, %v4053_v16 }
 0xe34   :  { %v2354_v8 = vmul.f32 0.001953125, %v2326_v27  ;;  %v2429_v21 = vadd.f32 %v2397_v15, %v2396_v3 }
 0xe35   :  { %v2425_v36 = vadd.f32 %v2424_v18, %v2394_v24 }
 0xe36   :  { %v4068_v57 = vsub.f32 %v3955_v61, %v2354_v8  ;;  %v4071_v37 = vsub.f32 %v3959_v22, %v2354_v8  ;;  %v4074_v59 = vsub.f32 %v3957_v45, %v2354_v8  ;;  %v2430_v4 = vadd.f32 %v2429_v21, %v2398_v11 }
 0xe37   :  { %v2331_v34 = vpop.xlane.xlu0 %2330  ;;  %v2426_v40 = vadd.f32 %v2425_v36, %v2395_v55  ;;  %v4081_v61 = vsub.f32 %v3961_v7, %v2354_v8 }
 0xe38   :  { %v2355_v56 = vmul.f32 0.001953125, %v2331_v34  ;;  %v2431_v25 = vadd.f32 %v2430_v4, %v2399_v46  ;;  %v2400_v13 = vmul.f32 %v4068_v57, %v4068_v57  ;;  %v2401_v42 = vmul.f32 %v4071_v37, %v4071_v37 }
 0xe39   :  { %2427 = vadd.xlane.f32.xlu1 %v2426_v40  ;;  %v2402_v28 = vmul.f32 %v4074_v59, %v4074_v59  ;;  %v2403_v33 = vmul.f32 %v4081_v61, %v4081_v61 }
 0xe3a   :  { %v4084_v22 = vsub.f32 %v3965_v41, %v2355_v56  ;;  %v4087_v45 = vsub.f32 %v3969_v53, %v2355_v56  ;;  %2432 = vadd.xlane.f32.xlu0 %v2431_v25  ;;  %v2434_v54 = vadd.f32 %v2401_v42, %v2400_v13  ;;  %v4092_v0 = vsub.f32 %v3967_v5, %v2355_v56 }
 0xe3b   :  { %v2336_v12 = vpop.xlane.xlu1 %2335  ;;  %v4095_v20 = vsub.f32 %v3971_v23, %v2355_v56 }
 0xe3c   :  { %v2356_v7 = vmul.f32 0.001953125, %v2336_v12  ;;  %v2435_v31 = vadd.f32 %v2434_v54, %v2402_v28  ;;  %v2404_v41 = vmul.f32 %v4084_v22, %v4084_v22  ;;  %v2405_v53 = vmul.f32 %v4087_v45, %v4087_v45 }
 0xe3d   :  { %v2341_v32 = vpop.xlane.xlu0 %2340  ;;  %v2406_v3 = vmul.f32 %v4092_v0, %v4092_v0 }
 0xe3e   :  { %v4104_v38 = vsub.f32 %v3979_v62, %v2356_v7  ;;  %v4107_v5 = vsub.f32 %v3983_v58, %v2356_v7  ;;  %v2357_v23 = vmul.f32 0.001953125, %v2341_v32  ;;  %v4110_v2 = vsub.f32 %v3981_v47, %v2356_v7 }
 0xe3f   :  { %v2436_v60 = vadd.f32 %v2435_v31, %v2403_v33  ;;  %v2439_v15 = vadd.f32 %v2405_v53, %v2404_v41  ;;  %v2407_v62 = vmul.f32 %v4095_v20, %v4095_v20  ;;  %v4128_v8 = vsub.f32 %v3985_v39, %v2356_v7 }
 0xe40   :  { %v4115_v27 = vsub.f32 %v3989_v43, %v2357_v23  ;;  %v4118_v24 = vsub.f32 %v3993_v29, %v2357_v23  ;;  %v2408_v58 = vmul.f32 %v4104_v38, %v4104_v38  ;;  %v4125_v47 = vsub.f32 %v3991_v50, %v2357_v23 }
 0xe41   :  { %2437 = vadd.xlane.f32.xlu1 %v2436_v60  ;;  %v2440_v18 = vadd.f32 %v2439_v15, %v2406_v3  ;;  %v2409_v43 = vmul.f32 %v4107_v5, %v4107_v5  ;;  %v2410_v50 = vmul.f32 %v4110_v2, %v4110_v2  ;;  %v4139_v46 = vsub.f32 %v3995_v10, %v2357_v23 }
 0xe42   :  { %v2412_v29 = vmul.f32 %v4115_v27, %v4115_v27  ;;  %v2413_v11 = vmul.f32 %v4118_v24, %v4118_v24  ;;  %v2411_v40 = vmul.f32 %v4128_v8, %v4128_v8  ;;  %v2414_v25 = vmul.f32 %v4125_v47, %v4125_v47 }
 0xe43   :  { %v2346_v21 = vpop.xlane.xlu1 %2345  ;;  %v2441_v55 = vadd.f32 %v2440_v18, %v2407_v62  ;;  %v2444_v36 = vadd.f32 %v2409_v43, %v2408_v58  ;;  %v2415_v12 = vmul.f32 %v4139_v46, %v4139_v46  ;;  %v2305_v43 = vld [vmem:[%s4485_s4 + $0xb8] sm:$0xff] }
 0xe44   :  { %v2358_v39 = vmul.f32 0.001953125, %v2346_v21  ;;  %v2449_v4 = vadd.f32 %v2413_v11, %v2412_v29  ;;  %v2307_v29 = vld [vmem:[%s4485_s4 + $0xc8] sm:$0xff]  ;;  %v2304_v11 = vld [vmem:[%s4485_s4 + $0xb0] sm:$0xff]  ;;  %v2309_v21 = vld [vmem:[%s4485_s4 + $0xd8] sm:$0xff] }
 0xe45   :  { %2442 = vadd.xlane.f32.xlu0 %v2441_v55  ;;  %v2351_v34 = vpop.xlane.xlu0 %2350  ;;  %v2445_v56 = vadd.f32 %v2444_v36, %v2410_v50  ;;  %v2306_v55 = vld [vmem:[%s4485_s4 + $0xc0] sm:$0xff]  ;;  %v2308_v50 = vld [vmem:[%s4485_s4 + $0xd0] sm:$0xff] }
 0xe46   :  { %v4146_v13 = vsub.f32 %v4003_v6, %v2358_v39  ;;  %v4149_v42 = vsub.f32 %v4007_v9, %v2358_v39  ;;  %v2359_v28 = vmul.f32 0.001953125, %v2351_v34  ;;  %v4152_v10 = vsub.f32 %v4005_v49, %v2358_v39 }
 0xe47   :  { %v2446_v54 = vadd.f32 %v2445_v56, %v2411_v40  ;;  %v2450_v7 = vadd.f32 %v2449_v4, %v2414_v25  ;;  %v4168_v53 = vsub.f32 %v4009_v14, %v2358_v39 }
 0xe48   :  { %v4157_v31 = vsub.f32 %v4013_v48, %v2359_v28  ;;  %v4160_v41 = vsub.f32 %v4017_v30, %v2359_v28  ;;  %v4163_v6 = vsub.f32 %v4015_v52, %v2359_v28  ;;  %v2416_v9 = vmul.f32 %v4146_v13, %v4146_v13 }
 0xe49   :  { %2447 = vadd.xlane.f32.xlu1 %v2446_v54  ;;  %v2451_v49 = vadd.f32 %v2450_v7, %v2415_v12  ;;  %v2417_v32 = vmul.f32 %v4149_v42, %v4149_v42  ;;  %v4173_v48 = vsub.f32 %v4019_v51, %v2359_v28  ;;  %v2418_v33 = vmul.f32 %v4152_v10, %v4152_v10 }
 0xe4a   :  { %v2420_v30 = vmul.f32 %v4157_v31, %v4157_v31  ;;  %v2421_v52 = vmul.f32 %v4160_v41, %v4160_v41  ;;  %v2422_v14 = vmul.f32 %v4163_v6, %v4163_v6  ;;  %v2419_v3 = vmul.f32 %v4168_v53, %v4168_v53 }
 0xe4b   :  { %4491 = vst [vmem:[#allocation5_spill] sm:$0xff] %v4173_v48  ;;  %2452 = vadd.xlane.f32.xlu0 %v2451_v49  ;;  %v2454_v23 = vadd.f32 %v2417_v32, %v2416_v9  ;;  %v2423_v15 = vmul.f32 %v4173_v48, %v4173_v48  ;;  %v2296_v9 = vld [vmem:[%s4485_s4 + $0x70] sm:$0xff]  ;;  %v2297_v49 = vld [vmem:[%s4485_s4 + $0x78] sm:$0xff] }
 0xe4c   :  { %v2459_v60 = vadd.f32 %v2421_v52, %v2420_v30 }
 0xe4d   :  { %v2455_v51 = vadd.f32 %v2454_v23, %v2418_v33 }
 0xe4e   :  { %v2460_v62 = vadd.f32 %v2459_v60, %v2422_v14 }
 0xe4f   :  { %v2456_v58 = vadd.f32 %v2455_v51, %v2419_v3 }
 0xe50   :  { %v2461_v18 = vadd.f32 %v2460_v62, %v2423_v15 }
 0xe51   :  { %2457 = vadd.xlane.f32.xlu1 %v2456_v58  ;;  %v2298_v58 = vld [vmem:[%s4485_s4 + $0x80] sm:$0xff] }
 0xe52   :  { %2462 = vadd.xlane.f32.xlu0 %v2461_v18 }
 0xe62   :  { %2575 = vperm.xlu1 %2883, %v2305_v43  }
 0xe66   :  { %2585 = vperm.xlu1 %2883, %v2307_v29  }
 0xe68   :  { %2570 = vperm.xlu0 %2884, %v2304_v11  }
 0xe6a   :  { %2595 = vperm.xlu1 %2883, %v2309_v21  }
 0xe6c   :  { %2580 = vperm.xlu0 %2884, %v2306_v55   ;;  %v2299_v55 = vld [vmem:[%s4485_s4 + $0x88] sm:$0xff] }
 0xe70   :  { %2590 = vperm.xlu0 %2884, %v2308_v50  }
 0xec6   :  { %v2428_v36 = vpop.xlane.xlu1 %2427 }
 0xec7   :  { %v2464_v39 = vmul.f32 0.001953125, %v2428_v36  ;;  %v2433_v4 = vpop.xlane.xlu0 %2432 }
 0xec8   :  { %v2465_v34 = vmul.f32 0.001953125, %v2433_v4 }
 0xec9   :  { %v2472_v40 = vadd.f32 1e-05, %v2464_v39 }
 0xeca   :  { %v2473_v56 = vadd.f32 1e-05, %v2465_v34 }
 0xecb   :  { %2905 = vrsqrt.f32 %v2472_v40  ;;  %v2300_v40 = vld [vmem:[%s4485_s4 + $0x90] sm:$0xff] }
 0xecc   :  { %2907 = vrsqrt.f32 %v2473_v56 }
 0xece   :  { %v2438_v25 = vpop.xlane.xlu1 %2437 }
 0xecf   :  { %v2466_v28 = vmul.f32 0.001953125, %v2438_v25  ;;  %v2301_v25 = vld [vmem:[%s4485_s4 + $0x98] sm:$0xff] }
 0xed1   :  { %v2474_v54 = vadd.f32 1e-05, %v2466_v28 }
 0xed2   :  { %v2443_v12 = vpop.xlane.xlu0 %2442 }
 0xed3   :  { %2909 = vrsqrt.f32 %v2474_v54  ;;  %v2467_v7 = vmul.f32 0.001953125, %v2443_v12 }
 0xed5   :  { %v2906_v32 = vpop.eup %2905  ;;  %v2475_v30 = vadd.f32 1e-05, %v2467_v7  ;;  %v2302_v7 = vld [vmem:[%s4485_s4 + $0xa0] sm:$0xff] }
 0xed6   :  { %v2908_v52 = vpop.eup %2907  ;;  %v2448_v33 = vpop.xlane.xlu1 %2447  ;;  %v2488_v23 = vmul.f32 %v2906_v32, %v2296_v9  ;;  %v2303_v9 = vld [vmem:[%s4485_s4 + $0xa8] sm:$0xff] }
 0xed7   :  { %2911 = vrsqrt.f32 %v2475_v30  ;;  %v2468_v14 = vmul.f32 0.001953125, %v2448_v33  ;;  %v2489_v60 = vmul.f32 %v2908_v52, %v2297_v49  ;;  %v2310_v33 = vld [vmem:[%s4485_s4 + $0xe0] sm:$0xff] }
 0xed8   :  { %2498 = vperm.xlu1 %2883, %v2488_v23   ;;  %v2453_v3 = vpop.xlane.xlu0 %2452  ;;  %v2311_v23 = vld [vmem:[%s4485_s4 + $0xe8] sm:$0xff] }
 0xed9   :  { %v2476_v51 = vadd.f32 1e-05, %v2468_v14  ;;  %v2469_v15 = vmul.f32 0.001953125, %v2453_v3  ;;  %2503 = vperm.xlu0 %2884, %v2489_v60  }
 0xedb   :  { %2913 = vrsqrt.f32 %v2476_v51  ;;  %v2477_v62 = vadd.f32 1e-05, %v2469_v15 }
 0xedd   :  { %v2910_v18 = vpop.eup %2909  ;;  %2915 = vrsqrt.f32 %v2477_v62 }
 0xede   :  { %v2458_v43 = vpop.xlane.xlu1 %2457  ;;  %v2490_v29 = vmul.f32 %v2910_v18, %v2298_v58  ;;  %v2640_v18 = vld [vmem:[%s4483_s0] sm:$0xff] }
 0xedf   :  { %v2470_v11 = vmul.f32 0.001953125, %v2458_v43  ;;  %v2463_v21 = vpop.xlane.xlu0 %2462  ;;  %v2641_v43 = vld [vmem:[%s4483_s0 + $0x8] sm:$0xff] }
 0xee0   :  { %2508 = vperm.xlu1 %2883, %v2490_v29   ;;  %v2471_v50 = vmul.f32 0.001953125, %v2463_v21 }
 0xee1   :  { %v2912_v36 = vpop.eup %2911  ;;  %v2478_v39 = vadd.f32 1e-05, %v2470_v11 }
 0xee2   :  { %v2479_v4 = vadd.f32 1e-05, %v2471_v50  ;;  %v2491_v34 = vmul.f32 %v2912_v36, %v2299_v55  ;;  %v2576_v14 = vpop.permute.xlu1 %2575  ;;  %v2842_v36 = vld [vmem:[%s4483_s0 + $0x80] sm:$0xff] }
 0xee3   :  { %2917 = vrsqrt.f32 %v2478_v39  ;;  %v2843_v39 = vld [vmem:[%s4483_s0 + $0x88] sm:$0xff] }
 0xee4   :  { %2919 = vrsqrt.f32 %v2479_v4  ;;  %2513 = vperm.xlu1 %2883, %v2491_v34   ;;  %v2642_v4 = vld [vmem:[%s4483_s0 + $0x10] sm:$0xff] }
 0xee5   :  { %v2914_v56 = vpop.eup %2913 }
 0xee6   :  { %v2492_v28 = vmul.f32 %v2914_v56, %v2300_v40  ;;  %v4235_v3 = vpop.permute.xlu1 %2585 }
 0xee7   :  { %v2916_v54 = vpop.eup %2915  ;;  %v2571_v60 = vpop.permute.xlu0 %2570 }
 0xee8   :  { %2518 = vperm.xlu0 %2884, %v2492_v28   ;;  %v2493_v12 = vmul.f32 %v2916_v54, %v2301_v25  ;;  %v2643_v28 = vld [vmem:[%s4483_s0 + $0x18] sm:$0xff]  ;;  %v2844_v54 = vld [vmem:[%s4483_s0 + $0x90] sm:$0xff] }
 0xeea   :  { %2523 = vperm.xlu1 %2883, %v2493_v12   ;;  %v4239_v15 = vpop.permute.xlu1 %2595 }
 0xeeb   :  { %v4237_v51 = vpop.permute.xlu0 %2580 }
 0xeed   :  { %v2918_v49 = vpop.eup %2917 }
 0xeee   :  { %v2920_v32 = vpop.eup %2919  ;;  %v2494_v30 = vmul.f32 %v2918_v49, %v2302_v7 }
 0xeef   :  { %v2495_v52 = vmul.f32 %v2920_v32, %v2303_v9  ;;  %v4241_v62 = vpop.permute.xlu0 %2590 }
 0xef0   :  { %2528 = vperm.xlu0 %2884, %v2494_v30  }
 0xef1   :  { %2533 = vperm.xlu1 %2883, %v2495_v52  }
 0xef4   :  { %2600 = vperm.xlu0 %2884, %v2310_v33  }
 0xef5   :  { %2605 = vperm.xlu1 %2883, %v2311_v23  }
 0xf57   :  { %v2499_v58 = vpop.permute.xlu1 %2498 }
 0xf58   :  { %v2536_v29 = vmul.f32 %v2499_v58, %v4028_v26  ;;  %v2537_v11 = vmul.f32 %v2499_v58, %v4031_v35  ;;  %v2538_v21 = vmul.f32 %v2499_v58, %v4034_v19  ;;  %v2539_v55 = vmul.f32 %v2499_v58, %v4048_v44  ;;  %v2504_v50 = vpop.permute.xlu0 %2503 }
 0xf59   :  { %v2540_v26 = vmul.f32 %v2504_v50, %v4037_v63  ;;  %v2541_v35 = vmul.f32 %v2504_v50, %v4040_v17  ;;  %v2542_v19 = vmul.f32 %v2504_v50, %v4043_v1  ;;  %v2543_v44 = vmul.f32 %v2504_v50, %v4053_v16  ;;  %v2845_v63 = vld [vmem:[%s4483_s0 + $0x98] sm:$0xff] }
 0xf5a   :  { %v2608_v34 = vadd.f32 %v2571_v60, %v2536_v29  ;;  %v2609_v40 = vadd.f32 %v2571_v60, %v2537_v11  ;;  %v2610_v56 = vadd.f32 %v2571_v60, %v2538_v21  ;;  %v2611_v25 = vadd.f32 %v2571_v60, %v2539_v55 }
 0xf5b   :  { %v2612_v17 = vadd.f32 %v2576_v14, %v2540_v26  ;;  %v2613_v1 = vadd.f32 %v2576_v14, %v2541_v35  ;;  %v2614_v12 = vadd.f32 %v2576_v14, %v2542_v19  ;;  %v2615_v16 = vadd.f32 %v2576_v14, %v2543_v44  ;;  %v2644_v14 = vld [vmem:[%s4483_s0 + $0x20] sm:$0xff] }
 0xf5c   :  { %v2656_v7 = vadd.f32 %v2640_v18, %v2608_v34  ;;  %v2657_v9 = vadd.f32 %v2641_v43, %v2609_v40  ;;  %v2720_v49 = vadd.f32 %v2842_v36, %v2610_v56  ;;  %v2721_v32 = vadd.f32 %v2843_v39, %v2611_v25  ;;  %v2646_v25 = vld [vmem:[%s4483_s0 + $0x30] sm:$0xff] }
 0xf5d   :  { %v2658_v30 = vadd.f32 %v2642_v4, %v2612_v17  ;;  %v2659_v52 = vadd.f32 %v2643_v28, %v2613_v1  ;;  %v2722_v33 = vadd.f32 %v2844_v54, %v2614_v12  ;;  %v2723_v23 = vadd.f32 %v2845_v63, %v2615_v16  ;;  %v2647_v28 = vld [vmem:[%s4483_s0 + $0x38] sm:$0xff] }
 0xf5e   :  { %v2672_v60 = vmax.f32 %v2656_v7, 0.0  ;;  %v2673_v58 = vmax.f32 %v2657_v9, 0.0  ;;  %v2736_v29 = vmax.f32 %v2720_v49, 0.0  ;;  %v2737_v11 = vmax.f32 %v2721_v32, 0.0  ;;  %v2848_v9 = vld [vmem:[%s4483_s0 + $0xb0] sm:$0xff]  ;;  %v2849_v49 = vld [vmem:[%s4483_s0 + $0xb8] sm:$0xff] }
 0xf5f   :  { %v2674_v21 = vmax.f32 %v2658_v30, 0.0  ;;  %v2675_v55 = vmax.f32 %v2659_v52, 0.0  ;;  %v2738_v50 = vmax.f32 %v2722_v33, 0.0  ;;  %v2739_v48 = vmax.f32 %v2723_v23, 0.0  ;;  %v2509_v26 = vpop.permute.xlu1 %2508 }
 0xf60   :  { %2688 = vst [vmem:[%s4489_s6] sm:$0xff] %v2672_v60  ;;  %2689 = vst [vmem:[%s4489_s6 + $0x8] sm:$0xff] %v2673_v58  ;;  %v2544_v18 = vmul.f32 %v2509_v26, %v4068_v57  ;;  %v2545_v43 = vmul.f32 %v2509_v26, %v4071_v37  ;;  %v2546_v36 = vmul.f32 %v2509_v26, %v4074_v59  ;;  %v2645_v57 = vld [vmem:[%s4483_s0 + $0x28] sm:$0xff]  ;;  %v2846_v37 = vld [vmem:[%s4483_s0 + $0xa0] sm:$0xff] }
 0xf61   :  { %2858 = vst [vmem:[%s4489_s6 + $0x80] sm:$0xff] %v2736_v29  ;;  %2859 = vst [vmem:[%s4489_s6 + $0x88] sm:$0xff] %v2737_v11  ;;  %v2547_v39 = vmul.f32 %v2509_v26, %v4081_v61  ;;  %v2847_v59 = vld [vmem:[%s4483_s0 + $0xa8] sm:$0xff] }
 0xf62   :  { %2690 = vst [vmem:[%s4489_s6 + $0x10] sm:$0xff] %v2674_v21  ;;  %2691 = vst [vmem:[%s4489_s6 + $0x18] sm:$0xff] %v2675_v55  ;;  %v2616_v61 = vadd.f32 %v4237_v51, %v2544_v18  ;;  %v2617_v4 = vadd.f32 %v4237_v51, %v2545_v43  ;;  %v2618_v35 = vadd.f32 %v4237_v51, %v2546_v36  ;;  %v2649_v21 = vld [vmem:[%s4483_s0 + $0x48] sm:$0xff]  ;;  %v2850_v55 = vld [vmem:[%s4483_s0 + $0xc0] sm:$0xff] }
 0xf63   :  { %2860 = vst [vmem:[%s4489_s6 + $0x90] sm:$0xff] %v2738_v50  ;;  %2861 = vst [vmem:[%s4489_s6 + $0x98] sm:$0xff] %v2739_v48  ;;  %v2619_v48 = vadd.f32 %v4237_v51, %v2547_v39  ;;  %v2514_v19 = vpop.permute.xlu1 %2513 }
 0xf64   :  { %v2660_v44 = vadd.f32 %v2644_v14, %v2616_v61  ;;  %v2661_v34 = vadd.f32 %v2645_v57, %v2617_v4  ;;  %v2724_v40 = vadd.f32 %v2846_v37, %v2618_v35  ;;  %v2548_v54 = vmul.f32 %v2514_v19, %v4084_v22  ;;  %v2651_v61 = vld [vmem:[%s4483_s0 + $0x58] sm:$0xff] }
 0xf65   :  { %v2725_v56 = vadd.f32 %v2847_v59, %v2619_v48  ;;  %v2549_v63 = vmul.f32 %v2514_v19, %v4087_v45  ;;  %v2550_v17 = vmul.f32 %v2514_v19, %v4092_v0  ;;  %v2551_v51 = vmul.f32 %v2514_v19, %v4095_v20 }
 0xf66   :  { %v2676_v1 = vmax.f32 %v2660_v44, 0.0  ;;  %v2677_v12 = vmax.f32 %v2661_v34, 0.0  ;;  %v2740_v16 = vmax.f32 %v2724_v40, 0.0  ;;  %v2620_v22 = vadd.f32 %v4235_v3, %v2548_v54 }
 0xf67   :  { %v2741_v7 = vmax.f32 %v2725_v56, 0.0  ;;  %v2621_v45 = vadd.f32 %v4235_v3, %v2549_v63  ;;  %v2622_v0 = vadd.f32 %v4235_v3, %v2550_v17  ;;  %v2623_v20 = vadd.f32 %v4235_v3, %v2551_v51  ;;  %v2519_v32 = vpop.permute.xlu0 %2518  ;;  %v2648_v3 = vld [vmem:[%s4483_s0 + $0x40] sm:$0xff] }
 0xf68   :  { %2692 = vst [vmem:[%s4489_s6 + $0x20] sm:$0xff] %v2676_v1  ;;  %2693 = vst [vmem:[%s4489_s6 + $0x28] sm:$0xff] %v2677_v12  ;;  %v2552_v30 = vmul.f32 %v2519_v32, %v4104_v38  ;;  %v2553_v52 = vmul.f32 %v2519_v32, %v4107_v5  ;;  %v2554_v33 = vmul.f32 %v2519_v32, %v4110_v2  ;;  %v2851_v38 = vld [vmem:[%s4483_s0 + $0xc8] sm:$0xff] }
 0xf69   :  { %2862 = vst [vmem:[%s4489_s6 + $0xa0] sm:$0xff] %v2740_v16  ;;  %2863 = vst [vmem:[%s4489_s6 + $0xa8] sm:$0xff] %v2741_v7  ;;  %v2555_v23 = vmul.f32 %v2519_v32, %v4128_v8  ;;  %v2662_v60 = vadd.f32 %v2646_v25, %v2620_v22  ;;  %v2663_v58 = vadd.f32 %v2647_v28, %v2621_v45  ;;  %v2524_v26 = vpop.permute.xlu1 %2523  ;;  %v2852_v25 = vld [vmem:[%s4483_s0 + $0xd0] sm:$0xff]  ;;  %v2853_v28 = vld [vmem:[%s4483_s0 + $0xd8] sm:$0xff] }
 0xf6a   :  { %v2726_v29 = vadd.f32 %v2848_v9, %v2622_v0  ;;  %v2727_v11 = vadd.f32 %v2849_v49, %v2623_v20  ;;  %v2624_v5 = vadd.f32 %v4241_v62, %v2552_v30  ;;  %v2625_v2 = vadd.f32 %v4241_v62, %v2553_v52  ;;  %v2652_v49 = vld [vmem:[%s4483_s0 + $0x60] sm:$0xff]  ;;  %v2653_v22 = vld [vmem:[%s4483_s0 + $0x68] sm:$0xff] }
 0xf6b   :  { %v2626_v8 = vadd.f32 %v4241_v62, %v2554_v33  ;;  %v2627_v50 = vadd.f32 %v4241_v62, %v2555_v23  ;;  %v2678_v14 = vmax.f32 %v2662_v60, 0.0  ;;  %v2679_v18 = vmax.f32 %v2663_v58, 0.0  ;;  %v2650_v62 = vld [vmem:[%s4483_s0 + $0x50] sm:$0xff]  ;;  %v4492_v45 = vld [vmem:[#allocation5_spill] sm:$0xff]  ;;  %v2855_v52 = vld [vmem:[%s4483_s0 + $0xe8] sm:$0xff] }
 0xf6c   :  { %v2742_v43 = vmax.f32 %v2726_v29, 0.0  ;;  %v2743_v36 = vmax.f32 %v2727_v11, 0.0  ;;  %v2664_v39 = vadd.f32 %v2648_v3, %v2624_v5  ;;  %v2665_v57 = vadd.f32 %v2649_v21, %v2625_v2  ;;  %v2654_v23 = vld [vmem:[%s4483_s0 + $0x70] sm:$0xff]  ;;  %v2857_v11 = vld [vmem:[%s4483_s0 + $0xf8] sm:$0xff] }
 0xf6d   :  { %v2728_v37 = vadd.f32 %v2850_v55, %v2626_v8  ;;  %v2729_v59 = vadd.f32 %v2851_v38, %v2627_v50  ;;  %2694 = vst [vmem:[%s4489_s6 + $0x30] sm:$0xff] %v2678_v14  ;;  %2695 = vst [vmem:[%s4489_s6 + $0x38] sm:$0xff] %v2679_v18  ;;  %v2556_v4 = vmul.f32 %v2524_v26, %v4115_v27  ;;  %v2856_v29 = vld [vmem:[%s4483_s0 + $0xf0] sm:$0xff] }
 0xf6e   :  { %2864 = vst [vmem:[%s4489_s6 + $0xb0] sm:$0xff] %v2742_v43  ;;  %2865 = vst [vmem:[%s4489_s6 + $0xb8] sm:$0xff] %v2743_v36  ;;  %v2557_v35 = vmul.f32 %v2524_v26, %v4118_v24  ;;  %v2558_v48 = vmul.f32 %v2524_v26, %v4125_v47  ;;  %v2559_v19 = vmul.f32 %v2524_v26, %v4139_v46  ;;  %v2680_v44 = vmax.f32 %v2664_v39, 0.0 }
 0xf6f   :  { %v2681_v34 = vmax.f32 %v2665_v57, 0.0  ;;  %v2744_v40 = vmax.f32 %v2728_v37, 0.0  ;;  %v2745_v56 = vmax.f32 %v2729_v59, 0.0  ;;  %v2628_v27 = vadd.f32 %v4239_v15, %v2556_v4  ;;  %v2529_v54 = vpop.permute.xlu0 %2528 }
 0xf70   :  { %v2629_v24 = vadd.f32 %v4239_v15, %v2557_v35  ;;  %v2630_v47 = vadd.f32 %v4239_v15, %v2558_v48  ;;  %v2631_v46 = vadd.f32 %v4239_v15, %v2559_v19  ;;  %2696 = vst [vmem:[%s4489_s6 + $0x40] sm:$0xff] %v2680_v44  ;;  %v2534_v63 = vpop.permute.xlu1 %2533  ;;  %v2560_v15 = vmul.f32 %v2529_v54, %v4146_v13  ;;  %v2854_v13 = vld [vmem:[%s4483_s0 + $0xe0] sm:$0xff] }
 0xf71   :  { %2697 = vst [vmem:[%s4489_s6 + $0x48] sm:$0xff] %v2681_v34  ;;  %2866 = vst [vmem:[%s4489_s6 + $0xc0] sm:$0xff] %v2744_v40  ;;  %v2561_v17 = vmul.f32 %v2529_v54, %v4149_v42  ;;  %v2562_v51 = vmul.f32 %v2529_v54, %v4152_v10  ;;  %v2563_v1 = vmul.f32 %v2529_v54, %v4168_v53 }
 0xf72   :  { %2867 = vst [vmem:[%s4489_s6 + $0xc8] sm:$0xff] %v2745_v56  ;;  %v2666_v12 = vadd.f32 %v2650_v62, %v2628_v27  ;;  %v2667_v16 = vadd.f32 %v2651_v61, %v2629_v24  ;;  %v2730_v7 = vadd.f32 %v2852_v25, %v2630_v47  ;;  %v2731_v9 = vadd.f32 %v2853_v28, %v2631_v46 }
 0xf73   :  { %v2564_v42 = vmul.f32 %v2534_v63, %v4157_v31  ;;  %v2565_v10 = vmul.f32 %v2534_v63, %v4160_v41  ;;  %v2566_v53 = vmul.f32 %v2534_v63, %v4163_v6  ;;  %v2567_v0 = vmul.f32 %v2534_v63, %v4492_v45  ;;  %v2601_v33 = vpop.permute.xlu0 %2600  ;;  %v2655_v6 = vld [vmem:[%s4483_s0 + $0x78] sm:$0xff] }
 0xf74   :  { %v2682_v20 = vmax.f32 %v2666_v12, 0.0  ;;  %v2683_v32 = vmax.f32 %v2667_v16, 0.0  ;;  %v2746_v3 = vmax.f32 %v2730_v7, 0.0  ;;  %v2747_v30 = vmax.f32 %v2731_v9, 0.0  ;;  %v2606_v21 = vpop.permute.xlu1 %2605 }
 0xf75   :  { %v2632_v31 = vadd.f32 %v2601_v33, %v2560_v15  ;;  %v2633_v60 = vadd.f32 %v2601_v33, %v2561_v17  ;;  %v2634_v41 = vadd.f32 %v2601_v33, %v2562_v51  ;;  %v2635_v58 = vadd.f32 %v2601_v33, %v2563_v1 }
 0xf76   :  { %2698 = vst [vmem:[%s4489_s6 + $0x50] sm:$0xff] %v2682_v20  ;;  %2699 = vst [vmem:[%s4489_s6 + $0x58] sm:$0xff] %v2683_v32  ;;  %v2636_v55 = vadd.f32 %v2606_v21, %v2564_v42  ;;  %v2637_v38 = vadd.f32 %v2606_v21, %v2565_v10  ;;  %v2638_v5 = vadd.f32 %v2606_v21, %v2566_v53 }
 0xf77   :  { %2868 = vst [vmem:[%s4489_s6 + $0xd0] sm:$0xff] %v2746_v3  ;;  %2869 = vst [vmem:[%s4489_s6 + $0xd8] sm:$0xff] %v2747_v30  ;;  %v2639_v2 = vadd.f32 %v2606_v21, %v2567_v0  ;;  %v2668_v8 = vadd.f32 %v2652_v49, %v2632_v31  ;;  %v2669_v50 = vadd.f32 %v2653_v22, %v2633_v60 }
 0xf78   :  { %v2732_v26 = vadd.f32 %v2854_v13, %v2634_v41  ;;  %v2733_v14 = vadd.f32 %v2855_v52, %v2635_v58  ;;  %v2670_v18 = vadd.f32 %v2654_v23, %v2636_v55  ;;  %v2671_v43 = vadd.f32 %v2655_v6, %v2637_v38 }
 0xf79   :  { %v2734_v36 = vadd.f32 %v2856_v29, %v2638_v5  ;;  %v2735_v39 = vadd.f32 %v2857_v11, %v2639_v2  ;;  %v2684_v57 = vmax.f32 %v2668_v8, 0.0  ;;  %v2685_v37 = vmax.f32 %v2669_v50, 0.0 }
 0xf7a   :  { %v2748_v59 = vmax.f32 %v2732_v26, 0.0  ;;  %v2749_v62 = vmax.f32 %v2733_v14, 0.0  ;;  %v2686_v61 = vmax.f32 %v2670_v18, 0.0  ;;  %v2687_v4 = vmax.f32 %v2671_v43, 0.0 }
 0xf7b   :  { %v2750_v35 = vmax.f32 %v2734_v36, 0.0  ;;  %v2751_v48 = vmax.f32 %v2735_v39, 0.0  ;;  %2700 = vst [vmem:[%s4489_s6 + $0x60] sm:$0xff] %v2684_v57  ;;  %2701 = vst [vmem:[%s4489_s6 + $0x68] sm:$0xff] %v2685_v37 }
 0xf7c   :  { %2870 = vst [vmem:[%s4489_s6 + $0xe0] sm:$0xff] %v2748_v59  ;;  %2871 = vst [vmem:[%s4489_s6 + $0xe8] sm:$0xff] %v2749_v62 }
 0xf7d   :  { %2702 = vst [vmem:[%s4489_s6 + $0x70] sm:$0xff] %v2686_v61  ;;  %2703 = vst [vmem:[%s4489_s6 + $0x78] sm:$0xff] %v2687_v4 }
 0xf7e   :  { %2872 = vst [vmem:[%s4489_s6 + $0xf0] sm:$0xff] %v2750_v35  ;;  %2873 = vst [vmem:[%s4489_s6 + $0xf8] sm:$0xff] %v2751_v48 }

</bundles_post_ra>
